<compile_context>
chip_gen: v5e
topology: v5e:2x2
jax: 0.10.0
libtpu: 0.0.40
codegen_flags: <defaults>
</compile_context>

<pallas_src>
import math

import jax
import jax.numpy as jnp
from jax import lax
from jax.experimental import pallas as pl
from jax.experimental.pallas import tpu as pltpu

LN_EPS = 1e-5  # cfg.layer_norm_eps


# ----------------------------- kernel -----------------------------
def _ln_kernel(x_ref, w_ref, b_ref, o_ref):
    x = x_ref[...].astype(jnp.float32)                 # (TR, D): rows on sublanes, D on lanes
    mean = jnp.mean(x, axis=-1, keepdims=True)         # XLU reduction
    xc = x - mean
    var = jnp.mean(xc * xc, axis=-1, keepdims=True)    # two-pass var for numerics
    inv = lax.rsqrt(var + LN_EPS)                      # EUP rsqrt + multiply (no divide)
    o_ref[...] = ((xc * inv) * w_ref[...] + b_ref[...]).astype(o_ref.dtype)


# ----------------------------- wrapper -----------------------------
def layernorm(x, w, b, *, block_rows=512):
    """LayerNorm over the last axis of x (any leading shape), Pallas TPU kernel."""
    orig_shape = x.shape
    D = orig_shape[-1]
    R = math.prod(orig_shape[:-1])
    x2 = x.reshape(R, D)

    # Row tile: big enough to amortize the ~0.35 us per-step overhead, capped so
    # there are at least 2 grid blocks (both v7x TensorCores get work), rounded
    # to the 8-sublane granularity unless it is the full extent.
    tr = min(block_rows, R)
    if R >= 16:
        tr = min(tr, pl.cdiv(R, 2))
    if tr < R:
        tr = max(8, (tr // 8) * 8)
    n_blocks = pl.cdiv(R, tr)

    # No padding: the last partial block reads garbage rows (rows are
    # independent) and Pallas masks the out-of-bounds writes.
    out = pl.pallas_call(
        _ln_kernel,
        out_shape=jax.ShapeDtypeStruct((R, D), x.dtype),
        grid=(n_blocks,),
        in_specs=[
            pl.BlockSpec((tr, D), lambda i: (i, 0)),   # row tile of activations
            pl.BlockSpec((1, D), lambda i: (0, 0)),    # w (VMEM-resident, broadcast)
            pl.BlockSpec((1, D), lambda i: (0, 0)),    # b
        ],
        out_specs=pl.BlockSpec((tr, D), lambda i: (i, 0)),
        compiler_params=pltpu.CompilerParams(
            dimension_semantics=("parallel",)),        # independent row tiles -> megacore
    )(x2, w.astype(jnp.float32).reshape(1, D), b.astype(jnp.float32).reshape(1, D))

    return out.reshape(orig_shape)


# ----------------------------- pure-JAX reference -----------------------------
def _ref_layernorm(x, w, b):
    xc = x - jnp.mean(x, axis=-1, keepdims=True)
    scale = jnp.sqrt(jnp.mean(xc * xc, axis=-1, keepdims=True) + LN_EPS)
    return (xc / scale) * w + b


# ----------------------------- setup & run -----------------------------
if __name__ == "__main__":
    # Shapes consistent with the module's forward: [batch, position, d_model],
    # d_model = 768 as in the Config (lane-dense multiple of 128).
    B, S, D = 2, 256, 768

    key = jax.random.PRNGKey(0)
    kx, kw, kb = jax.random.split(key, 3)
    x = jax.random.normal(kx, (B, S, D), jnp.float32)
    w = 1.0 + 0.1 * jax.random.normal(kw, (D,), jnp.float32)
    b = 0.1 * jax.random.normal(kb, (D,), jnp.float32)

    out = jax.block_until_ready(layernorm(x, w, b))
    ref = _ref_layernorm(x, w, b)
    assert out.shape == (B, S, D)
    assert jnp.max(jnp.abs(out - ref)) < 1e-4, "mismatch vs pure-JAX reference"

    # Exercise the no-pad partial-last-block path (R % tr != 0).
    x_odd = jax.random.normal(kx, (3, 100, D), jnp.float32)
    out_odd = jax.block_until_ready(layernorm(x_odd, w, b))
    ref_odd = _ref_layernorm(x_odd, w, b)
    assert jnp.max(jnp.abs(out_odd - ref_odd)) < 1e-4, "mismatch on ragged row count"

    # TODO(synk): the cfg.debug print statements in the PyTorch forward are host-side
    # logging and are intentionally not reproduced inside the kernel.
    print("KERNEL_OK")
</pallas_src>

<mosaic_0001>
module attributes {stable_mosaic.version = 11 : i64} {
  func.func @_ln_kernel(%arg0: i32, %arg1: memref<256x768xf32, #tpu.memory_space<vmem>>, %arg2: memref<1x768xf32, #tpu.memory_space<vmem>>, %arg3: memref<1x768xf32, #tpu.memory_space<vmem>>, %arg4: memref<256x768xf32, #tpu.memory_space<vmem>>) attributes {dimension_semantics = [#tpu.dimension_semantics<parallel>], iteration_bounds = array<i64: 2>, scalar_prefetch = 0 : i64, scratch_operands = 0 : i64, tpu.core_type = #tpu.core_type<tc>, window_params = [{transform_indices = @transform_0, window_bounds = array<i64: 256, 768>}, {pipeline_mode = #tpu.pipeline_mode<synchronous>, transform_indices = @transform_1, window_bounds = array<i64: 1, 768>}, {pipeline_mode = #tpu.pipeline_mode<synchronous>, transform_indices = @transform_2, window_bounds = array<i64: 1, 768>}, {transform_indices = @transform_3, window_bounds = array<i64: 256, 768>}]} {
    %c0 = arith.constant 0 : index
    %c0_0 = arith.constant 0 : index
    %0 = vector.load %arg1[%c0, %c0_0] : memref<256x768xf32, #tpu.memory_space<vmem>>, vector<256x768xf32>
    %cst = arith.constant dense<0.000000e+00> : vector<256xf32>
    %1 = vector.multi_reduction <add>, %0, %cst [1] : vector<256x768xf32> to vector<256xf32>
    %2 = vector.shape_cast %1 : vector<256xf32> to vector<256x1xf32>
    %cst_1 = arith.constant 7.680000e+02 : f32
    %3 = vector.broadcast %cst_1 : f32 to vector<256x1xf32>
    %4 = arith.divf %2, %3 : vector<256x1xf32>
    %5 = vector.broadcast %4 : vector<256x1xf32> to vector<256x768xf32>
    %6 = arith.subf %0, %5 : vector<256x768xf32>
    %7 = arith.mulf %6, %6 : vector<256x768xf32>
    %cst_2 = arith.constant dense<0.000000e+00> : vector<256xf32>
    %8 = vector.multi_reduction <add>, %7, %cst_2 [1] : vector<256x768xf32> to vector<256xf32>
    %9 = vector.shape_cast %8 : vector<256xf32> to vector<256x1xf32>
    %cst_3 = arith.constant 7.680000e+02 : f32
    %10 = vector.broadcast %cst_3 : f32 to vector<256x1xf32>
    %11 = arith.divf %9, %10 : vector<256x1xf32>
    %cst_4 = arith.constant 9.99999974E-6 : f32
    %12 = vector.broadcast %cst_4 : f32 to vector<256x1xf32>
    %13 = arith.addf %11, %12 : vector<256x1xf32>
    %14 = math.rsqrt %13 : vector<256x1xf32>
    %15 = vector.broadcast %14 : vector<256x1xf32> to vector<256x768xf32>
    %16 = arith.mulf %6, %15 : vector<256x768xf32>
    %c0_5 = arith.constant 0 : index
    %c0_6 = arith.constant 0 : index
    %17 = vector.load %arg2[%c0_5, %c0_6] : memref<1x768xf32, #tpu.memory_space<vmem>>, vector<1x768xf32>
    %18 = vector.broadcast %17 : vector<1x768xf32> to vector<256x768xf32>
    %19 = arith.mulf %16, %18 : vector<256x768xf32>
    %c0_7 = arith.constant 0 : index
    %c0_8 = arith.constant 0 : index
    %20 = vector.load %arg3[%c0_7, %c0_8] : memref<1x768xf32, #tpu.memory_space<vmem>>, vector<1x768xf32>
    %21 = vector.broadcast %20 : vector<1x768xf32> to vector<256x768xf32>
    %22 = arith.addf %19, %21 : vector<256x768xf32>
    %c0_9 = arith.constant 0 : index
    %c0_10 = arith.constant 0 : index
    %23 = vector.load %arg4[%c0_9, %c0_10] : memref<256x768xf32, #tpu.memory_space<vmem>>, vector<256x768xf32>
    tpu.vector_store %arg4[%c0_9, %c0_10], %22 {strides = array<i32>} : memref<256x768xf32, #tpu.memory_space<vmem>>, vector<256x768xf32>,
    return
  }
  func.func @transform_0(%arg0: i32) -> (i32, i32) {
    %c0_i32 = arith.constant 0 : i32
    %c0_i32_0 = arith.constant 0 : i32
    return %arg0, %c0_i32 : i32, i32
  }
  func.func @transform_1(%arg0: i32) -> (i32, i32) {
    %c0_i32 = arith.constant 0 : i32
    %c0_i32_0 = arith.constant 0 : i32
    %c0_i32_1 = arith.constant 0 : i32
    return %c0_i32, %c0_i32_0 : i32, i32
  }
  func.func @transform_2(%arg0: i32) -> (i32, i32) {
    %c0_i32 = arith.constant 0 : i32
    %c0_i32_0 = arith.constant 0 : i32
    %c0_i32_1 = arith.constant 0 : i32
    return %c0_i32, %c0_i32_0 : i32, i32
  }
  func.func @transform_3(%arg0: i32) -> (i32, i32) {
    %c0_i32 = arith.constant 0 : i32
    %c0_i32_0 = arith.constant 0 : i32
    return %arg0, %c0_i32 : i32, i32
  }
}

</mosaic_0001>

<bundles_post_ra>
// kernel: tpu_custom_call.1
= control target key start
LH: loop header
LB: loop body
LE: loop exit
PB: predicated region body
PF: predicated region fallthrough
CT: control target
= control target key end

     0   :  { %8 = vsyncpa [#allocation3], 0  ;;  %s6046_s0 = inlined_call_operand.hbm [shape: f32[512,768], index: 0, kind: input, shape index: {}]   ;;  %s6047_s1 = inlined_call_operand.hbm [shape: f32[1,768], index: 1, kind: input, shape index: {}]   ;;  %s6048_s2 = inlined_call_operand.hbm [shape: f32[1,768], index: 2, kind: input, shape index: {}]   ;;  %s6049_s3 = inlined_call_operand.hbm [shape: f32[512,768], index: 3, kind: output, shape index: {}]  }
   0x1   :  { %10 = vsyncpa [#allocation3 + $0x1], 0 }
   0x2   :  { %11 = vsyncpa [#allocation6], 0 }
   0x3   :  { %12 = vsyncpa [#allocation4], 0 }
   0x4   :  { %14 = vsyncpa [#allocation4 + $0x1], 0  ;;  %s3034_s12 = smov 0   ;;  %s3036_s13 = smov 0  }
   0x5   :  { %s3038_s14 = smov 0   ;;  %s3040_s15 = smov 0  }
   0x6 LB: > { %s3055_s16 = sadd.s32 4294967295, %s3005_s15   ;;  %s2575_s17 = sadd.s32 4294967294, %s3005_s15   ;;  %s3005_s15 = sphi %s3040_s15, %s6678_s15   ;;  %s3001_s14 = sphi %s3038_s14, %s6677_s14   ;;  %s2997_s13 = sphi %s3036_s13, %s6676_s13   ;;  %s2993_s12 = sphi %s3034_s12, %s6675_s12  }
   0x7   : > { %s3059_s18 = sadd.s32 1, %s3005_s15   ;;  %s27_s19 = sadd.s32 1, %s3001_s14 }
   0x8   : > { %s24_s20 = ssub.s32 %s3005_s15, %s3059_s18  ;;  %p34_p0 = scmp.ne.s32.totalorder %s3001_s14, %s2997_s13 }
   0x9   : > { %p25_p1 = scmp.eq.s32.totalorder %s24_s20, 0  ;;  %p35_p2 = scmp.eq.s32.totalorder %s3005_s15, 0 }
   0xa   : > { %p40_p3 = scmp.ne.s32.totalorder %s2997_s13, %s2993_s12  ;;  %p41_p4 = scmp.eq.s32.totalorder %s3055_s16, 0 }
   0xb   : > { %s3071_s21 = scalar_select %p25_p1, %s3001_s14, %s27_s19  }
   0xc   : > { %p3073_p5 = por %p35_p2, %p34_p0  ;;  %p3079_p6 = por %p41_p4, %p40_p3 }
   0xd   : > { %p106_p7 = scmp.eq.s32.totalorder %s3055_s16, 1  ;;  %p112_p8 = scmp.eq.s32.totalorder %s2575_s17, 1 }
   0xe   : > { %p2576_p9 = scmp.ge.s32.totalorder %s3005_s15, 1  ;;  %p119_p10 = scmp.lt.s32.totalorder %s3005_s15, 3 }
   0xf   : > { %p3086_p11 = por %p106_p7, %p34_p0  ;;  %p3090_p12 = por %p112_p8, %p40_p3 }
  0x10   : > { %p3094_p13 = pnand %p2576_p9, %p119_p10  ;;  %s131_s29 = sshll.u32 %s6047_s1, 4  ;;  %s132_s29 = int_to_ptr.hbm [resolvable:$true] %s131_s29 }
  0x11   : > { %s3007_s30 = smov [#allocation5]   ;;  %p2624_p3 = scmp.lt.s32.totalorder %s3005_s15, 2 }
  0x12   : > { %p2607_p1 = pneg %p3094_p13  ;;  %s133_s4 = sshll.u32 %s3007_s30, 4  ;;  %s134_s4 = int_to_ptr.vmem [resolvable:$true] %s133_s4 }
  0x13   : > { %s143_s7 = sshll.u32 %s6048_s2, 4  ;;  %p3112_p7 = pnand %p2624_p3, %p3073_p5  ;;  %s144_s7 = int_to_ptr.hbm [resolvable:$true] %s143_s7 }
  0x14   : > { %p2608_p2 = pnand %p2607_p1, %p41_p4  ;;  %s3008_s9 = smov [#allocation7]  }
  0x15   : > { %s145_s10 = sshll.u32 %s3008_s9, 4  ;;  %s156_s11 = sand.u32 1, %s3001_s14   ;;  %s146_s10 = int_to_ptr.vmem [resolvable:$true] %s145_s10 }
  0x16   : > { %2610 = dma.hbm_to_vmem [thread:$0]  (!%p2608_p2), %s132_s29, 96, %s134_s4, [#allocation6]  }
  0x17   : > { %2613 = dma.hbm_to_vmem [thread:$0]  (!%p2608_p2), %s144_s7, 96, %s146_s10, [#allocation6]  }
  0x18   : > { %s2591_s17 = smul.u32 1536, %s156_s11  ;;  %s157_s22 = scalar_lea.sflag [#allocation3], %s156_s11 }
  0x19   : > { %s2592_s19 = smul.u32 1536, %s3005_s15  ;;  %p2909_p8 = pneg %p3112_p7 }
  0x1a   : > { %s160_s30 = scalar_lea.vmem [#allocation2], %s2591_s17  ;;  %s2912_s10 = scalar_lea.hbm %s6046_s0, 3072 }
  0x1b   : > { %s166_s28 = scalar_lea.hbm %s6046_s0, %s2592_s19  ;;  %s169_s5 = sshll.u32 %s160_s30, 4  ;;  %s170_s5 = int_to_ptr.vmem [resolvable:$true] %s169_s5 }
  0x1c   : > { %s167_s29 = sshll.u32 %s166_s28, 4  ;;  %s168_s29 = int_to_ptr.hbm [resolvable:$true] %s167_s29 }
  0x1d   : > { %s2905_s4 = sshra.s32 %s168_s29, 4  ;;  %s2906_s4 = int_to_ptr.hbm [resolvable:$true] %s2905_s4 }
  0x1e   : > { %s2907_s6 = scalar_lea.hbm %s2906_s4, 1536  ;;  %p2913_p1 = scmp.lt.s32.totalorder %s2906_s4, %s6046_s0 }
  0x1f   : > { %p2908_p5 = scmp.ne.s32.totalorder %s2906_s4, %s2907_s6  ;;  %p2914_p2 = scmp.lt.s32.totalorder %s2912_s10, %s2907_s6 }
  0x21   : > { %p2910_p9 = pnand %p2909_p8, %p2908_p5  ;;  %p2915_p3 = por %p2914_p2, %p2913_p1 }
  0x23   : > { %p2911_p10 = pneg %p2910_p9 }
  0x25   : > { %p2916_p0 = pnand %p2915_p3, %p2911_p10 }
  0x27   : > { %2919 = shalt.err (!%p2916_p0)
}
  0x28   : > { %s3009_s11 = smov 768   ;;  %s3010_s17 = smov 48  }
  0x29   : > { %2617 = dma.hbm_to_vmem [thread:$0]  (!%p3112_p7), %s168_s29, 24576, %s170_s5, %s157_s22, %s3009_s11, %s3009_s11, %s3010_s17  }
  0x2a   : > { %181 = sbr.rel (%p3094_p13) target bundleno = 622 (0x26e), region = 32 }
  0x2f   : > { %s3134_s27 = sand.u32 1, %s2997_s13  }
  0x30   : > { %s2593_s28 = smul.u32 1536, %s3134_s27  ;;  %s184_s30 = scalar_lea.sflag [#allocation3], %s3134_s27 }
  0x32   : > { %s3140_s4 = scalar_lea.vmem [#allocation2], %s2593_s28 }
  0x33   : > { %2980 = dma.done.wait (%p3079_p6), %s184_s30, 24576  }
  0x34   : > { %2982 = vsyncadd (%p3079_p6), %s184_s30, 4294942720 }
  0x35   : > { %2984 = dma.done.wait (%p41_p4), [#allocation6], 192  }
  0x36   : > { %2986 = vsyncadd (%p41_p4), [#allocation6], 4294967104  ;;  %v3151_v0 = vld [vmem:[%s3140_s4 + $0xc0] sm:$0xff]  ;;  %v3154_v1 = vld [vmem:[%s3140_s4 + $0xc8] sm:$0xff]  ;;  %s4850_s23 = scalar_lea.vmem [#allocation8], %s2593_s28  ;;  %s2594_s26 = smul.u32 1536, %s3055_s16 }
  0x37   : > { %v3157_v2 = vld [vmem:[%s3140_s4 + $0xd0] sm:$0xff]  ;;  %v3160_v3 = vld [vmem:[%s3140_s4 + $0xd8] sm:$0xff]  ;;  %v443_v4 = vadd.f32 %v3154_v1, %v3151_v0  ;;  %v3165_v5 = vld [vmem:[%s3140_s4 + $0x60] sm:$0xff]  ;;  %s2480_s29 = sshll.u32 %s4850_s23, 4  ;;  %s2467_s6 = scalar_lea.sflag [#allocation4], %s3134_s27  ;;  %s2481_s29 = int_to_ptr.vmem [resolvable:$true] %s2480_s29 }
  0x38   : > { %v3168_v6 = vld [vmem:[%s3140_s4 + $0x68] sm:$0xff]  ;;  %v3171_v7 = vld [vmem:[%s3140_s4 + $0x70] sm:$0xff]  ;;  %v3174_v8 = vld [vmem:[%s3140_s4 + $0xe0] sm:$0xff]  ;;  %s2479_s5 = scalar_lea.hbm %s6049_s3, %s2594_s26  ;;  %s2955_s19 = scalar_lea.hbm %s6049_s3, 3072 }
  0x39   : > { %v444_v9 = vadd.f32 %v443_v4, %v3157_v2  ;;  %v3178_v10 = vld [vmem:[%s3140_s4 + $0x78] sm:$0xff]  ;;  %v429_v11 = vadd.f32 %v3168_v6, %v3165_v5  ;;  %v3183_v12 = vld [vmem:[%s3140_s4] sm:$0xff]  ;;  %v3186_v13 = vld [vmem:[%s3140_s4 + $0x8] sm:$0xff]  ;;  %s2482_s22 = sshll.u32 %s2479_s5, 4  ;;  %s2483_s22 = int_to_ptr.hbm [resolvable:$true] %s2482_s22 }
  0x3a   : > { %v3189_v14 = vld [vmem:[%s3140_s4 + $0x10] sm:$0xff]  ;;  %v3192_v15 = vld [vmem:[%s3140_s4 + $0xe8] sm:$0xff]  ;;  %v3196_v17 = vld [vmem:[%s3140_s4 + $0x80] sm:$0xff]  ;;  %v415_v20 = vadd.f32 %v3186_v13, %v3183_v12  ;;  %s2949_s7 = sshra.s32 %s2483_s22, 4  ;;  %s2950_s7 = int_to_ptr.hbm [resolvable:$true] %s2949_s7 }
  0x3b   : > { %v445_v16 = vadd.f32 %v444_v9, %v3160_v3  ;;  %v430_v18 = vadd.f32 %v429_v11, %v3171_v7  ;;  %v3200_v19 = vld [vmem:[%s3140_s4 + $0x18] sm:$0xff]  ;;  %v3205_v21 = vld [vmem:[%s3140_s4 + $0xf0] sm:$0xff]  ;;  %v3211_v23 = vld [vmem:[%s3140_s4 + $0x100] sm:$0xff]  ;;  %s2951_s9 = scalar_lea.hbm %s2950_s7, 1536  ;;  %p2956_p0 = scmp.lt.s32.totalorder %s2950_s7, %s6049_s3 }
  0x3c   : > { %v3208_v22 = vld [vmem:[%s3140_s4 + $0xf8] sm:$0xff]  ;;  %v3215_v25 = vld [vmem:[%s3140_s4 + $0x88] sm:$0xff]  ;;  %v3219_v27 = vld [vmem:[%s3140_s4 + $0x20] sm:$0xff]  ;;  %v416_v28 = vadd.f32 %v415_v20, %v3189_v14  ;;  %p2952_p4 = scmp.ne.s32.totalorder %s2950_s7, %s2951_s9  ;;  %p2957_p7 = scmp.lt.s32.totalorder %s2955_s19, %s2951_s9 }
  0x3d   : > { %v446_v24 = vadd.f32 %v445_v16, %v3174_v8  ;;  %v431_v26 = vadd.f32 %v430_v18, %v3178_v10  ;;  %v450_v29 = vadd.f32 %v3208_v22, %v3205_v21  ;;  %v3225_v30 = vld [vmem:[%s3140_s4 + $0x108] sm:$0xff]  ;;  %v3228_v31 = vld [vmem:[%s3140_s4 + $0x90] sm:$0xff]  ;;  %v3231_v32 = vld [vmem:[%s3140_s4 + $0x98] sm:$0xff] }
  0x3e   : > { %v3236_v35 = vld [vmem:[%s3140_s4 + $0x28] sm:$0xff]  ;;  %v417_v36 = vadd.f32 %v416_v28, %v3200_v19  ;;  %v3240_v37 = vld [vmem:[%s3140_s4 + $0x110] sm:$0xff]  ;;  %v3244_v39 = vld [vmem:[%s3140_s4 + $0xa0] sm:$0xff]  ;;  %v436_v41 = vadd.f32 %v3231_v32, %v3228_v31  ;;  %p2953_p6 = pnand %p2952_p4, %p3086_p11  ;;  %p2958_p5 = por %p2957_p7, %p2956_p0 }
  0x3f   : > { %v447_v33 = vadd.f32 %v446_v24, %v3192_v15  ;;  %v432_v34 = vadd.f32 %v431_v26, %v3196_v17  ;;  %v451_v38 = vadd.f32 %v450_v29, %v3211_v23  ;;  %v3247_v40 = vld [vmem:[%s3140_s4 + $0x118] sm:$0xff]  ;;  %v3252_v42 = vld [vmem:[%s3140_s4 + $0x30] sm:$0xff]  ;;  %v3258_v44 = vld [vmem:[%s3140_s4 + $0x40] sm:$0xff] }
  0x40   : > { %v3255_v43 = vld [vmem:[%s3140_s4 + $0x38] sm:$0xff]  ;;  %v418_v46 = vadd.f32 %v417_v36, %v3219_v27  ;;  %v3264_v48 = vld [vmem:[%s3140_s4 + $0xa8] sm:$0xff]  ;;  %v3267_v49 = vld [vmem:[%s3140_s4 + $0xb0] sm:$0xff]  ;;  %v437_v52 = vadd.f32 %v436_v41, %v3244_v39  ;;  %p2954_p13 = pneg %p2953_p6 }
  0x41   : > { %448 = vadd.xlane.f32.xlu2 %v447_v33  ;;  %v433_v45 = vadd.f32 %v432_v34, %v3215_v25  ;;  %v452_v47 = vadd.f32 %v451_v38, %v3225_v30  ;;  %v3270_v50 = vld [vmem:[%s3140_s4 + $0x48] sm:$0xff]  ;;  %v422_v51 = vadd.f32 %v3255_v43, %v3252_v42  ;;  %v3276_v53 = vld [vmem:[%s3140_s4 + $0x180] sm:$0xff]  ;;  %v3282_v55 = vld [vmem:[%s3140_s4 + $0x190] sm:$0xff] }
  0x42   : > { %6262 = vst [vmem:[#allocation12_spill] sm:$0xff] %v3276_v53  ;;  %v3279_v54 = vld [vmem:[%s3140_s4 + $0x188] sm:$0xff]  ;;  %v419_v56 = vadd.f32 %v418_v46, %v3236_v35  ;;  %v3287_v58 = vld [vmem:[%s3140_s4 + $0xb8] sm:$0xff]  ;;  %v3290_v59 = vld [vmem:[%s3140_s4 + $0x50] sm:$0xff]  ;;  %v438_v63 = vadd.f32 %v437_v52, %v3264_v48  ;;  %p2959_p8 = pnand %p2958_p5, %p2954_p13 }
  0x43   : > { %6263 = vst [vmem:[#allocation13_spill] sm:$0xff] %v3279_v54  ;;  %434 = vadd.xlane.f32.xlu1 %v433_v45  ;;  %v453_v57 = vadd.f32 %v452_v47, %v3240_v37  ;;  %v423_v60 = vadd.f32 %v422_v51, %v3258_v44  ;;  %v3294_v61 = vld [vmem:[%s3140_s4 + $0x198] sm:$0xff]  ;;  %v471_v62 = vadd.f32 %v3279_v54, %v3276_v53  ;;  %v3300_v4 = vld [vmem:[%s3140_s4 + $0x150] sm:$0xff]  ;;  %v267_v11 = vld [vmem:[%s3140_s4 + $0x160] sm:$0xff] }
  0x44   : > { %6264 = vst [vmem:[#allocation14_spill] sm:$0xff] %v3282_v55  ;;  %v266_v9 = vld [vmem:[%s3140_s4 + $0x158] sm:$0xff]  ;;  %420 = vadd.xlane.f32.xlu0 %v419_v56  ;;  %v3310_v24 = vld [vmem:[%s3140_s4 + $0x1a0] sm:$0xff]  ;;  %v3314_v28 = vld [vmem:[%s3140_s4 + $0x168] sm:$0xff]  ;;  %v439_v33 = vadd.f32 %v438_v63, %v3267_v49 }
  0x45   : > { %6265 = vst [vmem:[#allocation15_spill] sm:$0xff] %v3290_v59  ;;  %v454_v16 = vadd.f32 %v453_v57, %v3247_v40  ;;  %v3306_v18 = vld [vmem:[%s3140_s4 + $0x58] sm:$0xff]  ;;  %v424_v20 = vadd.f32 %v423_v60, %v3270_v50  ;;  %v472_v26 = vadd.f32 %v471_v62, %v3282_v55  ;;  %v464_v29 = vadd.f32 %v266_v9, %v3300_v4  ;;  %v3319_v34 = vld [vmem:[%s3140_s4 + $0x120] sm:$0xff]  ;;  %v3322_v36 = vld [vmem:[%s3140_s4 + $0x128] sm:$0xff] }
  0x46   : > { %6266 = vst [vmem:[#allocation16_spill] sm:$0xff] %v3294_v61  ;;  %v3325_v38 = vld [vmem:[%s3140_s4 + $0x130] sm:$0xff]  ;;  %v457_v51 = vadd.f32 %v3322_v36, %v3319_v34  ;;  %v440_v52 = vadd.f32 %v439_v33, %v3287_v58  ;;  %v3336_v56 = vld [vmem:[%s3140_s4 + $0x138] sm:$0xff]  ;;  %v3346_v63 = vld [vmem:[%s3140_s4 + $0x1a8] sm:$0xff] }
  0x47   : > { %6267 = vst [vmem:[#allocation17_spill] sm:$0xff] %v3300_v4  ;;  %v425_v41 = vadd.f32 %v424_v20, %v3290_v59  ;;  %v473_v45 = vadd.f32 %v472_v26, %v3294_v61  ;;  %v3330_v46 = vld [vmem:[%s3140_s4 + $0x170] sm:$0xff]  ;;  %v465_v47 = vadd.f32 %v464_v29, %v267_v11  ;;  %v3342_v60 = vld [vmem:[%s3140_s4 + $0x218] sm:$0xff]  ;;  %v3351_v20 = vld [vmem:[%s3140_s4 + $0x140] sm:$0xff] }
  0x48   : > { %6268 = vst [vmem:[#allocation18_spill] sm:$0xff] %v3306_v18  ;;  %v3339_v57 = vld [vmem:[%s3140_s4 + $0x210] sm:$0xff]  ;;  %v458_v26 = vadd.f32 %v457_v51, %v3325_v38  ;;  %v3355_v29 = vld [vmem:[%s3140_s4 + $0x220] sm:$0xff]  ;;  %v3368_v51 = vld [vmem:[%s3140_s4 + $0x228] sm:$0xff] }
  0x49   : > { %6269 = vst [vmem:[#allocation19_spill] sm:$0xff] %v3310_v24  ;;  %455 = vadd.xlane.f32.xlu2 %v454_v16  ;;  %v426_v62 = vadd.f32 %v425_v41, %v3306_v18  ;;  %v474_v9 = vadd.f32 %v473_v45, %v3310_v24  ;;  %v466_v11 = vadd.f32 %v465_v47, %v3314_v28  ;;  %v283_v33 = vld [vmem:[%s3140_s4 + $0x1e0] sm:$0xff]  ;;  %v284_v41 = vld [vmem:[%s3140_s4 + $0x1e8] sm:$0xff]  ;;  %v285_v4 = vld [vmem:[%s3140_s4 + $0x1f0] sm:$0xff] }
  0x4a   : > { %6270 = vst [vmem:[#allocation20_spill] sm:$0xff] %v3314_v28  ;;  %v492_v16 = vadd.f32 %v3342_v60, %v3339_v57  ;;  %v3363_v45 = vld [vmem:[%s3140_s4 + $0x178] sm:$0xff]  ;;  %v459_v28 = vadd.f32 %v458_v26, %v3336_v56  ;;  %v3383_v26 = vld [vmem:[%s3140_s4 + $0x148] sm:$0xff]  ;;  %v303_v24 = vld [vmem:[%s3140_s4 + $0x280] sm:$0xff] }
  0x4b   : > { %6271 = vst [vmem:[#allocation21_spill] sm:$0xff] %v3319_v34  ;;  %441 = vadd.xlane.f32.xlu1 %v440_v52  ;;  %v467_v47 = vadd.f32 %v466_v11, %v3330_v46  ;;  %v3376_v52 = vld [vmem:[%s3140_s4 + $0x1b8] sm:$0xff]  ;;  %v3379_v34 = vld [vmem:[%s3140_s4 + $0x1c0] sm:$0xff]  ;;  %v475_v11 = vadd.f32 %v474_v9, %v3346_v63  ;;  %v305_v61 = vld [vmem:[%s3140_s4 + $0x290] sm:$0xff] }
  0x4c   : > { %6272 = vst [vmem:[#allocation22_spill] sm:$0xff] %v3322_v36  ;;  %v485_v36 = vadd.f32 %v284_v41, %v283_v33  ;;  %427 = vadd.xlane.f32.xlu0 %v426_v62  ;;  %v3387_v33 = vld [vmem:[%s3140_s4 + $0x230] sm:$0xff]  ;;  %v3390_v41 = vld [vmem:[%s3140_s4 + $0x1c8] sm:$0xff]  ;;  %v3396_v9 = vld [vmem:[%s3140_s4 + $0x2a0] sm:$0xff] }
  0x4d   : > { %6273 = vst [vmem:[#allocation23_spill] sm:$0xff] %v3325_v38  ;;  %v286_v38 = vld [vmem:[%s3140_s4 + $0x1f8] sm:$0xff]  ;;  %v339_v54 = vld [vmem:[%s3140_s4 + $0x3a0] sm:$0xff]  ;;  %v341_v18 = vld [vmem:[%s3140_s4 + $0x3b0] sm:$0xff] }
  0x4e   : > { %6274 = vst [vmem:[#allocation24_spill] sm:$0xff] %v3330_v46  ;;  %v460_v46 = vadd.f32 %v459_v28, %v3351_v20  ;;  %v468_v28 = vadd.f32 %v467_v47, %v3363_v45  ;;  %v3414_v47 = vld [vmem:[%s3140_s4 + $0x238] sm:$0xff]  ;;  %v399_v59 = vld [vmem:[%s3140_s4 + $0x580] sm:$0xff] }
  0x4f   : > { %6275 = vst [vmem:[#allocation25_spill] sm:$0xff] %v3336_v56  ;;  %v3399_v56 = vld [vmem:[%s3140_s4 + $0x2a8] sm:$0xff] }
  0x50   : > { %6276 = vst [vmem:[#allocation26_spill] sm:$0xff] %v3339_v57  ;;  %v3373_v57 = vld [vmem:[%s3140_s4 + $0x1b0] sm:$0xff] }
  0x51   : > { %6277 = vst [vmem:[#allocation27_spill] sm:$0xff] %v3342_v60  ;;  %v493_v60 = vadd.f32 %v492_v16, %v3355_v29  ;;  %v486_v16 = vadd.f32 %v485_v36, %v285_v4  ;;  %476 = vadd.xlane.f32.xlu2 %v475_v11  ;;  %v3428_v11 = vld [vmem:[%s3140_s4 + $0x208] sm:$0xff] }
  0x52   : > { %6278 = vst [vmem:[#allocation28_spill] sm:$0xff] %v3346_v63  ;;  %v3402_v63 = vld [vmem:[%s3140_s4 + $0x2b0] sm:$0xff] }
  0x53   : > { %6279 = vst [vmem:[#allocation29_spill] sm:$0xff] %v3351_v20  ;;  %v494_v62 = vadd.f32 %v493_v60, %v3368_v51  ;;  %v287_v20 = vld [vmem:[%s3140_s4 + $0x200] sm:$0xff]  ;;  %v487_v4 = vadd.f32 %v486_v16, %v286_v38  ;;  %v461_v60 = vadd.f32 %v460_v46, %v3383_v26  ;;  %v3418_v16 = vld [vmem:[%s3140_s4 + $0x1d0] sm:$0xff]  ;;  %469 = vadd.xlane.f32.xlu1 %v468_v28 }
  0x54   : > { %6280 = vst [vmem:[#allocation30_spill] sm:$0xff] %v3355_v29  ;;  %v478_v29 = vadd.f32 %v3376_v52, %v3373_v57 }
  0x55   : > { %6281 = vst [vmem:[#allocation31_spill] sm:$0xff] %v3363_v45  ;;  %v495_v38 = vadd.f32 %v494_v62, %v3387_v33  ;;  %v296_v45 = vld [vmem:[%s3140_s4 + $0x248] sm:$0xff]  ;;  %v488_v62 = vadd.f32 %v487_v4, %v287_v20  ;;  %462 = vadd.xlane.f32.xlu0 %v461_v60  ;;  %v3440_v20 = vld [vmem:[%s3140_s4 + $0x2c0] sm:$0xff] }
  0x56   : > { %6282 = vst [vmem:[#allocation32_spill] sm:$0xff] %v3368_v51  ;;  %v479_v36 = vadd.f32 %v478_v29, %v3379_v34  ;;  %v302_v51 = vld [vmem:[%s3140_s4 + $0x278] sm:$0xff]  ;;  %v327_v4 = vld [vmem:[%s3140_s4 + $0x340] sm:$0xff] }
  0x57   : > { %6283 = vst [vmem:[#allocation33_spill] sm:$0xff] %v3373_v57  ;;  %v301_v57 = vld [vmem:[%s3140_s4 + $0x270] sm:$0xff] }
  0x58   : > { %6284 = vst [vmem:[#allocation34_spill] sm:$0xff] %v3376_v52  ;;  %v513_v52 = vadd.f32 %v3399_v56, %v3396_v9  ;;  %v480_v29 = vadd.f32 %v479_v36, %v3390_v41  ;;  %v506_v46 = vadd.f32 %v302_v51, %v301_v57  ;;  %v304_v36 = vld [vmem:[%s3140_s4 + $0x288] sm:$0xff]  ;;  %v326_v57 = vld [vmem:[%s3140_s4 + $0x338] sm:$0xff]  ;;  %v496_v51 = vadd.f32 %v495_v38, %v3414_v47 }
  0x59   : > { %6285 = vst [vmem:[#allocation35_spill] sm:$0xff] %v3379_v34  ;;  %v295_v34 = vld [vmem:[%s3140_s4 + $0x240] sm:$0xff]  ;;  %v320_v38 = vld [vmem:[%s3140_s4 + $0x308] sm:$0xff] }
  0x5a   : > { %6286 = vst [vmem:[#allocation36_spill] sm:$0xff] %v3383_v26  ;;  %v297_v26 = vld [vmem:[%s3140_s4 + $0x250] sm:$0xff]  ;;  %v481_v28 = vadd.f32 %v480_v29, %v3418_v16  ;;  %497 = vadd.xlane.f32.xlu2 %v496_v51  ;;  %v343_v51 = vld [vmem:[%s3140_s4 + $0x3c0] sm:$0xff] }
  0x5b   : > { %6287 = vst [vmem:[#allocation37_spill] sm:$0xff] %v3387_v33  ;;  %v507_v33 = vadd.f32 %v506_v46, %v303_v24  ;;  %v319_v46 = vld [vmem:[%s3140_s4 + $0x300] sm:$0xff] }
  0x5c   : > { %6288 = vst [vmem:[#allocation38_spill] sm:$0xff] %v3390_v41  ;;  %v499_v41 = vadd.f32 %v296_v45, %v295_v34  ;;  %v3445_v45 = vld [vmem:[%s3140_s4 + $0x258] sm:$0xff] }
  0x5d   : > { %6289 = vst [vmem:[#allocation39_spill] sm:$0xff] %v3396_v9  ;;  %v3423_v9 = vld [vmem:[%s3140_s4 + $0x2b8] sm:$0xff]  ;;  %v508_v29 = vadd.f32 %v507_v33, %v304_v36  ;;  %v3464_v36 = vld [vmem:[%s3140_s4 + $0x348] sm:$0xff] }
  0x5e   : > { %6290 = vst [vmem:[#allocation40_spill] sm:$0xff] %v3399_v56  ;;  %v514_v56 = vadd.f32 %v513_v52, %v3402_v63  ;;  %v325_v52 = vld [vmem:[%s3140_s4 + $0x330] sm:$0xff]  ;;  %v500_v60 = vadd.f32 %v499_v41, %v297_v26  ;;  %v3456_v41 = vld [vmem:[%s3140_s4 + $0x2c8] sm:$0xff] }
  0x5f   : > { %6291 = vst [vmem:[#allocation41_spill] sm:$0xff] %v3402_v63  ;;  %v3436_v63 = vld [vmem:[%s3140_s4 + $0x1d8] sm:$0xff]  ;;  %v534_v34 = vadd.f32 %v326_v57, %v325_v52  ;;  %v3460_v57 = vld [vmem:[%s3140_s4 + $0x260] sm:$0xff] }
  0x60   : > { %6292 = vst [vmem:[#allocation42_spill] sm:$0xff] %v3414_v47  ;;  %v515_v24 = vadd.f32 %v514_v56, %v3423_v9  ;;  %v489_v47 = vadd.f32 %v488_v62, %v3428_v11  ;;  %v321_v56 = vld [vmem:[%s3140_s4 + $0x310] sm:$0xff]  ;;  %v314_v52 = vld [vmem:[%s3140_s4 + $0x2d8] sm:$0xff]  ;;  %v482_v26 = vadd.f32 %v481_v28, %v3436_v63  ;;  %v501_v33 = vadd.f32 %v500_v60, %v3445_v45 }
  0x61   : > { %6293 = vst [vmem:[#allocation43_spill] sm:$0xff] %v3418_v16  ;;  %v527_v16 = vadd.f32 %v320_v38, %v319_v46  ;;  %v535_v55 = vadd.f32 %v534_v34, %v327_v4  ;;  %v315_v34 = vld [vmem:[%s3140_s4 + $0x2e0] sm:$0xff]  ;;  %v344_v46 = vld [vmem:[%s3140_s4 + $0x3c8] sm:$0xff]  ;;  %v306_v28 = vld [vmem:[%s3140_s4 + $0x298] sm:$0xff]  ;;  %v509_v38 = vadd.f32 %v508_v29, %v305_v61 }
  0x62   : > { %6294 = vst [vmem:[#allocation44_spill] sm:$0xff] %v3423_v9  ;;  %v313_v9 = vld [vmem:[%s3140_s4 + $0x2d0] sm:$0xff]  ;;  %v516_v62 = vadd.f32 %v515_v24, %v3440_v20  ;;  %490 = vadd.xlane.f32.xlu1 %v489_v47  ;;  %483 = vadd.xlane.f32.xlu0 %v482_v26  ;;  %v502_v47 = vadd.f32 %v501_v33, %v3460_v57  ;;  %v316_v61 = vld [vmem:[%s3140_s4 + $0x2e8] sm:$0xff] }
  0x63   : > { %6295 = vst [vmem:[#allocation45_spill] sm:$0xff] %v3428_v11  ;;  %v520_v4 = vadd.f32 %v314_v52, %v313_v9  ;;  %v528_v24 = vadd.f32 %v527_v16, %v321_v56  ;;  %v536_v11 = vadd.f32 %v535_v55, %v3464_v36  ;;  %v337_v60 = vld [vmem:[%s3140_s4 + $0x390] sm:$0xff]  ;;  %v3476_v52 = vld [vmem:[%s3140_s4 + $0x268] sm:$0xff]  ;;  %v555_v55 = vadd.f32 %v344_v46, %v343_v51  ;;  %v331_v56 = vld [vmem:[%s3140_s4 + $0x360] sm:$0xff] }
  0x64   : > { %6296 = vst [vmem:[#allocation46_spill] sm:$0xff] %v3436_v63  ;;  %v517_v9 = vadd.f32 %v516_v62, %v3456_v41  ;;  %v3480_v63 = vld [vmem:[%s3140_s4 + $0x350] sm:$0xff]  ;;  %v510_v26 = vadd.f32 %v509_v38, %v306_v28  ;;  %v346_v28 = vld [vmem:[%s3140_s4 + $0x3d8] sm:$0xff] }
  0x65   : > { %6297 = vst [vmem:[#allocation47_spill] sm:$0xff] %v3440_v20  ;;  %v322_v20 = vld [vmem:[%s3140_s4 + $0x318] sm:$0xff]  ;;  %v521_v16 = vadd.f32 %v520_v4, %v315_v34  ;;  %v345_v29 = vld [vmem:[%s3140_s4 + $0x3d0] sm:$0xff]  ;;  %v537_v33 = vadd.f32 %v536_v11, %v3480_v63  ;;  %v503_v4 = vadd.f32 %v502_v47, %v3476_v52 }
  0x66   : > { %6298 = vst [vmem:[#allocation48_spill] sm:$0xff] %v3445_v45  ;;  %v338_v45 = vld [vmem:[%s3140_s4 + $0x398] sm:$0xff]  ;;  %v529_v62 = vadd.f32 %v528_v24, %v322_v20  ;;  %518 = vadd.xlane.f32.xlu2 %v517_v9  ;;  %v3494_v51 = vld [vmem:[%s3140_s4 + $0x2f0] sm:$0xff]  ;;  %v556_v20 = vadd.f32 %v555_v55, %v345_v29 }
  0x67   : > { %6299 = vst [vmem:[#allocation49_spill] sm:$0xff] %v3456_v41  ;;  %v548_v41 = vadd.f32 %v338_v45, %v337_v60  ;;  %v3491_v34 = vld [vmem:[%s3140_s4 + $0x358] sm:$0xff]  ;;  %v522_v46 = vadd.f32 %v521_v16, %v316_v61  ;;  %v333_v38 = vld [vmem:[%s3140_s4 + $0x370] sm:$0xff]  ;;  %v324_v60 = vld [vmem:[%s3140_s4 + $0x328] sm:$0xff] }
  0x68   : > { %6300 = vst [vmem:[#allocation50_spill] sm:$0xff] %v3460_v57  ;;  %v323_v57 = vld [vmem:[%s3140_s4 + $0x320] sm:$0xff]  ;;  %v361_v24 = vld [vmem:[%s3140_s4 + $0x450] sm:$0xff]  ;;  %v362_v11 = vld [vmem:[%s3140_s4 + $0x458] sm:$0xff]  ;;  %v557_v29 = vadd.f32 %v556_v20, %v346_v28 }
  0x69   : > { %6301 = vst [vmem:[#allocation51_spill] sm:$0xff] %v3464_v36  ;;  %v332_v36 = vld [vmem:[%s3140_s4 + $0x368] sm:$0xff]  ;;  %v530_v9 = vadd.f32 %v529_v62, %v323_v57  ;;  %v549_v47 = vadd.f32 %v548_v41, %v339_v54  ;;  %v355_v61 = vld [vmem:[%s3140_s4 + $0x420] sm:$0xff]  ;;  %v523_v55 = vadd.f32 %v522_v46, %v3494_v51  ;;  %v349_v57 = vld [vmem:[%s3140_s4 + $0x3f0] sm:$0xff] }
  0x6a   : > { %6302 = vst [vmem:[#allocation52_spill] sm:$0xff] %v3476_v52  ;;  %v541_v45 = vadd.f32 %v332_v36, %v331_v56  ;;  %511 = vadd.xlane.f32.xlu1 %v510_v26  ;;  %v340_v52 = vld [vmem:[%s3140_s4 + $0x3a8] sm:$0xff]  ;;  %504 = vadd.xlane.f32.xlu0 %v503_v4  ;;  %v3506_v36 = vld [vmem:[%s3140_s4 + $0x2f8] sm:$0xff]  ;;  %v576_v26 = vadd.f32 %v362_v11, %v361_v24  ;;  %v347_v54 = vld [vmem:[%s3140_s4 + $0x3e0] sm:$0xff] }
  0x6b   : > { %6303 = vst [vmem:[#allocation53_spill] sm:$0xff] %v3480_v63  ;;  %v538_v63 = vadd.f32 %v537_v33, %v3491_v34  ;;  %v356_v16 = vld [vmem:[%s3140_s4 + $0x428] sm:$0xff]  ;;  %v350_v62 = vld [vmem:[%s3140_s4 + $0x3f8] sm:$0xff]  ;;  %v363_v33 = vld [vmem:[%s3140_s4 + $0x460] sm:$0xff]  ;;  %v550_v4 = vadd.f32 %v549_v47, %v340_v52  ;;  %v524_v20 = vadd.f32 %v523_v55, %v3506_v36 }
  0x6c   : > { %6304 = vst [vmem:[#allocation54_spill] sm:$0xff] %v3491_v34  ;;  %v542_v56 = vadd.f32 %v541_v45, %v333_v38  ;;  %v334_v41 = vld [vmem:[%s3140_s4 + $0x378] sm:$0xff]  ;;  %v531_v34 = vadd.f32 %v530_v9, %v324_v60  ;;  %v569_v53 = vadd.f32 %v356_v16, %v355_v61  ;;  %v357_v46 = vld [vmem:[%s3140_s4 + $0x430] sm:$0xff]  ;;  %v562_v28 = vadd.f32 %v350_v62, %v349_v57  ;;  %v3518_v45 = vld [vmem:[%s3140_s4 + $0x3e8] sm:$0xff] }
  0x6d   : > { %6305 = vst [vmem:[#allocation55_spill] sm:$0xff] %v3494_v51  ;;  %v558_v38 = vadd.f32 %v557_v29, %v347_v54  ;;  %v335_v24 = vld [vmem:[%s3140_s4 + $0x380] sm:$0xff]  ;;  %v577_v60 = vadd.f32 %v576_v26, %v363_v33  ;;  %v364_v52 = vld [vmem:[%s3140_s4 + $0x468] sm:$0xff]  ;;  %v551_v16 = vadd.f32 %v550_v4, %v341_v18  ;;  %v358_v57 = vld [vmem:[%s3140_s4 + $0x438] sm:$0xff] }
  0x6e   : > { %6306 = vst [vmem:[#allocation56_spill] sm:$0xff] %v3506_v36  ;;  %539 = vadd.xlane.f32.xlu2 %v538_v63  ;;  %v543_v11 = vadd.f32 %v542_v56, %v334_v41  ;;  %v351_v9 = vld [vmem:[%s3140_s4 + $0x400] sm:$0xff]  ;;  %v380_v61 = vld [vmem:[%s3140_s4 + $0x4e8] sm:$0xff]  ;;  %v342_v63 = vld [vmem:[%s3140_s4 + $0x3b8] sm:$0xff]  ;;  %v570_v55 = vadd.f32 %v569_v53, %v357_v46 }
  0x6f   : > { %6307 = vst [vmem:[#allocation57_spill] sm:$0xff] %v3518_v45  ;;  %v379_v47 = vld [vmem:[%s3140_s4 + $0x4e0] sm:$0xff]  ;;  %v563_v62 = vadd.f32 %v562_v28, %v351_v9  ;;  %v373_v29 = vld [vmem:[%s3140_s4 + $0x4b0] sm:$0xff]  ;;  %v374_v56 = vld [vmem:[%s3140_s4 + $0x4b8] sm:$0xff]  ;;  %v559_v26 = vadd.f32 %v558_v38, %v3518_v45  ;;  %v552_v28 = vadd.f32 %v551_v16, %v342_v63 }
  0x70   : > { %v336_v54 = vld [vmem:[%s3140_s4 + $0x388] sm:$0xff]  ;;  %v544_v41 = vadd.f32 %v543_v11, %v335_v24  ;;  %v365_v33 = vld [vmem:[%s3140_s4 + $0x470] sm:$0xff]  ;;  %v597_v18 = vadd.f32 %v380_v61, %v379_v47  ;;  %v367_v53 = vld [vmem:[%s3140_s4 + $0x480] sm:$0xff]  ;;  %v590_v9 = vadd.f32 %v374_v56, %v373_v29 }
  0x71   : > { %v352_v36 = vld [vmem:[%s3140_s4 + $0x408] sm:$0xff]  ;;  %v381_v4 = vld [vmem:[%s3140_s4 + $0x4f0] sm:$0xff]  ;;  %v359_v38 = vld [vmem:[%s3140_s4 + $0x440] sm:$0xff] }
  0x72   : > { %532 = vadd.xlane.f32.xlu1 %v531_v34  ;;  %525 = vadd.xlane.f32.xlu0 %v524_v20  ;;  %v578_v34 = vadd.f32 %v577_v60, %v364_v52  ;;  %v368_v46 = vld [vmem:[%s3140_s4 + $0x488] sm:$0xff]  ;;  %v571_v20 = vadd.f32 %v570_v55, %v358_v57  ;;  %v564_v45 = vadd.f32 %v563_v62, %v352_v36  ;;  %v375_v24 = vld [vmem:[%s3140_s4 + $0x4c0] sm:$0xff]  ;;  %v366_v60 = vld [vmem:[%s3140_s4 + $0x478] sm:$0xff] }
  0x73   : > { %v545_v11 = vadd.f32 %v544_v41, %v336_v54  ;;  %v353_v47 = vld [vmem:[%s3140_s4 + $0x410] sm:$0xff]  ;;  %v382_v61 = vld [vmem:[%s3140_s4 + $0x4f8] sm:$0xff]  ;;  %v598_v51 = vadd.f32 %v597_v18, %v381_v4  ;;  %v583_v63 = vadd.f32 %v368_v46, %v367_v53  ;;  %v360_v36 = vld [vmem:[%s3140_s4 + $0x448] sm:$0xff]  ;;  %v591_v29 = vadd.f32 %v590_v9, %v375_v24 }
  0x74   : > { %v579_v52 = vadd.f32 %v578_v34, %v365_v33  ;;  %v369_v16 = vld [vmem:[%s3140_s4 + $0x490] sm:$0xff]  ;;  %v398_v57 = vld [vmem:[%s3140_s4 + $0x578] sm:$0xff]  ;;  %v572_v62 = vadd.f32 %v571_v20, %v359_v38  ;;  %v565_v56 = vadd.f32 %v564_v45, %v353_v47  ;;  %v391_v54 = vld [vmem:[%s3140_s4 + $0x540] sm:$0xff] }
  0x75   : > { %v397_v55 = vld [vmem:[%s3140_s4 + $0x570] sm:$0xff]  ;;  %v392_v41 = vld [vmem:[%s3140_s4 + $0x548] sm:$0xff]  ;;  %v354_v34 = vld [vmem:[%s3140_s4 + $0x418] sm:$0xff]  ;;  %v599_v4 = vadd.f32 %v598_v51, %v382_v61  ;;  %v584_v46 = vadd.f32 %v583_v63, %v369_v16 }
  0x76   : > { %560 = vadd.xlane.f32.xlu2 %v559_v26  ;;  %v376_v26 = vld [vmem:[%s3140_s4 + $0x4c8] sm:$0xff]  ;;  %v580_v33 = vadd.f32 %v579_v52, %v366_v60  ;;  %v383_v18 = vld [vmem:[%s3140_s4 + $0x500] sm:$0xff]  ;;  %v370_v53 = vld [vmem:[%s3140_s4 + $0x498] sm:$0xff]  ;;  %v573_v9 = vadd.f32 %v572_v62, %v360_v36  ;;  %v611_v24 = vadd.f32 %v392_v41, %v391_v54 }
  0x77   : > { %v385_v20 = vld [vmem:[%s3140_s4 + $0x510] sm:$0xff]  ;;  %v386_v45 = vld [vmem:[%s3140_s4 + $0x518] sm:$0xff]  ;;  %v592_v38 = vadd.f32 %v591_v29, %v376_v26  ;;  %v384_v51 = vld [vmem:[%s3140_s4 + $0x508] sm:$0xff]  ;;  %v600_v47 = vadd.f32 %v599_v4, %v383_v18  ;;  %v585_v61 = vadd.f32 %v584_v46, %v370_v53 }
  0x78   : > { %v377_v60 = vld [vmem:[%s3140_s4 + $0x4d0] sm:$0xff]  ;;  %v604_v16 = vadd.f32 %v386_v45, %v385_v20  ;;  %v387_v36 = vld [vmem:[%s3140_s4 + $0x520] sm:$0xff]  ;;  %v378_v62 = vld [vmem:[%s3140_s4 + $0x4d8] sm:$0xff] }
  0x79   : > { %v393_v52 = vld [vmem:[%s3140_s4 + $0x550] sm:$0xff]  ;;  %v593_v29 = vadd.f32 %v592_v38, %v377_v60  ;;  %v394_v26 = vld [vmem:[%s3140_s4 + $0x558] sm:$0xff]  ;;  %v388_v46 = vld [vmem:[%s3140_s4 + $0x528] sm:$0xff] }
  0x7a   : > { %553 = vadd.xlane.f32.xlu1 %v552_v28  ;;  %546 = vadd.xlane.f32.xlu0 %v545_v11  ;;  %v618_v28 = vadd.f32 %v398_v57, %v397_v55  ;;  %v566_v11 = vadd.f32 %v565_v56, %v354_v34  ;;  %v371_v55 = vld [vmem:[%s3140_s4 + $0x4a0] sm:$0xff]  ;;  %v400_v57 = vld [vmem:[%s3140_s4 + $0x588] sm:$0xff]  ;;  %v612_v56 = vadd.f32 %v611_v24, %v393_v52  ;;  %v409_v54 = vld [vmem:[%s3140_s4 + $0x5d0] sm:$0xff] }
  0x7b   : > { %v410_v41 = vld [vmem:[%s3140_s4 + $0x5d8] sm:$0xff]  ;;  %v586_v34 = vadd.f32 %v585_v61, %v371_v55  ;;  %v401_v18 = vld [vmem:[%s3140_s4 + $0x590] sm:$0xff]  ;;  %v605_v53 = vadd.f32 %v604_v16, %v387_v36  ;;  %v404_v20 = vld [vmem:[%s3140_s4 + $0x5a8] sm:$0xff]  ;;  %v594_v45 = vadd.f32 %v593_v29, %v378_v62 }
  0x7c   : > { %v619_v63 = vadd.f32 %v618_v28, %v399_v59  ;;  %v372_v59 = vld [vmem:[%s3140_s4 + $0x4a8] sm:$0xff]  ;;  %v403_v28 = vld [vmem:[%s3140_s4 + $0x5a0] sm:$0xff]  ;;  %v632_v38 = vadd.f32 %v410_v41, %v409_v54  ;;  %v402_v61 = vld [vmem:[%s3140_s4 + $0x598] sm:$0xff] }
  0x7d   : > { %v395_v24 = vld [vmem:[%s3140_s4 + $0x560] sm:$0xff]  ;;  %v405_v16 = vld [vmem:[%s3140_s4 + $0x5b0] sm:$0xff]  ;;  %v396_v36 = vld [vmem:[%s3140_s4 + $0x568] sm:$0xff] }
  0x7e   : > { %581 = vadd.xlane.f32.xlu2 %v580_v33  ;;  %v601_v33 = vadd.f32 %v600_v47, %v384_v51  ;;  %v620_v4 = vadd.f32 %v619_v63, %v400_v57  ;;  %v411_v60 = vld [vmem:[%s3140_s4 + $0x5e0] sm:$0xff]  ;;  %v606_v51 = vadd.f32 %v605_v53, %v388_v46  ;;  %v625_v47 = vadd.f32 %v404_v20, %v403_v28  ;;  %v389_v63 = vld [vmem:[%s3140_s4 + $0x530] sm:$0xff]  ;;  %v412_v62 = vld [vmem:[%s3140_s4 + $0x5e8] sm:$0xff] }
  0x7f   : > { %v633_v57 = vadd.f32 %v632_v38, %v411_v60  ;;  %v390_v54 = vld [vmem:[%s3140_s4 + $0x538] sm:$0xff]  ;;  %v407_v53 = vld [vmem:[%s3140_s4 + $0x5c0] sm:$0xff] }
  0x80   : > { %v621_v52 = vadd.f32 %v620_v4, %v401_v18  ;;  %v406_v41 = vld [vmem:[%s3140_s4 + $0x5b8] sm:$0xff] }
  0x81   : > { %v414_v28 = vld [vmem:[%s3140_s4 + $0x5f8] sm:$0xff] }
  0x82   : > { %574 = vadd.xlane.f32.xlu1 %v573_v9  ;;  %567 = vadd.xlane.f32.xlu0 %v566_v11  ;;  %v613_v9 = vadd.f32 %v612_v56, %v394_v26  ;;  %v587_v11 = vadd.f32 %v586_v34, %v372_v59  ;;  %v622_v29 = vadd.f32 %v621_v52, %v402_v61  ;;  %v413_v34 = vld [vmem:[%s3140_s4 + $0x5f0] sm:$0xff] }
  0x83   : > { %v607_v56 = vadd.f32 %v606_v51, %v389_v63  ;;  %v626_v26 = vadd.f32 %v625_v47, %v405_v16  ;;  %v634_v59 = vadd.f32 %v633_v57, %v412_v62 }
  0x84   : > { %v614_v55 = vadd.f32 %v613_v9, %v395_v24  ;;  %v3011_v24 = vmov 768.0  }
  0x85   : > { %v608_v18 = vadd.f32 %v607_v56, %v390_v54  ;;  %v627_v4 = vadd.f32 %v626_v26, %v406_v41  ;;  %v635_v46 = vadd.f32 %v634_v59, %v413_v34  ;;  %2667 = vrcp.f32 %v3011_v24 }
  0x86   : > { %602 = vadd.xlane.f32.xlu2 %v601_v33  ;;  %v615_v33 = vadd.f32 %v614_v55, %v396_v36 }
  0x87   : > { %v628_v20 = vadd.f32 %v627_v4, %v407_v53  ;;  %v636_v9 = vadd.f32 %v635_v46, %v414_v28 }
  0x8a   : > { %595 = vadd.xlane.f32.xlu1 %v594_v45  ;;  %588 = vadd.xlane.f32.xlu0 %v587_v11  ;;  %v408_v45 = vld [vmem:[%s3140_s4 + $0x5c8] sm:$0xff] }
  0x8b   : > { %v629_v38 = vadd.f32 %v628_v20, %v408_v45  ;;  %v2668_v60 = vpop.eup %2667 }
  0x8c   : > { %v640_v11 = vmul.f32 768.0, %v2668_v60  ;;  %vm644_vm0 = vweird.f32 %v2668_v60 }
  0x8e   : > { %623 = vadd.xlane.f32.xlu2 %v622_v29  ;;  %v641_v52 = vsub.f32 1.0, %v640_v11 }
  0x90   : > { %v642_v51 = vmul.f32 %v2668_v60, %v641_v52 }
  0x92   : > { %616 = vadd.xlane.f32.xlu1 %v615_v33  ;;  %609 = vadd.xlane.f32.xlu0 %v608_v18  ;;  %v643_v47 = vadd.f32 %v2668_v60, %v642_v51 }
  0x94   : > { %v3582_v61 = vsel %vm644_vm0, %v2668_v60, %v643_v47 }
  0x9a   : > { %637 = vadd.xlane.f32.xlu1 %v636_v9  ;;  %630 = vadd.xlane.f32.xlu0 %v629_v38 }
  0xb4   : > { %v449_v63 = vpop.xlane.xlu2 %448 }
  0xb5   : > { %v650_v16 = vmul.f32 %v3582_v61, %v449_v63 }
  0xb6   : > { %v435_v55 = vpop.xlane.xlu1 %434 }
  0xb7   : > { %v648_v57 = vmul.f32 %v3582_v61, %v435_v55  ;;  %v421_v36 = vpop.xlane.xlu0 %420  ;;  %v3587_v62 = vsub.f32 %v3151_v0, %v650_v16  ;;  %v3590_v29 = vsub.f32 %v3154_v1, %v650_v16  ;;  %v3593_v56 = vsub.f32 %v3157_v2, %v650_v16 }
  0xb8   : > { %v3596_v26 = vsub.f32 %v3160_v3, %v650_v16  ;;  %v646_v54 = vmul.f32 %v3582_v61, %v421_v36  ;;  %v3618_v59 = vsub.f32 %v3174_v8, %v650_v16  ;;  %v3635_v8 = vsub.f32 %v3192_v15, %v650_v16 }
  0xb9   : > { %6308 = vst [vmem:[#allocation58_spill] sm:$0xff] %v3587_v62  ;;  %v3600_v41 = vsub.f32 %v3165_v5, %v648_v57  ;;  %v3603_v33 = vsub.f32 %v3168_v6, %v648_v57  ;;  %v3606_v0 = vsub.f32 %v3171_v7, %v648_v57  ;;  %v3609_v1 = vsub.f32 %v3178_v10, %v648_v57 }
  0xba   : > { %6309 = vst [vmem:[#allocation59_spill] sm:$0xff] %v3590_v29  ;;  %v3612_v2 = vsub.f32 %v3196_v17, %v648_v57  ;;  %v3615_v3 = vsub.f32 %v3215_v25, %v648_v57  ;;  %v3627_v10 = vsub.f32 %v3183_v12, %v646_v54  ;;  %v3632_v34 = vsub.f32 %v3186_v13, %v646_v54 }
  0xbb   : > { %6310 = vst [vmem:[#allocation60_spill] sm:$0xff] %v3593_v56  ;;  %v882_v5 = vmul.f32 %v3600_v41, %v3600_v41  ;;  %v883_v6 = vmul.f32 %v3603_v33, %v3603_v33  ;;  %v884_v7 = vmul.f32 %v3606_v0, %v3606_v0  ;;  %v885_v25 = vmul.f32 %v3609_v1, %v3609_v1 }
  0xbc   : > { %6311 = vst [vmem:[#allocation61_spill] sm:$0xff] %v3596_v26  ;;  %v456_v17 = vpop.xlane.xlu2 %455  ;;  %v3639_v18 = vmul.f32 %v3587_v62, %v3587_v62  ;;  %v3643_v12 = vsub.f32 %v3189_v14, %v646_v54  ;;  %v3646_v46 = vsub.f32 %v3200_v19, %v646_v54  ;;  %v886_v13 = vmul.f32 %v3612_v2, %v3612_v2 }
  0xbd   : > { %6312 = vst [vmem:[#allocation62_spill] sm:$0xff] %v3618_v59  ;;  %v651_v4 = vmul.f32 %v3582_v61, %v456_v17  ;;  %v1076_v53 = vadd.f32 %v883_v6, %v882_v5  ;;  %v3651_v15 = vsub.f32 %v3219_v27, %v646_v54  ;;  %v870_v20 = vmul.f32 %v3627_v10, %v3627_v10 }
  0xbe   : > { %6313 = vst [vmem:[#allocation63_spill] sm:$0xff] %v3635_v8  ;;  %v442_v28 = vpop.xlane.xlu1 %441  ;;  %v871_v45 = vmul.f32 %v3632_v34, %v3632_v34  ;;  %v887_v14 = vmul.f32 %v3615_v3, %v3615_v3  ;;  %v3661_v38 = vsub.f32 %v3236_v35, %v646_v54  ;;  %v872_v27 = vmul.f32 %v3643_v12, %v3643_v12 }
  0xbf   : > { %v649_v9 = vmul.f32 %v3582_v61, %v442_v28  ;;  %v1077_v19 = vadd.f32 %v1076_v53, %v884_v7  ;;  %v428_v24 = vpop.xlane.xlu0 %427  ;;  %v873_v60 = vmul.f32 %v3646_v46, %v3646_v46  ;;  %v3668_v52 = vsub.f32 %v3205_v21, %v651_v4 }
  0xc0   : > { %v1062_v11 = vadd.f32 %v871_v45, %v870_v20  ;;  %v874_v47 = vmul.f32 %v3651_v15, %v3651_v15  ;;  %v3673_v63 = vsub.f32 %v3208_v22, %v651_v4  ;;  %v3676_v35 = vsub.f32 %v3211_v23, %v651_v4 }
  0xc1   : > { %v1078_v51 = vadd.f32 %v1077_v19, %v885_v25  ;;  %v3679_v55 = vsub.f32 %v3225_v30, %v651_v4  ;;  %v3682_v57 = vsub.f32 %v3240_v37, %v651_v4  ;;  %v3685_v21 = vsub.f32 %v3247_v40, %v651_v4 }
  0xc2   : > { %v1063_v16 = vadd.f32 %v1062_v11, %v872_v27  ;;  %v900_v54 = vmul.f32 %v3668_v52, %v3668_v52  ;;  %v901_v22 = vmul.f32 %v3673_v63, %v3673_v63  ;;  %v902_v23 = vmul.f32 %v3676_v35, %v3676_v35 }
  0xc3   : > { %v1079_v36 = vadd.f32 %v1078_v51, %v886_v13  ;;  %v647_v5 = vmul.f32 %v3582_v61, %v428_v24  ;;  %v875_v37 = vmul.f32 %v3661_v38, %v3661_v38  ;;  %v903_v40 = vmul.f32 %v3679_v55, %v3679_v55 }
  0xc4   : > { %v477_v30 = vpop.xlane.xlu2 %476  ;;  %v1064_v6 = vadd.f32 %v1063_v16, %v873_v60  ;;  %v904_v17 = vmul.f32 %v3682_v57, %v3682_v57  ;;  %v1097_v25 = vadd.f32 %v901_v22, %v900_v54  ;;  %v3701_v4 = vsub.f32 %v3228_v31, %v649_v9 }
  0xc5   : > { %v1080_v7 = vadd.f32 %v1079_v36, %v887_v14  ;;  %v3704_v13 = vsub.f32 %v3231_v32, %v649_v9  ;;  %v3707_v20 = vsub.f32 %v3244_v39, %v649_v9  ;;  %v3710_v45 = vsub.f32 %v3264_v48, %v649_v9 }
  0xc6   : > { %v470_v53 = vpop.xlane.xlu1 %469  ;;  %v1065_v28 = vadd.f32 %v1064_v6, %v874_v47  ;;  %v654_v14 = vmul.f32 %v3582_v61, %v477_v30  ;;  %v905_v19 = vmul.f32 %v3685_v21, %v3685_v21  ;;  %v1098_v24 = vadd.f32 %v1097_v25, %v902_v23  ;;  %v6315_v25 = vld [vmem:[#allocation18_spill] sm:$0xff] }
  0xc7   : > { %1081 = vadd.xlane.f32.xlu1 %v1080_v7  ;;  %v3716_v31 = vsub.f32 %v3267_v49, %v649_v9  ;;  %v888_v32 = vmul.f32 %v3701_v4, %v3701_v4  ;;  %v889_v39 = vmul.f32 %v3704_v13, %v3704_v13  ;;  %v890_v48 = vmul.f32 %v3707_v20, %v3707_v20 }
  0xc8   : > { %v463_v27 = vpop.xlane.xlu0 %462  ;;  %v1066_v60 = vadd.f32 %v1065_v28, %v875_v37  ;;  %v3725_v11 = vmul.f32 %v3582_v61, %v470_v53  ;;  %v1099_v47 = vadd.f32 %v1098_v24, %v903_v40  ;;  %v3731_v49 = vsub.f32 %v3287_v58, %v649_v9  ;;  %v6314_v58 = vld [vmem:[#allocation15_spill] sm:$0xff] }
  0xc9   : > { %v3728_v51 = vmul.f32 %v3582_v61, %v463_v27  ;;  %v891_v16 = vmul.f32 %v3710_v45, %v3710_v45  ;;  %v1083_v36 = vadd.f32 %v889_v39, %v888_v32  ;;  %v3736_v54 = vsub.f32 %v3252_v42, %v647_v5 }
  0xca   : > { %1067 = vadd.xlane.f32.xlu2 %v1066_v60  ;;  %v3739_v22 = vsub.f32 %v3255_v43, %v647_v5  ;;  %v1100_v23 = vadd.f32 %v1099_v47, %v904_v17  ;;  %v3742_v30 = vsub.f32 %v3258_v44, %v647_v5  ;;  %v3745_v37 = vsub.f32 %v3270_v50, %v647_v5  ;;  %v6318_v47 = vld [vmem:[#allocation13_spill] sm:$0xff] }
  0xcb   : > { %v3748_v9 = vsub.f32 %v6314_v58, %v647_v5  ;;  %v892_v40 = vmul.f32 %v3716_v31, %v3716_v31  ;;  %v1084_v7 = vadd.f32 %v1083_v36, %v890_v48  ;;  %v876_v42 = vmul.f32 %v3736_v54, %v3736_v54 }
  0xcc   : > { %v877_v43 = vmul.f32 %v3739_v22, %v3739_v22  ;;  %v1101_v17 = vadd.f32 %v1100_v23, %v905_v19  ;;  %v893_v50 = vmul.f32 %v3731_v49, %v3731_v49  ;;  %v3762_v53 = vsub.f32 %v6315_v25, %v647_v5  ;;  %v6316_v19 = vld [vmem:[#allocation12_spill] sm:$0xff]  ;;  %v6320_v5 = vld [vmem:[#allocation14_spill] sm:$0xff] }
  0xcd   : > { %v498_v6 = vpop.xlane.xlu2 %497  ;;  %v1085_v24 = vadd.f32 %v1084_v7, %v891_v16  ;;  %v878_v27 = vmul.f32 %v3742_v30, %v3742_v30  ;;  %v879_v60 = vmul.f32 %v3745_v37, %v3745_v37  ;;  %v880_v39 = vmul.f32 %v3748_v9, %v3748_v9  ;;  %v6321_v7 = vld [vmem:[#allocation16_spill] sm:$0xff] }
  0xce   : > { %v3757_v44 = vmul.f32 %v3582_v61, %v498_v6  ;;  %v1069_v32 = vadd.f32 %v877_v43, %v876_v42  ;;  %v3771_v48 = vsub.f32 %v6316_v19, %v654_v14  ;;  %v3774_v36 = vsub.f32 %v6318_v47, %v654_v14  ;;  %v6322_v42 = vld [vmem:[#allocation19_spill] sm:$0xff]  ;;  %v6324_v19 = vld [vmem:[#allocation28_spill] sm:$0xff] }
  0xcf   : > { %1102 = vadd.xlane.f32.xlu1 %v1101_v17  ;;  %v3777_v23 = vsub.f32 %v6320_v5, %v654_v14  ;;  %v1086_v58 = vadd.f32 %v1085_v24, %v892_v40  ;;  %v3780_v25 = vsub.f32 %v6321_v7, %v654_v14  ;;  %v3783_v43 = vsub.f32 %v6322_v42, %v654_v14 }
  0xd0   : > { %6317 = vst [vmem:[#allocation15_spill] sm:$0xff] %v3771_v48  ;;  %v1070_v6 = vadd.f32 %v1069_v32, %v878_v27  ;;  %v881_v17 = vmul.f32 %v3762_v53, %v3762_v53  ;;  %v3788_v62 = vsub.f32 %v6324_v19, %v654_v14  ;;  %v918_v47 = vmul.f32 %v3771_v48, %v3771_v48 }
  0xd1   : > { %6319 = vst [vmem:[#allocation18_spill] sm:$0xff] %v3774_v36  ;;  %v919_v5 = vmul.f32 %v3774_v36, %v3774_v36  ;;  %v1087_v24 = vadd.f32 %v1086_v58, %v893_v50  ;;  %v920_v32 = vmul.f32 %v3777_v23, %v3777_v23  ;;  %v921_v14 = vmul.f32 %v3780_v25, %v3780_v25 }
  0xd2   : > { %6323 = vst [vmem:[#allocation12_spill] sm:$0xff] %v3783_v43  ;;  %v1071_v27 = vadd.f32 %v1070_v6, %v879_v60  ;;  %v895_v19 = vmul.f32 %v3590_v29, %v3590_v29  ;;  %v922_v50 = vmul.f32 %v3783_v43, %v3783_v43  ;;  %v896_v60 = vmul.f32 %v3593_v56, %v3593_v56  ;;  %v6328_v29 = vld [vmem:[#allocation22_spill] sm:$0xff] }
  0xd3   : > { %6325 = vst [vmem:[#allocation13_spill] sm:$0xff] %v3788_v62  ;;  %v1118_v42 = vadd.f32 %v919_v5, %v918_v47  ;;  %1088 = vadd.xlane.f32.xlu2 %v1087_v24  ;;  %v897_v58 = vmul.f32 %v3596_v26, %v3596_v26  ;;  %v898_v6 = vmul.f32 %v3618_v59, %v3618_v59  ;;  %v6326_v24 = vld [vmem:[#allocation21_spill] sm:$0xff] }
  0xd4   : > { %v1072_v36 = vadd.f32 %v1071_v27, %v880_v39  ;;  %v1090_v47 = vadd.f32 %v895_v19, %v3639_v18  ;;  %v3819_v27 = vsub.f32 %v6326_v24, %v3728_v51  ;;  %v6332_v18 = vld [vmem:[#allocation25_spill] sm:$0xff]  ;;  %v899_v19 = vmul.f32 %v3635_v8, %v3635_v8 }
  0xd5   : > { %v491_v28 = vpop.xlane.xlu1 %490  ;;  %v484_v16 = vpop.xlane.xlu0 %483 }
  0xd6   : > { %v3795_v40 = vmul.f32 %v3582_v61, %v491_v28  ;;  %v3800_v7 = vmul.f32 %v3582_v61, %v484_v16  ;;  %v923_v28 = vmul.f32 %v3788_v62, %v3788_v62  ;;  %v1119_v16 = vadd.f32 %v1118_v42, %v920_v32  ;;  %6327 = vst [vmem:[#allocation14_spill] sm:$0xff] %v3819_v27  ;;  %v6330_v32 = vld [vmem:[#allocation23_spill] sm:$0xff] }
  0xd7   : > { %v1073_v39 = vadd.f32 %v1072_v36, %v881_v17  ;;  %v3823_v62 = vsub.f32 %v6328_v29, %v3728_v51  ;;  %v3827_v42 = vsub.f32 %v6330_v32, %v3728_v51  ;;  %v1091_v56 = vadd.f32 %v1090_v47, %v896_v60  ;;  %v6334_v29 = vld [vmem:[#allocation29_spill] sm:$0xff] }
  0xd8   : > { %v1120_v59 = vadd.f32 %v1119_v16, %v921_v14  ;;  %v3834_v36 = vsub.f32 %v6332_v18, %v3728_v51  ;;  %v3840_v24 = vsub.f32 %v6334_v29, %v3728_v51  ;;  %v906_v32 = vmul.f32 %v3819_v27, %v3819_v27  ;;  %v6336_v16 = vld [vmem:[#allocation36_spill] sm:$0xff] }
  0xd9   : > { %v519_v48 = vpop.xlane.xlu2 %518  ;;  %6329 = vst [vmem:[#allocation16_spill] sm:$0xff] %v3823_v62  ;;  %1074 = vadd.xlane.f32.xlu0 %v1073_v39  ;;  %v1092_v60 = vadd.f32 %v1091_v56, %v897_v58  ;;  %v3848_v47 = vsub.f32 %v6336_v16, %v3728_v51  ;;  %v908_v39 = vmul.f32 %v3827_v42, %v3827_v42  ;;  %v6338_v56 = vld [vmem:[#allocation26_spill] sm:$0xff]  ;;  %v6340_v51 = vld [vmem:[#allocation27_spill] sm:$0xff] }
  0xda   : > { %6331 = vst [vmem:[#allocation19_spill] sm:$0xff] %v3827_v42  ;;  %v3830_v26 = vmul.f32 %v3582_v61, %v519_v48  ;;  %v907_v48 = vmul.f32 %v3823_v62, %v3823_v62  ;;  %v1121_v14 = vadd.f32 %v1120_v59, %v922_v50  ;;  %v909_v8 = vmul.f32 %v3834_v36, %v3834_v36  ;;  %v6342_v42 = vld [vmem:[#allocation30_spill] sm:$0xff] }
  0xdb   : > { %6333 = vst [vmem:[#allocation28_spill] sm:$0xff] %v3834_v36  ;;  %v1093_v59 = vadd.f32 %v1092_v60, %v898_v6  ;;  %v3862_v50 = vsub.f32 %v6338_v56, %v3757_v44  ;;  %v3866_v58 = vsub.f32 %v6340_v51, %v3757_v44  ;;  %v3872_v43 = vsub.f32 %v6342_v42, %v3757_v44  ;;  %v6348_v60 = vld [vmem:[#allocation42_spill] sm:$0xff] }
  0xdc   : > { %6335 = vst [vmem:[#allocation21_spill] sm:$0xff] %v3840_v24  ;;  %v1104_v27 = vadd.f32 %v907_v48, %v906_v32  ;;  %v1122_v62 = vadd.f32 %v1121_v14, %v923_v28  ;;  %v6344_v28 = vld [vmem:[#allocation32_spill] sm:$0xff]  ;;  %v911_v32 = vmul.f32 %v3848_v47, %v3848_v47  ;;  %v6346_v48 = vld [vmem:[#allocation37_spill] sm:$0xff] }
  0xdd   : > { %v512_v5 = vpop.xlane.xlu1 %511  ;;  %v505_v17 = vpop.xlane.xlu0 %504  ;;  %6337 = vst [vmem:[#allocation22_spill] sm:$0xff] %v3848_v47  ;;  %v3876_v6 = vsub.f32 %v6344_v28, %v3757_v44  ;;  %v3882_v14 = vsub.f32 %v6346_v48, %v3757_v44  ;;  %v936_v42 = vmul.f32 %v3862_v50, %v3862_v50  ;;  %v938_v28 = vmul.f32 %v3872_v43, %v3872_v43 }
  0xde   : > { %v3853_v18 = vmul.f32 %v3582_v61, %v512_v5  ;;  %v3856_v29 = vmul.f32 %v3582_v61, %v505_v17  ;;  %6339 = vst [vmem:[#allocation23_spill] sm:$0xff] %v3862_v50  ;;  %v910_v5 = vmul.f32 %v3840_v24, %v3840_v24  ;;  %v1105_v16 = vadd.f32 %v1104_v27, %v908_v39 }
  0xdf   : > { %6341 = vst [vmem:[#allocation25_spill] sm:$0xff] %v3866_v58  ;;  %1123 = vadd.xlane.f32.xlu1 %v1122_v62  ;;  %v3886_v27 = vsub.f32 %v6348_v60, %v3757_v44  ;;  %v1094_v39 = vadd.f32 %v1093_v59, %v899_v19  ;;  %v937_v62 = vmul.f32 %v3866_v58, %v3866_v58  ;;  %v6350_v60 = vld [vmem:[#allocation17_spill] sm:$0xff] }
  0xe0   : > { %6343 = vst [vmem:[#allocation29_spill] sm:$0xff] %v3872_v43  ;;  %v1106_v56 = vadd.f32 %v1105_v16, %v909_v8  ;;  %v939_v44 = vmul.f32 %v3876_v6, %v3876_v6  ;;  %v3904_v19 = vsub.f32 %v6350_v60, %v3725_v11  ;;  %v2733_v58 = vld [vmem:[%s3140_s4 + $0x158] sm:$0xff]  ;;  %v6354_v60 = vld [vmem:[#allocation20_spill] sm:$0xff] }
  0xe1   : > { %v540_v17 = vpop.xlane.xlu2 %539  ;;  %6345 = vst [vmem:[#allocation36_spill] sm:$0xff] %v3876_v6  ;;  %1095 = vadd.xlane.f32.xlu0 %v1094_v39  ;;  %v1139_v16 = vadd.f32 %v937_v62, %v936_v42  ;;  %v3908_v43 = vsub.f32 %v2733_v58, %v3725_v11  ;;  %v941_v6 = vmul.f32 %v3886_v27, %v3886_v27 }
  0xe2   : > { %6347 = vst [vmem:[#allocation26_spill] sm:$0xff] %v3882_v14  ;;  %v3895_v48 = vmul.f32 %v3582_v61, %v540_v17  ;;  %v1107_v8 = vadd.f32 %v1106_v56, %v910_v5  ;;  %v2734_v17 = vld [vmem:[%s3140_s4 + $0x160] sm:$0xff]  ;;  %v3920_v39 = vsub.f32 %v6354_v60, %v3725_v11  ;;  %v6356_v5 = vld [vmem:[#allocation24_spill] sm:$0xff]  ;;  %v912_v62 = vmul.f32 %v3904_v19, %v3904_v19 }
  0xe3   : > { %6349 = vst [vmem:[#allocation27_spill] sm:$0xff] %v3886_v27  ;;  %v3912_v50 = vsub.f32 %v2734_v17, %v3725_v11  ;;  %v3924_v42 = vsub.f32 %v6356_v5, %v3725_v11  ;;  %v1140_v56 = vadd.f32 %v1139_v16, %v938_v28  ;;  %v913_v17 = vmul.f32 %v3908_v43, %v3908_v43  ;;  %v6360_v16 = vld [vmem:[#allocation33_spill] sm:$0xff] }
  0xe4   : > { %6351 = vst [vmem:[#allocation30_spill] sm:$0xff] %v3904_v19  ;;  %v1108_v58 = vadd.f32 %v1107_v8, %v911_v32  ;;  %v915_v27 = vmul.f32 %v3920_v39, %v3920_v39  ;;  %v3942_v5 = vsub.f32 %v6360_v16, %v3800_v7 }
  0xe5   : > { %v533_v51 = vpop.xlane.xlu1 %532  ;;  %v526_v59 = vpop.xlane.xlu0 %525  ;;  %6352 = vst [vmem:[#allocation32_spill] sm:$0xff] %v3908_v43  ;;  %v914_v60 = vmul.f32 %v3912_v50, %v3912_v50  ;;  %v916_v32 = vmul.f32 %v3924_v42, %v3924_v42  ;;  %v1141_v28 = vadd.f32 %v1140_v56, %v939_v44  ;;  %v1111_v8 = vadd.f32 %v913_v17, %v912_v62  ;;  %v6362_v43 = vld [vmem:[#allocation34_spill] sm:$0xff] }
  0xe6   : > { %v3898_v47 = vmul.f32 %v3582_v61, %v533_v51  ;;  %6353 = vst [vmem:[#allocation37_spill] sm:$0xff] %v3912_v50  ;;  %v940_v51 = vmul.f32 %v3882_v14, %v3882_v14  ;;  %v6358_v14 = vld [vmem:[#allocation31_spill] sm:$0xff]  ;;  %1109 = vadd.xlane.f32.xlu2 %v1108_v58  ;;  %v6370_v56 = vld [vmem:[#allocation46_spill] sm:$0xff] }
  0xe7   : > { %6355 = vst [vmem:[#allocation42_spill] sm:$0xff] %v3920_v39  ;;  %v3932_v24 = vsub.f32 %v6358_v14, %v3725_v11  ;;  %v3946_v11 = vsub.f32 %v6362_v43, %v3800_v7  ;;  %v6364_v14 = vld [vmem:[#allocation35_spill] sm:$0xff]  ;;  %v6366_v39 = vld [vmem:[#allocation38_spill] sm:$0xff]  ;;  %v3962_v62 = vsub.f32 %v6370_v56, %v3800_v7  ;;  %v1112_v16 = vadd.f32 %v1111_v8, %v914_v60 }
  0xe8   : > { %6357 = vst [vmem:[#allocation17_spill] sm:$0xff] %v3924_v42  ;;  %v3950_v50 = vsub.f32 %v6364_v14, %v3800_v7  ;;  %v3954_v19 = vsub.f32 %v6366_v39, %v3800_v7  ;;  %v6368_v58 = vld [vmem:[#allocation43_spill] sm:$0xff]  ;;  %v1142_v17 = vadd.f32 %v1141_v28, %v940_v51  ;;  %v924_v43 = vmul.f32 %v3942_v5, %v3942_v5 }
  0xe9   : > { %6359 = vst [vmem:[#allocation20_spill] sm:$0xff] %v3932_v24  ;;  %v3958_v44 = vsub.f32 %v6368_v58, %v3800_v7  ;;  %v925_v14 = vmul.f32 %v3946_v11, %v3946_v11  ;;  %v561_v42 = vpop.xlane.xlu2 %560  ;;  %v3969_v39 = vmul.f32 %v3582_v61, %v526_v59  ;;  %v917_v58 = vmul.f32 %v3932_v24, %v3932_v24  ;;  %v6372_v24 = vld [vmem:[#allocation39_spill] sm:$0xff] }
  0xea   : > { %6361 = vst [vmem:[#allocation24_spill] sm:$0xff] %v3942_v5  ;;  %v926_v36 = vmul.f32 %v3950_v50, %v3950_v50  ;;  %v927_v7 = vmul.f32 %v3954_v19, %v3954_v19  ;;  %v1143_v51 = vadd.f32 %v1142_v17, %v941_v6  ;;  %v1113_v60 = vadd.f32 %v1112_v16, %v915_v27  ;;  %v6376_v16 = vld [vmem:[#allocation41_spill] sm:$0xff] }
  0xeb   : > { %6363 = vst [vmem:[#allocation31_spill] sm:$0xff] %v3946_v11  ;;  %v928_v28 = vmul.f32 %v3958_v44, %v3958_v44  ;;  %v1125_v8 = vadd.f32 %v925_v14, %v924_v43  ;;  %v929_v56 = vmul.f32 %v3962_v62, %v3962_v62  ;;  %v3982_v59 = vmul.f32 %v3582_v61, %v561_v42  ;;  %v6378_v42 = vld [vmem:[#allocation44_spill] sm:$0xff] }
  0xec   : > { %6365 = vst [vmem:[#allocation33_spill] sm:$0xff] %v3950_v50  ;;  %v3986_v5 = vsub.f32 %v6372_v24, %v3830_v26  ;;  %v6374_v50 = vld [vmem:[#allocation40_spill] sm:$0xff]  ;;  %1144 = vadd.xlane.f32.xlu1 %v1143_v51  ;;  %v1114_v6 = vadd.f32 %v1113_v60, %v916_v32  ;;  %v3994_v43 = vsub.f32 %v6376_v16, %v3830_v26  ;;  %v6380_v24 = vld [vmem:[#allocation47_spill] sm:$0xff] }
  0xed   : > { %6367 = vst [vmem:[#allocation34_spill] sm:$0xff] %v3954_v19  ;;  %v554_v11 = vpop.xlane.xlu1 %553  ;;  %v3990_v19 = vsub.f32 %v6374_v50, %v3830_v26  ;;  %v1126_v27 = vadd.f32 %v1125_v8, %v926_v36  ;;  %v547_v17 = vpop.xlane.xlu0 %546  ;;  %v3998_v14 = vsub.f32 %v6378_v42, %v3830_v26  ;;  %v6382_v50 = vld [vmem:[#allocation49_spill] sm:$0xff] }
  0xee   : > { %6369 = vst [vmem:[#allocation35_spill] sm:$0xff] %v3958_v44  ;;  %v4006_v51 = vsub.f32 %v6382_v50, %v3830_v26  ;;  %v954_v36 = vmul.f32 %v3986_v5, %v3986_v5  ;;  %v1115_v60 = vadd.f32 %v1114_v6, %v917_v58  ;;  %v4013_v16 = vmul.f32 %v3582_v61, %v554_v11  ;;  %v2737_v6 = vld [vmem:[%s3140_s4 + $0x1f0] sm:$0xff]  ;;  %v2753_v44 = vld [vmem:[%s3140_s4 + $0x2d8] sm:$0xff] }
  0xef   : > { %6371 = vst [vmem:[#allocation38_spill] sm:$0xff] %v3962_v62  ;;  %v4002_v62 = vsub.f32 %v6380_v24, %v3830_v26  ;;  %v955_v32 = vmul.f32 %v3990_v19, %v3990_v19  ;;  %v1127_v8 = vadd.f32 %v1126_v27, %v927_v7  ;;  %v956_v42 = vmul.f32 %v3994_v43, %v3994_v43  ;;  %v2736_v7 = vld [vmem:[%s3140_s4 + $0x1e8] sm:$0xff] }
  0xf0   : > { %6373 = vst [vmem:[#allocation43_spill] sm:$0xff] %v3986_v5  ;;  %v4018_v24 = vmul.f32 %v3582_v61, %v547_v17  ;;  %v957_v26 = vmul.f32 %v3998_v14, %v3998_v14  ;;  %v2735_v5 = vld [vmem:[%s3140_s4 + $0x1e0] sm:$0xff]  ;;  %1116 = vadd.xlane.f32.xlu0 %v1115_v60  ;;  %v4028_v11 = vsub.f32 %v2736_v7, %v3795_v40  ;;  %v2738_v17 = vld [vmem:[%s3140_s4 + $0x1f8] sm:$0xff] }
  0xf1   : > { %6375 = vst [vmem:[#allocation46_spill] sm:$0xff] %v3990_v19  ;;  %v1160_v50 = vadd.f32 %v955_v32, %v954_v36  ;;  %v4024_v19 = vsub.f32 %v2735_v5, %v3795_v40  ;;  %v1128_v58 = vadd.f32 %v1127_v8, %v928_v28  ;;  %v4032_v27 = vsub.f32 %v2737_v6, %v3795_v40  ;;  %v2739_v8 = vld [vmem:[%s3140_s4 + $0x200] sm:$0xff] }
  0xf2   : > { %6377 = vst [vmem:[#allocation39_spill] sm:$0xff] %v3994_v43  ;;  %v958_v36 = vmul.f32 %v4002_v62, %v4002_v62  ;;  %v959_v5 = vmul.f32 %v4006_v51, %v4006_v51  ;;  %v4046_v7 = vsub.f32 %v2739_v8, %v3795_v40  ;;  %v931_v6 = vmul.f32 %v4028_v11, %v4028_v11  ;;  %v6389_v43 = vld [vmem:[#allocation45_spill] sm:$0xff]  ;;  %v2741_v8 = vld [vmem:[%s3140_s4 + $0x248] sm:$0xff] }
  0xf3   : > { %6379 = vst [vmem:[#allocation40_spill] sm:$0xff] %v3998_v14  ;;  %v4036_v14 = vsub.f32 %v2738_v17, %v3795_v40  ;;  %v1161_v28 = vadd.f32 %v1160_v50, %v956_v42  ;;  %v930_v32 = vmul.f32 %v4024_v19, %v4024_v19  ;;  %v1129_v60 = vadd.f32 %v1128_v58, %v929_v56  ;;  %v2740_v50 = vld [vmem:[%s3140_s4 + $0x240] sm:$0xff] }
  0xf4   : > { %6381 = vst [vmem:[#allocation41_spill] sm:$0xff] %v4002_v62  ;;  %v932_v17 = vmul.f32 %v4032_v27, %v4032_v27  ;;  %v4060_v56 = vsub.f32 %v2740_v50, %v3856_v29  ;;  %v582_v50 = vpop.xlane.xlu2 %581 }
  0xf5   : > { %6383 = vst [vmem:[#allocation44_spill] sm:$0xff] %v4006_v51  ;;  %v1162_v62 = vadd.f32 %v1161_v28, %v957_v26  ;;  %v4054_v51 = vsub.f32 %v6389_v43, %v3795_v40  ;;  %v933_v42 = vmul.f32 %v4036_v14, %v4036_v14  ;;  %1130 = vadd.xlane.f32.xlu2 %v1129_v60  ;;  %v6394_v40 = vld [vmem:[#allocation48_spill] sm:$0xff] }
  0xf6   : > { %6384 = vst [vmem:[#allocation47_spill] sm:$0xff] %v4024_v19  ;;  %v1132_v58 = vadd.f32 %v931_v6, %v930_v32  ;;  %v2742_v19 = vld [vmem:[%s3140_s4 + $0x250] sm:$0xff]  ;;  %v4072_v43 = vsub.f32 %v6394_v40, %v3856_v29  ;;  %v942_v6 = vmul.f32 %v4060_v56, %v4060_v56 }
  0xf7   : > { %6385 = vst [vmem:[#allocation49_spill] sm:$0xff] %v4028_v11  ;;  %v4064_v11 = vsub.f32 %v2741_v8, %v3856_v29  ;;  %v4068_v26 = vsub.f32 %v2742_v19, %v3856_v29  ;;  %v1163_v28 = vadd.f32 %v1162_v62, %v958_v36  ;;  %v6398_v60 = vld [vmem:[#allocation52_spill] sm:$0xff]  ;;  %v934_v19 = vmul.f32 %v4046_v7, %v4046_v7 }
  0xf8   : > { %6386 = vst [vmem:[#allocation64_spill] sm:$0xff] %v4032_v27  ;;  %v4080_v32 = vsub.f32 %v6398_v60, %v3856_v29  ;;  %v1133_v8 = vadd.f32 %v1132_v58, %v932_v17  ;;  %v945_v40 = vmul.f32 %v4072_v43, %v4072_v43 }
  0xf9   : > { %6387 = vst [vmem:[#allocation65_spill] sm:$0xff] %v4036_v14  ;;  %v6396_v14 = vld [vmem:[#allocation50_spill] sm:$0xff]  ;;  %v943_v62 = vmul.f32 %v4064_v11, %v4064_v11  ;;  %v1164_v36 = vadd.f32 %v1163_v28, %v959_v5  ;;  %v2743_v5 = vld [vmem:[%s3140_s4 + $0x330] sm:$0xff] }
  0xfa   : > { %6388 = vst [vmem:[#allocation66_spill] sm:$0xff] %v4046_v7  ;;  %v4076_v27 = vsub.f32 %v6396_v14, %v3856_v29  ;;  %v944_v14 = vmul.f32 %v4068_v26, %v4068_v26  ;;  %v935_v29 = vmul.f32 %v4054_v51, %v4054_v51  ;;  %v1134_v7 = vadd.f32 %v1133_v8, %v933_v42  ;;  %v6403_v8 = vld [vmem:[#allocation51_spill] sm:$0xff] }
  0xfb   : > { %6390 = vst [vmem:[#allocation45_spill] sm:$0xff] %v4054_v51  ;;  %v947_v17 = vmul.f32 %v4080_v32, %v4080_v32  ;;  %v1146_v58 = vadd.f32 %v943_v62, %v942_v6  ;;  %1165 = vadd.xlane.f32.xlu1 %v1164_v36  ;;  %v4103_v28 = vsub.f32 %v2743_v5, %v3895_v48  ;;  %v2744_v51 = vld [vmem:[%s3140_s4 + $0x338] sm:$0xff] }
  0xfc   : > { %6391 = vst [vmem:[#allocation67_spill] sm:$0xff] %v4060_v56  ;;  %v946_v60 = vmul.f32 %v4076_v27, %v4076_v27  ;;  %v575_v56 = vpop.xlane.xlu1 %574  ;;  %v4115_v6 = vsub.f32 %v6403_v8, %v3895_v48  ;;  %v6405_v36 = vld [vmem:[#allocation53_spill] sm:$0xff] }
  0xfd   : > { %6392 = vst [vmem:[#allocation68_spill] sm:$0xff] %v4064_v11  ;;  %v4099_v11 = vmul.f32 %v3582_v61, %v582_v50  ;;  %v1135_v50 = vadd.f32 %v1134_v7, %v934_v19  ;;  %v1147_v62 = vadd.f32 %v1146_v58, %v944_v14  ;;  %v4119_v5 = vsub.f32 %v6405_v36, %v3895_v48  ;;  %v2746_v36 = vld [vmem:[%s3140_s4 + $0x270] sm:$0xff] }
  0xfe   : > { %6393 = vst [vmem:[#allocation69_spill] sm:$0xff] %v4068_v26  ;;  %v2745_v26 = vld [vmem:[%s3140_s4 + $0x340] sm:$0xff] }
  0xff   : > { %6395 = vst [vmem:[#allocation48_spill] sm:$0xff] %v4072_v43  ;;  %v4107_v43 = vsub.f32 %v2744_v51, %v3895_v48  ;;  %v4111_v42 = vsub.f32 %v2745_v26, %v3895_v48  ;;  %v4126_v26 = vmul.f32 %v3582_v61, %v575_v56  ;;  %v1136_v14 = vadd.f32 %v1135_v50, %v935_v29  ;;  %v2748_v29 = vld [vmem:[%s3140_s4 + $0x280] sm:$0xff] }
 0x100   : > { %6397 = vst [vmem:[#allocation50_spill] sm:$0xff] %v4076_v27  ;;  %v972_v27 = vmul.f32 %v4103_v28, %v4103_v28  ;;  %v1148_v58 = vadd.f32 %v1147_v62, %v945_v40  ;;  %v976_v56 = vmul.f32 %v4119_v5, %v4119_v5  ;;  %v4148_v40 = vsub.f32 %v2748_v29, %v3853_v18 }
 0x101   : > { %6399 = vst [vmem:[#allocation52_spill] sm:$0xff] %v4080_v32  ;;  %v6407_v32 = vld [vmem:[#allocation54_spill] sm:$0xff]  ;;  %v973_v7 = vmul.f32 %v4107_v43, %v4107_v43  ;;  %v974_v19 = vmul.f32 %v4111_v42, %v4111_v42  ;;  %1137 = vadd.xlane.f32.xlu0 %v1136_v14 }
 0x102   : > { %6400 = vst [vmem:[#allocation70_spill] sm:$0xff] %v4103_v28  ;;  %v4123_v51 = vsub.f32 %v6407_v32, %v3895_v48  ;;  %v975_v48 = vmul.f32 %v4115_v6, %v4115_v6  ;;  %v568_v32 = vpop.xlane.xlu0 %567  ;;  %v4140_v28 = vsub.f32 %v2746_v36, %v3853_v18  ;;  %v1149_v50 = vadd.f32 %v1148_v58, %v946_v60  ;;  %v2750_v36 = vld [vmem:[%s3140_s4 + $0x290] sm:$0xff] }
 0x103   : > { %6401 = vst [vmem:[#allocation71_spill] sm:$0xff] %v4107_v43  ;;  %v1181_v8 = vadd.f32 %v973_v7, %v972_v27  ;;  %v2747_v43 = vld [vmem:[%s3140_s4 + $0x278] sm:$0xff]  ;;  %v2749_v27 = vld [vmem:[%s3140_s4 + $0x288] sm:$0xff]  ;;  %v950_v14 = vmul.f32 %v4148_v40, %v4148_v40 }
 0x104   : > { %6402 = vst [vmem:[#allocation72_spill] sm:$0xff] %v4111_v42  ;;  %v4144_v42 = vsub.f32 %v2747_v43, %v3853_v18  ;;  %v977_v62 = vmul.f32 %v4123_v51, %v4123_v51  ;;  %v4154_v7 = vsub.f32 %v2749_v27, %v3853_v18  ;;  %v948_v29 = vmul.f32 %v4140_v28, %v4140_v28  ;;  %v2751_v27 = vld [vmem:[%s3140_s4 + $0x298] sm:$0xff] }
 0x105   : > { %6404 = vst [vmem:[#allocation51_spill] sm:$0xff] %v4115_v6  ;;  %v1182_v43 = vadd.f32 %v1181_v8, %v974_v19  ;;  %v1150_v58 = vadd.f32 %v1149_v50, %v947_v17  ;;  %v2752_v6 = vld [vmem:[%s3140_s4 + $0x2d0] sm:$0xff]  ;;  %v2754_v17 = vld [vmem:[%s3140_s4 + $0x2e0] sm:$0xff]  ;;  %v2755_v50 = vld [vmem:[%s3140_s4 + $0x2e8] sm:$0xff] }
 0x106   : > { %6406 = vst [vmem:[#allocation53_spill] sm:$0xff] %v4119_v5  ;;  %v4158_v5 = vsub.f32 %v2750_v36, %v3853_v18  ;;  %v949_v60 = vmul.f32 %v4144_v42, %v4144_v42  ;;  %v951_v36 = vmul.f32 %v4154_v7, %v4154_v7 }
 0x107   : > { %6408 = vst [vmem:[#allocation54_spill] sm:$0xff] %v4123_v51  ;;  %v4168_v51 = vsub.f32 %v2751_v27, %v3853_v18  ;;  %v1183_v8 = vadd.f32 %v1182_v43, %v975_v48  ;;  %1151 = vadd.xlane.f32.xlu2 %v1150_v58  ;;  %v4184_v18 = vsub.f32 %v2754_v17, %v3969_v39  ;;  %v6419_v48 = vld [vmem:[#allocation55_spill] sm:$0xff] }
 0x108   : > { %6409 = vst [vmem:[#allocation73_spill] sm:$0xff] %v4140_v28  ;;  %v952_v19 = vmul.f32 %v4158_v5, %v4158_v5  ;;  %v1153_v28 = vadd.f32 %v949_v60, %v948_v29  ;;  %v4188_v27 = vsub.f32 %v2755_v50, %v3969_v39  ;;  %v4192_v43 = vsub.f32 %v6419_v48, %v3969_v39  ;;  %v603_v50 = vpop.xlane.xlu2 %602 }
 0x109   : > { %6410 = vst [vmem:[#allocation74_spill] sm:$0xff] %v4144_v42  ;;  %v4176_v42 = vsub.f32 %v2752_v6, %v3969_v39  ;;  %v6421_v6 = vld [vmem:[#allocation56_spill] sm:$0xff]  ;;  %v1184_v60 = vadd.f32 %v1183_v8, %v976_v56  ;;  %v953_v48 = vmul.f32 %v4168_v51, %v4168_v51 }
 0x10a   : > { %6411 = vst [vmem:[#allocation75_spill] sm:$0xff] %v4148_v40  ;;  %v4180_v40 = vsub.f32 %v2753_v44, %v3969_v39  ;;  %v4196_v29 = vsub.f32 %v6421_v6, %v3969_v39  ;;  %v1154_v44 = vadd.f32 %v1153_v28, %v950_v14  ;;  %v962_v39 = vmul.f32 %v4184_v18, %v4184_v18 }
 0x10b   : > { %6412 = vst [vmem:[#allocation76_spill] sm:$0xff] %v4154_v7  ;;  %v960_v58 = vmul.f32 %v4176_v42, %v4176_v42  ;;  %v963_v28 = vmul.f32 %v4188_v27, %v4188_v27  ;;  %v1185_v56 = vadd.f32 %v1184_v60, %v977_v62  ;;  %v964_v8 = vmul.f32 %v4192_v43, %v4192_v43  ;;  %v596_v7 = vpop.xlane.xlu1 %595 }
 0x10c   : > { %6413 = vst [vmem:[#allocation77_spill] sm:$0xff] %v4158_v5  ;;  %v961_v17 = vmul.f32 %v4180_v40, %v4180_v40  ;;  %v4203_v5 = vmul.f32 %v3582_v61, %v568_v32  ;;  %v1155_v14 = vadd.f32 %v1154_v44, %v951_v36  ;;  %v965_v32 = vmul.f32 %v4196_v29, %v4196_v29  ;;  %v589_v44 = vpop.xlane.xlu0 %588 }
 0x10d   : > { %6414 = vst [vmem:[#allocation78_spill] sm:$0xff] %v4168_v51  ;;  %v4216_v51 = vmul.f32 %v3582_v61, %v603_v50  ;;  %1186 = vadd.xlane.f32.xlu1 %v1185_v56  ;;  %v2759_v50 = vld [vmem:[%s3140_s4 + $0x3d8] sm:$0xff] }
 0x10e   : > { %6415 = vst [vmem:[#allocation79_spill] sm:$0xff] %v4176_v42  ;;  %v1167_v6 = vadd.f32 %v961_v17, %v960_v58  ;;  %v1156_v36 = vadd.f32 %v1155_v14, %v952_v19  ;;  %v2758_v58 = vld [vmem:[%s3140_s4 + $0x3d0] sm:$0xff] }
 0x10f   : > { %6416 = vst [vmem:[#allocation80_spill] sm:$0xff] %v4180_v40  ;;  %v4228_v17 = vsub.f32 %v2758_v58, %v3982_v59  ;;  %v4247_v58 = vmul.f32 %v3582_v61, %v596_v7 }
 0x110   : > { %6417 = vst [vmem:[#allocation81_spill] sm:$0xff] %v4184_v18  ;;  %v2756_v18 = vld [vmem:[%s3140_s4 + $0x3c0] sm:$0xff]  ;;  %v1168_v60 = vadd.f32 %v1167_v6, %v962_v39  ;;  %v1157_v14 = vadd.f32 %v1156_v36, %v953_v48  ;;  %v2763_v36 = vld [vmem:[%s3140_s4 + $0x310] sm:$0xff] }
 0x111   : > { %6418 = vst [vmem:[#allocation82_spill] sm:$0xff] %v4188_v27  ;;  %v4220_v40 = vsub.f32 %v2756_v18, %v3982_v59  ;;  %v2757_v27 = vld [vmem:[%s3140_s4 + $0x3c8] sm:$0xff] }
 0x112   : > { %6420 = vst [vmem:[#allocation55_spill] sm:$0xff] %v4192_v43  ;;  %v4224_v62 = vsub.f32 %v2757_v27, %v3982_v59  ;;  %v2760_v43 = vld [vmem:[%s3140_s4 + $0x3e0] sm:$0xff]  ;;  %v6428_v27 = vld [vmem:[#allocation57_spill] sm:$0xff]  ;;  %v1169_v6 = vadd.f32 %v1168_v60, %v963_v28  ;;  %1158 = vadd.xlane.f32.xlu0 %v1157_v14  ;;  %v2762_v28 = vld [vmem:[%s3140_s4 + $0x308] sm:$0xff]  ;;  %v4266_v60 = vsub.f32 %v2763_v36, %v3898_v47 }
 0x113   : > { %6422 = vst [vmem:[#allocation56_spill] sm:$0xff] %v4196_v29  ;;  %v4232_v29 = vsub.f32 %v2759_v50, %v3982_v59  ;;  %v4236_v18 = vsub.f32 %v2760_v43, %v3982_v59  ;;  %v4240_v56 = vsub.f32 %v6428_v27, %v3982_v59  ;;  %v990_v19 = vmul.f32 %v4220_v40, %v4220_v40 }
 0x114   : > { %6423 = vst [vmem:[#allocation83_spill] sm:$0xff] %v4220_v40  ;;  %v991_v39 = vmul.f32 %v4224_v62, %v4224_v62  ;;  %v992_v43 = vmul.f32 %v4228_v17, %v4228_v17  ;;  %v4252_v50 = vmul.f32 %v3582_v61, %v589_v44  ;;  %v2761_v40 = vld [vmem:[%s3140_s4 + $0x300] sm:$0xff]  ;;  %v1170_v48 = vadd.f32 %v1169_v6, %v964_v8  ;;  %v2764_v44 = vld [vmem:[%s3140_s4 + $0x318] sm:$0xff] }
 0x115   : > { %6424 = vst [vmem:[#allocation84_spill] sm:$0xff] %v4224_v62  ;;  %v993_v59 = vmul.f32 %v4232_v29, %v4232_v29  ;;  %v4258_v62 = vsub.f32 %v2761_v40, %v3898_v47  ;;  %v4262_v7 = vsub.f32 %v2762_v28, %v3898_v47  ;;  %v994_v40 = vmul.f32 %v4236_v18, %v4236_v18  ;;  %v2765_v28 = vld [vmem:[%s3140_s4 + $0x320] sm:$0xff] }
 0x116   : > { %6425 = vst [vmem:[#allocation85_spill] sm:$0xff] %v4228_v17  ;;  %v1202_v27 = vadd.f32 %v991_v39, %v990_v19  ;;  %v4270_v19 = vsub.f32 %v2764_v44, %v3898_v47  ;;  %v995_v8 = vmul.f32 %v4240_v56, %v4240_v56  ;;  %v1171_v6 = vadd.f32 %v1170_v48, %v965_v32 }
 0x117   : > { %6426 = vst [vmem:[#allocation86_spill] sm:$0xff] %v4232_v29  ;;  %v966_v14 = vmul.f32 %v4258_v62, %v4258_v62  ;;  %v4280_v36 = vsub.f32 %v2765_v28, %v3898_v47  ;;  %v967_v44 = vmul.f32 %v4262_v7, %v4262_v7  ;;  %v2766_v29 = vld [vmem:[%s3140_s4 + $0x328] sm:$0xff] }
 0x118   : > { %6427 = vst [vmem:[#allocation87_spill] sm:$0xff] %v4236_v18  ;;  %v1203_v39 = vadd.f32 %v1202_v27, %v992_v43  ;;  %v968_v18 = vmul.f32 %v4266_v60, %v4266_v60  ;;  %v4288_v43 = vsub.f32 %v2766_v29, %v3898_v47  ;;  %v969_v32 = vmul.f32 %v4270_v19, %v4270_v19  ;;  %v2767_v27 = vld [vmem:[%s3140_s4 + $0x360] sm:$0xff] }
 0x119   : > { %6429 = vst [vmem:[#allocation57_spill] sm:$0xff] %v4240_v56  ;;  %v4294_v48 = vsub.f32 %v2767_v27, %v4018_v24  ;;  %1172 = vadd.xlane.f32.xlu2 %v1171_v6  ;;  %v1174_v28 = vadd.f32 %v967_v44, %v966_v14  ;;  %v2772_v27 = vld [vmem:[%s3140_s4 + $0x388] sm:$0xff]  ;;  %v624_v6 = vpop.xlane.xlu2 %623 }
 0x11a   : > { %6430 = vst [vmem:[#allocation88_spill] sm:$0xff] %v4258_v62  ;;  %v1204_v56 = vadd.f32 %v1203_v39, %v993_v59  ;;  %v2770_v39 = vld [vmem:[%s3140_s4 + $0x378] sm:$0xff]  ;;  %v4314_v14 = vsub.f32 %v2772_v27, %v4018_v24 }
 0x11b   : > { %6431 = vst [vmem:[#allocation89_spill] sm:$0xff] %v4262_v7  ;;  %v2768_v7 = vld [vmem:[%s3140_s4 + $0x368] sm:$0xff]  ;;  %v4306_v47 = vsub.f32 %v2770_v39, %v4018_v24  ;;  %v1175_v44 = vadd.f32 %v1174_v28, %v968_v18 }
 0x11c   : > { %6432 = vst [vmem:[#allocation90_spill] sm:$0xff] %v4266_v60  ;;  %v4298_v62 = vsub.f32 %v2768_v7, %v4018_v24  ;;  %v2769_v60 = vld [vmem:[%s3140_s4 + $0x370] sm:$0xff]  ;;  %v1205_v29 = vadd.f32 %v1204_v56, %v994_v40  ;;  %v978_v7 = vmul.f32 %v4294_v48, %v4294_v48  ;;  %v983_v18 = vmul.f32 %v4314_v14, %v4314_v14 }
 0x11d   : > { %6433 = vst [vmem:[#allocation91_spill] sm:$0xff] %v4270_v19  ;;  %v4302_v59 = vsub.f32 %v2769_v60, %v4018_v24  ;;  %v2771_v19 = vld [vmem:[%s3140_s4 + $0x380] sm:$0xff]  ;;  %v970_v60 = vmul.f32 %v4280_v36, %v4280_v36  ;;  %v981_v39 = vmul.f32 %v4306_v47, %v4306_v47 }
 0x11e   : > { %6434 = vst [vmem:[#allocation92_spill] sm:$0xff] %v4280_v36  ;;  %v4310_v17 = vsub.f32 %v2771_v19, %v4018_v24  ;;  %v979_v56 = vmul.f32 %v4298_v62, %v4298_v62  ;;  %v1206_v40 = vadd.f32 %v1205_v29, %v995_v8  ;;  %v971_v24 = vmul.f32 %v4288_v43, %v4288_v43  ;;  %v617_v8 = vpop.xlane.xlu1 %616  ;;  %v2773_v29 = vld [vmem:[%s3140_s4 + $0x450] sm:$0xff] }
 0x11f   : > { %6435 = vst [vmem:[#allocation93_spill] sm:$0xff] %v4288_v43  ;;  %v980_v19 = vmul.f32 %v4302_v59, %v4302_v59  ;;  %v1176_v36 = vadd.f32 %v1175_v44, %v969_v32  ;;  %v4337_v43 = vsub.f32 %v2773_v29, %v4099_v11  ;;  %v2775_v32 = vld [vmem:[%s3140_s4 + $0x460] sm:$0xff] }
 0x120   : > { %6436 = vst [vmem:[#allocation94_spill] sm:$0xff] %v4294_v48  ;;  %v982_v27 = vmul.f32 %v4310_v17, %v4310_v17  ;;  %v1188_v28 = vadd.f32 %v979_v56, %v978_v7  ;;  %1207 = vadd.xlane.f32.xlu1 %v1206_v40  ;;  %v4345_v44 = vsub.f32 %v2775_v32, %v4099_v11  ;;  %v2777_v40 = vld [vmem:[%s3140_s4 + $0x470] sm:$0xff] }
 0x121   : > { %6437 = vst [vmem:[#allocation95_spill] sm:$0xff] %v4298_v62  ;;  %v4353_v29 = vsub.f32 %v2777_v40, %v4099_v11  ;;  %v4360_v32 = vmul.f32 %v3582_v61, %v617_v8  ;;  %v610_v40 = vpop.xlane.xlu0 %609  ;;  %v2779_v48 = vld [vmem:[%s3140_s4 + $0x390] sm:$0xff] }
 0x122   : > { %6438 = vst [vmem:[#allocation96_spill] sm:$0xff] %v4302_v59  ;;  %v4333_v59 = vmul.f32 %v3582_v61, %v624_v6  ;;  %v1177_v6 = vadd.f32 %v1176_v36, %v970_v60  ;;  %v1189_v56 = vadd.f32 %v1188_v28, %v980_v19  ;;  %v1010_v60 = vmul.f32 %v4345_v44, %v4345_v44 }
 0x123   : > { %6439 = vst [vmem:[#allocation97_spill] sm:$0xff] %v4306_v47  ;;  %v2774_v47 = vld [vmem:[%s3140_s4 + $0x458] sm:$0xff] }
 0x124   : > { %6440 = vst [vmem:[#allocation98_spill] sm:$0xff] %v4310_v17  ;;  %v4341_v62 = vsub.f32 %v2774_v47, %v4099_v11  ;;  %v2778_v17 = vld [vmem:[%s3140_s4 + $0x478] sm:$0xff]  ;;  %v1178_v19 = vadd.f32 %v1177_v6, %v971_v24  ;;  %v1190_v28 = vadd.f32 %v1189_v56, %v981_v39  ;;  %v2781_v24 = vld [vmem:[%s3140_s4 + $0x3a0] sm:$0xff] }
 0x125   : > { %6441 = vst [vmem:[#allocation99_spill] sm:$0xff] %v4314_v14  ;;  %v2776_v14 = vld [vmem:[%s3140_s4 + $0x468] sm:$0xff]  ;;  %v4357_v47 = vsub.f32 %v2778_v17, %v4099_v11  ;;  %v1012_v17 = vmul.f32 %v4353_v29, %v4353_v29  ;;  %v4382_v39 = vsub.f32 %v2781_v24, %v4013_v16 }
 0x126   : > { %6442 = vst [vmem:[#allocation100_spill] sm:$0xff] %v4337_v43  ;;  %v4349_v7 = vsub.f32 %v2776_v14, %v4099_v11  ;;  %v1008_v14 = vmul.f32 %v4337_v43, %v4337_v43  ;;  %v1009_v36 = vmul.f32 %v4341_v62, %v4341_v62  ;;  %v4374_v43 = vsub.f32 %v2779_v48, %v4013_v16  ;;  %v2783_v48 = vld [vmem:[%s3140_s4 + $0x3b0] sm:$0xff] }
 0x127   : > { %6443 = vst [vmem:[#allocation101_spill] sm:$0xff] %v4341_v62  ;;  %v2780_v62 = vld [vmem:[%s3140_s4 + $0x398] sm:$0xff]  ;;  %1179 = vadd.xlane.f32.xlu0 %v1178_v19  ;;  %v1191_v6 = vadd.f32 %v1190_v28, %v982_v27  ;;  %v1013_v56 = vmul.f32 %v4357_v47, %v4357_v47  ;;  %v986_v19 = vmul.f32 %v4382_v39, %v4382_v39 }
 0x128   : > { %6444 = vst [vmem:[#allocation102_spill] sm:$0xff] %v4345_v44  ;;  %v1011_v11 = vmul.f32 %v4349_v7, %v4349_v7  ;;  %v1223_v8 = vadd.f32 %v1009_v36, %v1008_v14  ;;  %v4378_v44 = vsub.f32 %v2780_v62, %v4013_v16  ;;  %v2782_v14 = vld [vmem:[%s3140_s4 + $0x3a8] sm:$0xff]  ;;  %v984_v24 = vmul.f32 %v4374_v43, %v4374_v43 }
 0x129   : > { %6445 = vst [vmem:[#allocation103_spill] sm:$0xff] %v4349_v7  ;;  %v4388_v36 = vsub.f32 %v2782_v14, %v4013_v16  ;;  %v1192_v28 = vadd.f32 %v1191_v6, %v983_v18  ;;  %v2784_v14 = vld [vmem:[%s3140_s4 + $0x3b8] sm:$0xff] }
 0x12a   : > { %6446 = vst [vmem:[#allocation104_spill] sm:$0xff] %v4353_v29  ;;  %v4392_v29 = vsub.f32 %v2783_v48, %v4013_v16  ;;  %v1224_v62 = vadd.f32 %v1223_v8, %v1010_v60  ;;  %v985_v27 = vmul.f32 %v4378_v44, %v4378_v44 }
 0x12b   : > { %6447 = vst [vmem:[#allocation105_spill] sm:$0xff] %v4357_v47  ;;  %v4402_v47 = vsub.f32 %v2784_v14, %v4013_v16  ;;  %v987_v60 = vmul.f32 %v4388_v36, %v4388_v36  ;;  %1193 = vadd.xlane.f32.xlu2 %v1192_v28  ;;  %v2787_v16 = vld [vmem:[%s3140_s4 + $0x400] sm:$0xff]  ;;  %v2788_v14 = vld [vmem:[%s3140_s4 + $0x408] sm:$0xff] }
 0x12c   : > { %6448 = vst [vmem:[#allocation106_spill] sm:$0xff] %v4374_v43  ;;  %v988_v8 = vmul.f32 %v4392_v29, %v4392_v29  ;;  %v1225_v48 = vadd.f32 %v1224_v62, %v1011_v11  ;;  %v1195_v43 = vadd.f32 %v985_v27, %v984_v24  ;;  %v4418_v6 = vsub.f32 %v2787_v16, %v4203_v5  ;;  %v2790_v62 = vld [vmem:[%s3140_s4 + $0x418] sm:$0xff] }
 0x12d   : > { %6449 = vst [vmem:[#allocation107_spill] sm:$0xff] %v4378_v44  ;;  %v2785_v44 = vld [vmem:[%s3140_s4 + $0x3f0] sm:$0xff]  ;;  %v4437_v16 = vmul.f32 %v3582_v61, %v610_v40 }
 0x12e   : > { %6450 = vst [vmem:[#allocation108_spill] sm:$0xff] %v4382_v39  ;;  %v4410_v7 = vsub.f32 %v2785_v44, %v4203_v5  ;;  %v2786_v39 = vld [vmem:[%s3140_s4 + $0x3f8] sm:$0xff]  ;;  %v4430_v44 = vsub.f32 %v2790_v62, %v4203_v5  ;;  %v1196_v24 = vadd.f32 %v1195_v43, %v986_v19 }
 0x12f   : > { %6451 = vst [vmem:[#allocation109_spill] sm:$0xff] %v4388_v36  ;;  %v4414_v18 = vsub.f32 %v2786_v39, %v4203_v5  ;;  %v4422_v36 = vsub.f32 %v2788_v14, %v4203_v5  ;;  %v1226_v39 = vadd.f32 %v1225_v48, %v1012_v17  ;;  %v638_v17 = vpop.xlane.xlu1 %637 }
 0x130   : > { %6452 = vst [vmem:[#allocation110_spill] sm:$0xff] %v4392_v29  ;;  %v2789_v29 = vld [vmem:[%s3140_s4 + $0x410] sm:$0xff]  ;;  %v996_v27 = vmul.f32 %v4410_v7, %v4410_v7  ;;  %v1197_v48 = vadd.f32 %v1196_v24, %v987_v60  ;;  %v1001_v40 = vmul.f32 %v4430_v44, %v4430_v44 }
 0x131   : > { %6453 = vst [vmem:[#allocation111_spill] sm:$0xff] %v4402_v47  ;;  %v4426_v11 = vsub.f32 %v2789_v29, %v4203_v5  ;;  %v997_v28 = vmul.f32 %v4414_v18, %v4414_v18  ;;  %v989_v29 = vmul.f32 %v4402_v47, %v4402_v47  ;;  %v998_v5 = vmul.f32 %v4418_v6, %v4418_v6  ;;  %v2791_v47 = vld [vmem:[%s3140_s4 + $0x4e0] sm:$0xff] }
 0x132   : > { %6454 = vst [vmem:[#allocation112_spill] sm:$0xff] %v4410_v7  ;;  %v999_v43 = vmul.f32 %v4422_v36, %v4422_v36  ;;  %v1227_v19 = vadd.f32 %v1226_v39, %v1013_v56  ;;  %v4451_v7 = vsub.f32 %v2791_v47, %v4216_v51  ;;  %v2793_v56 = vld [vmem:[%s3140_s4 + $0x4f0] sm:$0xff]  ;;  %v1198_v39 = vadd.f32 %v1197_v48, %v988_v8 }
 0x133   : > { %6455 = vst [vmem:[#allocation113_spill] sm:$0xff] %v4414_v18  ;;  %v1000_v14 = vmul.f32 %v4426_v11, %v4426_v11  ;;  %v1209_v62 = vadd.f32 %v997_v28, %v996_v27  ;;  %v631_v18 = vpop.xlane.xlu0 %630  ;;  %v4459_v60 = vsub.f32 %v2793_v56, %v4216_v51  ;;  %v4462_v27 = vmul.f32 %v3582_v61, %v638_v17  ;;  %v2794_v28 = vld [vmem:[%s3140_s4 + $0x4f8] sm:$0xff] }
 0x134   : > { %6456 = vst [vmem:[#allocation114_spill] sm:$0xff] %v4418_v6  ;;  %v2792_v6 = vld [vmem:[%s3140_s4 + $0x4e8] sm:$0xff]  ;;  %1228 = vadd.xlane.f32.xlu1 %v1227_v19  ;;  %v4466_v47 = vsub.f32 %v2794_v28, %v4216_v51  ;;  %v1026_v56 = vmul.f32 %v4451_v7, %v4451_v7  ;;  %v1199_v17 = vadd.f32 %v1198_v39, %v989_v29 }
 0x135   : > { %6457 = vst [vmem:[#allocation115_spill] sm:$0xff] %v4422_v36  ;;  %v4455_v36 = vsub.f32 %v2792_v6, %v4216_v51  ;;  %v1210_v24 = vadd.f32 %v1209_v62, %v998_v5  ;;  %v1028_v5 = vmul.f32 %v4459_v60, %v4459_v60  ;;  %v4479_v48 = vmul.f32 %v3582_v61, %v631_v18  ;;  %v2796_v62 = vld [vmem:[%s3140_s4 + $0x508] sm:$0xff] }
 0x136   : > { %6458 = vst [vmem:[#allocation116_spill] sm:$0xff] %v4426_v11  ;;  %v1029_v28 = vmul.f32 %v4466_v47, %v4466_v47  ;;  %v2797_v11 = vld [vmem:[%s3140_s4 + $0x420] sm:$0xff]  ;;  %1200 = vadd.xlane.f32.xlu0 %v1199_v17 }
 0x137   : > { %6459 = vst [vmem:[#allocation117_spill] sm:$0xff] %v4430_v44  ;;  %v2795_v44 = vld [vmem:[%s3140_s4 + $0x500] sm:$0xff]  ;;  %v1027_v8 = vmul.f32 %v4455_v36, %v4455_v36  ;;  %v1211_v19 = vadd.f32 %v1210_v24, %v999_v43  ;;  %v2799_v43 = vld [vmem:[%s3140_s4 + $0x430] sm:$0xff] }
 0x138   : > { %6460 = vst [vmem:[#allocation118_spill] sm:$0xff] %v4451_v7  ;;  %v4470_v6 = vsub.f32 %v2795_v44, %v4216_v51  ;;  %v4483_v44 = vsub.f32 %v2796_v62, %v4216_v51  ;;  %v4497_v39 = vsub.f32 %v2799_v43, %v4126_v26  ;;  %v2800_v51 = vld [vmem:[%s3140_s4 + $0x438] sm:$0xff]  ;;  %v2802_v43 = vld [vmem:[%s3140_s4 + $0x448] sm:$0xff] }
 0x139   : > { %6461 = vst [vmem:[#allocation119_spill] sm:$0xff] %v4455_v36  ;;  %v1244_v7 = vadd.f32 %v1027_v8, %v1026_v56  ;;  %v4489_v36 = vsub.f32 %v2797_v11, %v4126_v26  ;;  %v1212_v18 = vadd.f32 %v1211_v19, %v1000_v14  ;;  %v4501_v24 = vsub.f32 %v2800_v51, %v4126_v26  ;;  %v2801_v56 = vld [vmem:[%s3140_s4 + $0x440] sm:$0xff] }
 0x13a   : > { %6462 = vst [vmem:[#allocation120_spill] sm:$0xff] %v4459_v60  ;;  %v2798_v60 = vld [vmem:[%s3140_s4 + $0x428] sm:$0xff]  ;;  %v4505_v11 = vsub.f32 %v2801_v56, %v4126_v26  ;;  %v1030_v8 = vmul.f32 %v4470_v6, %v4470_v6  ;;  %v1031_v62 = vmul.f32 %v4483_v44, %v4483_v44  ;;  %v4517_v51 = vsub.f32 %v2802_v43, %v4126_v26 }
 0x13b   : > { %6463 = vst [vmem:[#allocation121_spill] sm:$0xff] %v4466_v47  ;;  %v4493_v29 = vsub.f32 %v2798_v60, %v4126_v26  ;;  %v1245_v60 = vadd.f32 %v1244_v7, %v1028_v5  ;;  %v1002_v14 = vmul.f32 %v4489_v36, %v4489_v36  ;;  %v1213_v19 = vadd.f32 %v1212_v18, %v1001_v40  ;;  %v2804_v26 = vld [vmem:[%s3140_s4 + $0x488] sm:$0xff] }
 0x13c   : > { %6464 = vst [vmem:[#allocation122_spill] sm:$0xff] %v4470_v6  ;;  %v1004_v56 = vmul.f32 %v4497_v39, %v4497_v39  ;;  %v1005_v5 = vmul.f32 %v4501_v24, %v4501_v24  ;;  %v2803_v6 = vld [vmem:[%s3140_s4 + $0x480] sm:$0xff]  ;;  %v1006_v18 = vmul.f32 %v4505_v11, %v4505_v11  ;;  %v4531_v43 = vsub.f32 %v2804_v26, %v4252_v50 }
 0x13d   : > { %6465 = vst [vmem:[#allocation123_spill] sm:$0xff] %v4483_v44  ;;  %v1003_v17 = vmul.f32 %v4493_v29, %v4493_v29  ;;  %v1246_v7 = vadd.f32 %v1245_v60, %v1029_v28  ;;  %v4525_v40 = vsub.f32 %v2803_v6, %v4252_v50  ;;  %1214 = vadd.xlane.f32.xlu2 %v1213_v19  ;;  %v2806_v60 = vld [vmem:[%s3140_s4 + $0x498] sm:$0xff]  ;;  %v2807_v19 = vld [vmem:[%s3140_s4 + $0x4a0] sm:$0xff] }
 0x13e   : > { %6466 = vst [vmem:[#allocation124_spill] sm:$0xff] %v4489_v36  ;;  %v2810_v44 = vld [vmem:[%s3140_s4 + $0x578] sm:$0xff] }
 0x13f   : > { %6467 = vst [vmem:[#allocation125_spill] sm:$0xff] %v4493_v29  ;;  %v1216_v36 = vadd.f32 %v1003_v17, %v1002_v14  ;;  %v4539_v14 = vsub.f32 %v2806_v60, %v4252_v50  ;;  %v1247_v17 = vadd.f32 %v1246_v7, %v1030_v8  ;;  %v1014_v26 = vmul.f32 %v4525_v40, %v4525_v40 }
 0x140   : > { %6468 = vst [vmem:[#allocation126_spill] sm:$0xff] %v4497_v39  ;;  %v2805_v39 = vld [vmem:[%s3140_s4 + $0x490] sm:$0xff]  ;;  %v1015_v8 = vmul.f32 %v4531_v43, %v4531_v43 }
 0x141   : > { %6469 = vst [vmem:[#allocation127_spill] sm:$0xff] %v4501_v24  ;;  %v4535_v28 = vsub.f32 %v2805_v39, %v4252_v50  ;;  %v1217_v6 = vadd.f32 %v1216_v36, %v1004_v56  ;;  %v1007_v39 = vmul.f32 %v4517_v51, %v4517_v51  ;;  %v2808_v24 = vld [vmem:[%s3140_s4 + $0x4a8] sm:$0xff]  ;;  %v1248_v56 = vadd.f32 %v1247_v17, %v1031_v62 }
 0x142   : > { %6470 = vst [vmem:[#allocation128_spill] sm:$0xff] %v4505_v11  ;;  %v4543_v11 = vsub.f32 %v2807_v19, %v4252_v50  ;;  %v4551_v29 = vsub.f32 %v2808_v24, %v4252_v50  ;;  %v1017_v60 = vmul.f32 %v4539_v14, %v4539_v14  ;;  %v2809_v19 = vld [vmem:[%s3140_s4 + $0x570] sm:$0xff]  ;;  %v4565_v50 = vsub.f32 %v2810_v44, %v4333_v59  ;;  %v2811_v24 = vld [vmem:[%s3140_s4 + $0x580] sm:$0xff] }
 0x143   : > { %6471 = vst [vmem:[#allocation129_spill] sm:$0xff] %v4517_v51  ;;  %v1016_v36 = vmul.f32 %v4535_v28, %v4535_v28  ;;  %v1218_v7 = vadd.f32 %v1217_v6, %v1005_v5  ;;  %v1230_v51 = vadd.f32 %v1015_v8, %v1014_v26  ;;  %1249 = vadd.xlane.f32.xlu1 %v1248_v56  ;;  %v2813_v6 = vld [vmem:[%s3140_s4 + $0x590] sm:$0xff] }
 0x144   : > { %6472 = vst [vmem:[#allocation130_spill] sm:$0xff] %v4525_v40  ;;  %v4561_v40 = vsub.f32 %v2809_v19, %v4333_v59  ;;  %v1018_v17 = vmul.f32 %v4543_v11, %v4543_v11  ;;  %v4579_v44 = vsub.f32 %v2813_v6, %v4333_v59  ;;  %v1019_v8 = vmul.f32 %v4551_v29, %v4551_v29 }
 0x145   : > { %6473 = vst [vmem:[#allocation131_spill] sm:$0xff] %v4531_v43  ;;  %v4569_v43 = vsub.f32 %v2811_v24, %v4333_v59  ;;  %v1219_v5 = vadd.f32 %v1218_v7, %v1006_v18  ;;  %v1231_v19 = vadd.f32 %v1230_v51, %v1016_v36  ;;  %v2814_v7 = vld [vmem:[%s3140_s4 + $0x598] sm:$0xff] }
 0x146   : > { %6474 = vst [vmem:[#allocation132_spill] sm:$0xff] %v4535_v28  ;;  %v2812_v28 = vld [vmem:[%s3140_s4 + $0x588] sm:$0xff]  ;;  %v1044_v26 = vmul.f32 %v4561_v40, %v4561_v40  ;;  %v4591_v24 = vsub.f32 %v2814_v7, %v4333_v59 }
 0x147   : > { %6475 = vst [vmem:[#allocation133_spill] sm:$0xff] %v4539_v14  ;;  %v4573_v62 = vsub.f32 %v2812_v28, %v4333_v59  ;;  %v1045_v28 = vmul.f32 %v4565_v50, %v4565_v50  ;;  %v1046_v18 = vmul.f32 %v4569_v43, %v4569_v43  ;;  %v1220_v56 = vadd.f32 %v1219_v5, %v1007_v39  ;;  %v2817_v39 = vld [vmem:[%s3140_s4 + $0x4c0] sm:$0xff]  ;;  %v2818_v7 = vld [vmem:[%s3140_s4 + $0x4c8] sm:$0xff] }
 0x148   : > { %6476 = vst [vmem:[#allocation134_spill] sm:$0xff] %v4543_v11  ;;  %v1232_v51 = vadd.f32 %v1231_v19, %v1017_v60  ;;  %v4605_v5 = vsub.f32 %v2817_v39, %v4247_v58  ;;  %v1048_v59 = vmul.f32 %v4579_v44, %v4579_v44  ;;  %v2819_v60 = vld [vmem:[%s3140_s4 + $0x4d0] sm:$0xff] }
 0x149   : > { %6477 = vst [vmem:[#allocation135_spill] sm:$0xff] %v4551_v29  ;;  %v1047_v6 = vmul.f32 %v4573_v62, %v4573_v62  ;;  %v1265_v36 = vadd.f32 %v1045_v28, %v1044_v26  ;;  %1221 = vadd.xlane.f32.xlu0 %v1220_v56  ;;  %v4615_v26 = vsub.f32 %v2819_v60, %v4247_v58 }
 0x14a   : > { %6478 = vst [vmem:[#allocation136_spill] sm:$0xff] %v4561_v40  ;;  %v2815_v40 = vld [vmem:[%s3140_s4 + $0x4b0] sm:$0xff]  ;;  %v1233_v19 = vadd.f32 %v1232_v51, %v1018_v17  ;;  %v1022_v39 = vmul.f32 %v4605_v5, %v4605_v5 }
 0x14b   : > { %6479 = vst [vmem:[#allocation137_spill] sm:$0xff] %v4565_v50  ;;  %v4597_v29 = vsub.f32 %v2815_v40, %v4247_v58  ;;  %v2816_v50 = vld [vmem:[%s3140_s4 + $0x4b8] sm:$0xff]  ;;  %v4611_v40 = vsub.f32 %v2818_v7, %v4247_v58  ;;  %v1266_v28 = vadd.f32 %v1265_v36, %v1046_v18  ;;  %v1049_v7 = vmul.f32 %v4591_v24, %v4591_v24  ;;  %v2821_v51 = vld [vmem:[%s3140_s4 + $0x510] sm:$0xff] }
 0x14c   : > { %6480 = vst [vmem:[#allocation138_spill] sm:$0xff] %v4569_v43  ;;  %v4601_v11 = vsub.f32 %v2816_v50, %v4247_v58  ;;  %v4633_v18 = vsub.f32 %v2821_v51, %v4437_v16  ;;  %v1234_v36 = vadd.f32 %v1233_v19, %v1019_v8  ;;  %v2825_v8 = vld [vmem:[%s3140_s4 + $0x530] sm:$0xff] }
 0x14d   : > { %6481 = vst [vmem:[#allocation139_spill] sm:$0xff] %v4573_v62  ;;  %v1020_v50 = vmul.f32 %v4597_v29, %v4597_v29  ;;  %v1023_v17 = vmul.f32 %v4611_v40, %v4611_v40 }
 0x14e   : > { %6482 = vst [vmem:[#allocation140_spill] sm:$0xff] %v4579_v44  ;;  %v1021_v56 = vmul.f32 %v4601_v11, %v4601_v11  ;;  %v2820_v44 = vld [vmem:[%s3140_s4 + $0x4d8] sm:$0xff]  ;;  %1235 = vadd.xlane.f32.xlu2 %v1234_v36  ;;  %v1032_v19 = vmul.f32 %v4633_v18, %v4633_v18 }
 0x14f   : > { %6483 = vst [vmem:[#allocation141_spill] sm:$0xff] %v4591_v24  ;;  %v4627_v60 = vsub.f32 %v2820_v44, %v4247_v58  ;;  %v1024_v24 = vmul.f32 %v4615_v26, %v4615_v26  ;;  %v2823_v58 = vld [vmem:[%s3140_s4 + $0x520] sm:$0xff] }
 0x150   : > { %6484 = vst [vmem:[#allocation142_spill] sm:$0xff] %v4597_v29  ;;  %v1237_v29 = vadd.f32 %v1021_v56, %v1020_v50  ;;  %v4643_v44 = vsub.f32 %v2823_v58, %v4437_v16  ;;  %v2826_v56 = vld [vmem:[%s3140_s4 + $0x538] sm:$0xff]  ;;  %v2827_v58 = vld [vmem:[%s3140_s4 + $0x540] sm:$0xff] }
 0x151   : > { %6485 = vst [vmem:[#allocation143_spill] sm:$0xff] %v4601_v11  ;;  %v1267_v11 = vadd.f32 %v1266_v28, %v1047_v6  ;;  %v4651_v6 = vsub.f32 %v2825_v8, %v4437_v16  ;;  %v4661_v51 = vsub.f32 %v2826_v56, %v4437_v16  ;;  %v4669_v8 = vsub.f32 %v2827_v58, %v4360_v32  ;;  %v2832_v58 = vld [vmem:[%s3140_s4 + $0x568] sm:$0xff] }
 0x152   : > { %6486 = vst [vmem:[#allocation144_spill] sm:$0xff] %v4605_v5  ;;  %v2822_v5 = vld [vmem:[%s3140_s4 + $0x518] sm:$0xff]  ;;  %v1238_v50 = vadd.f32 %v1237_v29, %v1022_v39  ;;  %v1034_v36 = vmul.f32 %v4643_v44, %v4643_v44 }
 0x153   : > { %6487 = vst [vmem:[#allocation145_spill] sm:$0xff] %v4611_v40  ;;  %v4637_v62 = vsub.f32 %v2822_v5, %v4437_v16  ;;  %v2824_v40 = vld [vmem:[%s3140_s4 + $0x528] sm:$0xff]  ;;  %v1268_v5 = vadd.f32 %v1267_v11, %v1048_v59 }
 0x154   : > { %6488 = vst [vmem:[#allocation146_spill] sm:$0xff] %v4615_v26  ;;  %v4647_v43 = vsub.f32 %v2824_v40, %v4437_v16  ;;  %v1025_v40 = vmul.f32 %v4627_v60, %v4627_v60  ;;  %v1239_v59 = vadd.f32 %v1238_v50, %v1023_v17  ;;  %v2828_v16 = vld [vmem:[%s3140_s4 + $0x548] sm:$0xff]  ;;  %v2829_v26 = vld [vmem:[%s3140_s4 + $0x550] sm:$0xff]  ;;  %v2831_v50 = vld [vmem:[%s3140_s4 + $0x560] sm:$0xff] }
 0x155   : > { %6489 = vst [vmem:[#allocation147_spill] sm:$0xff] %v4627_v60  ;;  %v1033_v28 = vmul.f32 %v4637_v62, %v4637_v62  ;;  %v1269_v11 = vadd.f32 %v1268_v5, %v1049_v7  ;;  %v1036_v60 = vmul.f32 %v4651_v6, %v4651_v6  ;;  %v4675_v56 = vsub.f32 %v2828_v16, %v4360_v32  ;;  %v2833_v16 = vld [vmem:[%s3140_s4 + $0x5a0] sm:$0xff] }
 0x156   : > { %6490 = vst [vmem:[#allocation148_spill] sm:$0xff] %v4633_v18  ;;  %v1035_v29 = vmul.f32 %v4647_v43, %v4647_v43  ;;  %v1240_v17 = vadd.f32 %v1239_v59, %v1024_v24 }
 0x157   : > { %6491 = vst [vmem:[#allocation149_spill] sm:$0xff] %v4637_v62  ;;  %v1251_v39 = vadd.f32 %v1033_v28, %v1032_v19  ;;  %1270 = vadd.xlane.f32.xlu1 %v1269_v11  ;;  %v4687_v19 = vsub.f32 %v2831_v50, %v4360_v32  ;;  %v1038_v28 = vmul.f32 %v4669_v8, %v4669_v8 }
 0x158   : > { %6492 = vst [vmem:[#allocation150_spill] sm:$0xff] %v4643_v44  ;;  %v4679_v44 = vsub.f32 %v2829_v26, %v4360_v32  ;;  %v1037_v26 = vmul.f32 %v4661_v51, %v4661_v51  ;;  %v1039_v24 = vmul.f32 %v4675_v56, %v4675_v56  ;;  %v1241_v11 = vadd.f32 %v1240_v17, %v1025_v40 }
 0x159   : > { %6493 = vst [vmem:[#allocation151_spill] sm:$0xff] %v4647_v43  ;;  %v2830_v43 = vld [vmem:[%s3140_s4 + $0x558] sm:$0xff]  ;;  %v1252_v5 = vadd.f32 %v1251_v39, %v1034_v36  ;;  %v4705_v50 = vsub.f32 %v2833_v16, %v4479_v48  ;;  %v1042_v17 = vmul.f32 %v4687_v19, %v4687_v19 }
 0x15a   : > { %6494 = vst [vmem:[#allocation152_spill] sm:$0xff] %v4651_v6  ;;  %v4683_v7 = vsub.f32 %v2830_v43, %v4360_v32  ;;  %v4695_v43 = vsub.f32 %v2832_v58, %v4360_v32  ;;  %v1040_v36 = vmul.f32 %v4679_v44, %v4679_v44  ;;  %v2835_v58 = vld [vmem:[%s3140_s4 + $0x5b0] sm:$0xff]  ;;  %1242 = vadd.xlane.f32.xlu0 %v1241_v11 }
 0x15b   : > { %6495 = vst [vmem:[#allocation153_spill] sm:$0xff] %v4661_v51  ;;  %v1253_v59 = vadd.f32 %v1252_v5, %v1035_v29  ;;  %v2834_v51 = vld [vmem:[%s3140_s4 + $0x5a8] sm:$0xff]  ;;  %v2837_v5 = vld [vmem:[%s3140_s4 + $0x5c0] sm:$0xff] }
 0x15c   : > { %6496 = vst [vmem:[#allocation154_spill] sm:$0xff] %v4669_v8  ;;  %v1041_v39 = vmul.f32 %v4683_v7, %v4683_v7  ;;  %v1258_v8 = vadd.f32 %v1039_v24, %v1038_v28  ;;  %v4709_v32 = vsub.f32 %v2834_v51, %v4479_v48  ;;  %v4723_v51 = vsub.f32 %v2837_v5, %v4479_v48 }
 0x15d   : > { %6497 = vst [vmem:[#allocation155_spill] sm:$0xff] %v4675_v56  ;;  %v4713_v56 = vsub.f32 %v2835_v58, %v4479_v48  ;;  %v1254_v29 = vadd.f32 %v1253_v59, %v1036_v60  ;;  %v1050_v28 = vmul.f32 %v4705_v50, %v4705_v50  ;;  %v1043_v24 = vmul.f32 %v4695_v43, %v4695_v43  ;;  %v2838_v59 = vld [vmem:[%s3140_s4 + $0x5c8] sm:$0xff] }
 0x15e   : > { %6498 = vst [vmem:[#allocation156_spill] sm:$0xff] %v4679_v44  ;;  %v2836_v44 = vld [vmem:[%s3140_s4 + $0x5b8] sm:$0xff]  ;;  %v1259_v16 = vadd.f32 %v1258_v8, %v1040_v36  ;;  %v4735_v58 = vsub.f32 %v2838_v59, %v4479_v48  ;;  %v2842_v59 = vld [vmem:[%s3140_s4 + $0x5e8] sm:$0xff] }
 0x15f   : > { %6499 = vst [vmem:[#allocation157_spill] sm:$0xff] %v4683_v7  ;;  %v4717_v40 = vsub.f32 %v2836_v44, %v4479_v48  ;;  %v1051_v44 = vmul.f32 %v4709_v32, %v4709_v32  ;;  %v1052_v60 = vmul.f32 %v4713_v56, %v4713_v56  ;;  %v1255_v11 = vadd.f32 %v1254_v29, %v1037_v26  ;;  %v2840_v7 = vld [vmem:[%s3140_s4 + $0x5d8] sm:$0xff]  ;;  %v2841_v26 = vld [vmem:[%s3140_s4 + $0x5e0] sm:$0xff] }
 0x160   : > { %6500 = vst [vmem:[#allocation158_spill] sm:$0xff] %v4687_v19  ;;  %v2839_v19 = vld [vmem:[%s3140_s4 + $0x5d0] sm:$0xff]  ;;  %v1260_v8 = vadd.f32 %v1259_v16, %v1041_v39  ;;  %v4749_v29 = vsub.f32 %v2841_v26, %v4462_v27  ;;  %v1054_v48 = vmul.f32 %v4723_v51, %v4723_v51  ;;  %v1055_v26 = vmul.f32 %v4735_v58, %v4735_v58 }
 0x161   : > { %6501 = vst [vmem:[#allocation159_spill] sm:$0xff] %v4695_v43  ;;  %v1053_v5 = vmul.f32 %v4717_v40, %v4717_v40  ;;  %v4741_v43 = vsub.f32 %v2839_v19, %v4462_v27  ;;  %v1272_v36 = vadd.f32 %v1051_v44, %v1050_v28  ;;  %1256 = vadd.xlane.f32.xlu2 %v1255_v11  ;;  %v2843_v19 = vld [vmem:[%s3140_s4 + $0x5f0] sm:$0xff] }
 0x162   : > { %6502 = vst [vmem:[#allocation160_spill] sm:$0xff] %v4705_v50  ;;  %v4759_v39 = vsub.f32 %v2843_v19, %v4462_v27  ;;  %v1261_v28 = vadd.f32 %v1260_v8, %v1042_v17  ;;  %v1058_v11 = vmul.f32 %v4749_v29, %v4749_v29 }
 0x163   : > { %6503 = vst [vmem:[#allocation161_spill] sm:$0xff] %v4709_v32  ;;  %v4745_v32 = vsub.f32 %v2840_v7, %v4462_v27  ;;  %v1056_v7 = vmul.f32 %v4741_v43, %v4741_v43  ;;  %v1273_v16 = vadd.f32 %v1272_v36, %v1052_v60  ;;  %v1082_v60 = vpop.xlane.xlu1 %1081 }
 0x164   : > { %6504 = vst [vmem:[#allocation162_spill] sm:$0xff] %v4713_v56  ;;  %v1262_v19 = vadd.f32 %v1261_v28, %v1043_v24  ;;  %v1060_v36 = vmul.f32 %v4759_v39, %v4759_v39  ;;  %v1068_v24 = vpop.xlane.xlu2 %1067 }
 0x165   : > { %6505 = vst [vmem:[#allocation163_spill] sm:$0xff] %v4717_v40  ;;  %v4755_v40 = vsub.f32 %v2842_v59, %v4462_v27  ;;  %v1057_v44 = vmul.f32 %v4745_v32, %v4745_v32  ;;  %v2844_v59 = vld [vmem:[%s3140_s4 + $0x5f8] sm:$0xff]  ;;  %v1274_v56 = vadd.f32 %v1273_v16, %v1053_v5 }
 0x166   : > { %6506 = vst [vmem:[#allocation164_spill] sm:$0xff] %v4723_v51  ;;  %v4771_v51 = vsub.f32 %v2844_v59, %v4462_v27  ;;  %1263 = vadd.xlane.f32.xlu0 %v1262_v19  ;;  %v1288_v27 = vmul.f32 %v1082_v60, %v3582_v61 }
 0x167   : > { %6507 = vst [vmem:[#allocation165_spill] sm:$0xff] %v4735_v58  ;;  %v1279_v17 = vadd.f32 %v1057_v44, %v1056_v7  ;;  %v1275_v8 = vadd.f32 %v1274_v56, %v1054_v48  ;;  %v1286_v7 = vmul.f32 %v1068_v24, %v3582_v61 }
 0x168   : > { %6508 = vst [vmem:[#allocation166_spill] sm:$0xff] %v4741_v43  ;;  %v1059_v43 = vmul.f32 %v4755_v40, %v4755_v40  ;;  %v1061_v58 = vmul.f32 %v4771_v51, %v4771_v51  ;;  %v1320_v28 = vadd.f32 1e-05, %v1288_v27 }
 0x169   : > { %6509 = vst [vmem:[#allocation167_spill] sm:$0xff] %v4745_v32  ;;  %v1276_v32 = vadd.f32 %v1275_v8, %v1055_v26  ;;  %v1318_v56 = vadd.f32 1e-05, %v1286_v7 }
 0x16a   : > { %6510 = vst [vmem:[#allocation168_spill] sm:$0xff] %v4749_v29  ;;  %v1280_v29 = vadd.f32 %v1279_v17, %v1058_v11  ;;  %2669 = vrsqrt.f32 %v1320_v28  ;;  %vm1376_vm2 = vweird.f32 %v1320_v28 }
 0x16b   : > { %6511 = vst [vmem:[#allocation169_spill] sm:$0xff] %v4755_v40  ;;  %1277 = vadd.xlane.f32.xlu2 %v1276_v32  ;;  %2671 = vrsqrt.f32 %v1318_v56  ;;  %v1103_v48 = vpop.xlane.xlu1 %1102  ;;  %vm1356_vm5 = vweird.f32 %v1318_v56 }
 0x16c   : > { %6512 = vst [vmem:[#allocation170_spill] sm:$0xff] %v4759_v39  ;;  %v1281_v50 = vadd.f32 %v1280_v29, %v1059_v43  ;;  %v1291_v44 = vmul.f32 %v1103_v48, %v3582_v61  ;;  %v1862_v43 = vld [vmem:[#allocation5] sm:$0x3f]  ;;  %v1089_v17 = vpop.xlane.xlu2 %1088 }
 0x16d   : > { %6513 = vst [vmem:[#allocation171_spill] sm:$0xff] %v4771_v51  ;;  %v4787_v60 = vperm.slane %v1862_v43, 1  ;;  %v1289_v8 = vmul.f32 %v1089_v17, %v3582_v61  ;;  %v4792_v27 = vperm.slane %v1862_v43, 3  ;;  %v4794_v7 = vperm.slane %v1862_v43, 4  ;;  %v1075_v17 = vpop.xlane.xlu0 %1074 }
 0x16e   : > { %v1282_v5 = vadd.f32 %v1281_v50, %v1060_v36  ;;  %v4782_v26 = vadd.f32 1e-05, %v1291_v44  ;;  %v2068_v50 = vld [vmem:[#allocation7] sm:$0x3f]  ;;  %v4790_v36 = vperm.slane %v1862_v43, 2 }
 0x16f   : > { %v4798_v48 = vperm.slane %v2068_v50, 0  ;;  %v4800_v44 = vadd.f32 1e-05, %v1289_v8  ;;  %v4806_v6 = vperm.slane %v2068_v50, 2  ;;  %v4813_v18 = vperm.slane %v2068_v50, 4 }
 0x170   : > { %v1283_v16 = vadd.f32 %v1282_v5, %v1061_v58  ;;  %v2670_v11 = vpop.eup %2669  ;;  %2673 = vrsqrt.f32 %v4782_v26  ;;  %v4785_v58 = vperm.slane %v1862_v43, 0  ;;  %vm1406_vm6 = vweird.f32 %v4782_v26 }
 0x171   : > { %v1371_v29 = vmul.f32 %v2670_v11, %v1320_v28  ;;  %v2672_v59 = vpop.eup %2671  ;;  %vm1377_vm1 = vweird.f32 %v2670_v11  ;;  %2675 = vrsqrt.f32 %v4800_v44  ;;  %vm1386_vm9 = vweird.f32 %v4800_v44 }
 0x172   : > { %1284 = vadd.xlane.f32.xlu0 %v1283_v16  ;;  %v1351_v19 = vmul.f32 %v2672_v59, %v1318_v56  ;;  %v4796_v16 = vperm.slane %v1862_v43, 5  ;;  %v1287_v43 = vmul.f32 %v1075_v17, %v3582_v61  ;;  %vm1357_vm3 = vweird.f32 %v2672_v59  ;;  %vm1378_vm4 = vmor %vm1376_vm2, %vm1377_vm1 }
 0x173   : > { %v1372_v32 = vmul.f32 %v2670_v11, %v1371_v29  ;;  %v4802_v29 = vperm.slane %v2068_v50, 1  ;;  %vm1358_vm8 = vmor %vm1356_vm5, %vm1357_vm3 }
 0x174   : > { %v1352_v5 = vmul.f32 %v2672_v59, %v1351_v19 }
 0x175   : > { %v1373_v24 = vmul.f32 0.5, %v1372_v32  ;;  %v4808_v32 = vperm.slane %v2068_v50, 3 }
 0x176   : > { %v1353_v39 = vmul.f32 0.5, %v1352_v5  ;;  %v4804_v40 = vpop.eup %2673 }
 0x177   : > { %v1374_v51 = vsub.f32 1.5, %v1373_v24  ;;  %v1401_v8 = vmul.f32 %v4804_v40, %v4782_v26  ;;  %v4815_v24 = vperm.slane %v2068_v50, 5  ;;  %vm1407_vm7 = vweird.f32 %v4804_v40 }
 0x178   : > { %v1354_v62 = vsub.f32 1.5, %v1353_v39  ;;  %vm1408_vm10 = vmor %vm1406_vm6, %vm1407_vm7 }
 0x179   : > { %v1375_v19 = vmul.f32 %v2670_v11, %v1374_v51  ;;  %v1402_v28 = vmul.f32 %v4804_v40, %v1401_v8  ;;  %v4821_v51 = vadd.f32 1e-05, %v1287_v43 }
 0x17a   : > { %v1355_v14 = vmul.f32 %v2672_v59, %v1354_v62 }
 0x17b   : > { %v1379_v5 = vsel %vm1378_vm4, %v2670_v11, %v1375_v19  ;;  %v1403_v8 = vmul.f32 0.5, %v1402_v28  ;;  %2677 = vrsqrt.f32 %v4821_v51  ;;  %vm1366_vm14 = vweird.f32 %v4821_v51 }
 0x17c   : > { %v1682_v39 = vmul.f32 %v1379_v5, %v3600_v41  ;;  %v1683_v17 = vmul.f32 %v1379_v5, %v3603_v33  ;;  %v1684_v50 = vmul.f32 %v1379_v5, %v3606_v0  ;;  %v1685_v56 = vmul.f32 %v1379_v5, %v3609_v1 }
 0x17d   : > { %v1686_v62 = vmul.f32 %v1379_v5, %v3612_v2  ;;  %v1687_v11 = vmul.f32 %v1379_v5, %v3615_v3  ;;  %v1359_v19 = vsel %vm1358_vm8, %v2672_v59, %v1355_v14  ;;  %v4838_v3 = vpop.eup %2675 }
 0x17e   : > { %v1888_v47 = vmul.f32 %v4785_v58, %v1682_v39  ;;  %v1889_v43 = vmul.f32 %v4787_v60, %v1683_v17  ;;  %v1890_v41 = vmul.f32 %v4790_v36, %v1684_v50  ;;  %v1891_v33 = vmul.f32 %v4792_v27, %v1685_v56 }
 0x17f   : > { %v1892_v0 = vmul.f32 %v4794_v7, %v1686_v62  ;;  %v1893_v1 = vmul.f32 %v4796_v16, %v1687_v11  ;;  %v1670_v42 = vmul.f32 %v1359_v19, %v3627_v10  ;;  %v1671_v2 = vmul.f32 %v1359_v19, %v3632_v34 }
 0x180   : > { %v2094_v14 = vadd.f32 %v4798_v48, %v1888_v47  ;;  %v2095_v59 = vadd.f32 %v4802_v29, %v1889_v43  ;;  %v2096_v5 = vadd.f32 %v4806_v6, %v1890_v41  ;;  %v2097_v28 = vadd.f32 %v4808_v32, %v1891_v33 }
 0x181   : > { %v2098_v39 = vadd.f32 %v4813_v18, %v1892_v0  ;;  %v2099_v17 = vadd.f32 %v4815_v24, %v1893_v1  ;;  %v1672_v50 = vmul.f32 %v1359_v19, %v3643_v12  ;;  %v1673_v10 = vmul.f32 %v1359_v19, %v3646_v46 }
 0x182   : > { %2286 = vst [vmem:[%s4850_s23 + $0x60] sm:$0xff] %v2094_v14  ;;  %v1674_v34 = vmul.f32 %v1359_v19, %v3651_v15  ;;  %v1675_v47 = vmul.f32 %v1359_v19, %v3661_v38  ;;  %v1876_v56 = vmul.f32 %v4785_v58, %v1670_v42  ;;  %v1877_v62 = vmul.f32 %v4787_v60, %v1671_v2  ;;  %v1124_v42 = vpop.xlane.xlu1 %1123 }
 0x183   : > { %2287 = vst [vmem:[%s4850_s23 + $0x68] sm:$0xff] %v2095_v59  ;;  %v1878_v12 = vmul.f32 %v4790_v36, %v1672_v50  ;;  %v1879_v46 = vmul.f32 %v4792_v27, %v1673_v10  ;;  %v1404_v11 = vsub.f32 1.5, %v1403_v8  ;;  %v1381_v43 = vmul.f32 %v4838_v3, %v4800_v44 }
 0x184   : > { %2288 = vst [vmem:[%s4850_s23 + $0x70] sm:$0xff] %v2096_v5  ;;  %v1880_v41 = vmul.f32 %v4794_v7, %v1674_v34  ;;  %v1881_v15 = vmul.f32 %v4796_v16, %v1675_v47  ;;  %v2082_v38 = vadd.f32 %v4798_v48, %v1876_v56  ;;  %v2083_v19 = vadd.f32 %v4802_v29, %v1877_v62 }
 0x185   : > { %2289 = vst [vmem:[%s4850_s23 + $0x78] sm:$0xff] %v2097_v28  ;;  %v2084_v8 = vadd.f32 %v4806_v6, %v1878_v12  ;;  %v1405_v33 = vmul.f32 %v4804_v40, %v1404_v11  ;;  %v1382_v0 = vmul.f32 %v4838_v3, %v1381_v43  ;;  %v2085_v1 = vadd.f32 %v4808_v32, %v1879_v46  ;;  %v2678_v12 = vpop.eup %2677 }
 0x186   : > { %2290 = vst [vmem:[%s4850_s23 + $0x80] sm:$0xff] %v2098_v39  ;;  %v2086_v2 = vadd.f32 %v4813_v18, %v1880_v41  ;;  %v2087_v14 = vadd.f32 %v4815_v24, %v1881_v15  ;;  %vm1387_vm11 = vweird.f32 %v4838_v3  ;;  %v1294_v28 = vmul.f32 %v1124_v42, %v3582_v61 }
 0x187   : > { %2291 = vst [vmem:[%s4850_s23 + $0x88] sm:$0xff] %v2099_v17  ;;  %v1409_v59 = vsel %vm1408_vm10, %v4804_v40, %v1405_v33  ;;  %v1383_v5 = vmul.f32 0.5, %v1382_v0  ;;  %vm1388_vm12 = vmor %vm1386_vm9, %vm1387_vm11  ;;  %v1361_v42 = vmul.f32 %v2678_v12, %v4821_v51  ;;  %vm1367_vm13 = vweird.f32 %v2678_v12 }
 0x188   : > { %2274 = vst [vmem:[%s4850_s23] sm:$0xff] %v2082_v38  ;;  %v1700_v39 = vmul.f32 %v1409_v59, %v3668_v52  ;;  %v1701_v50 = vmul.f32 %v1409_v59, %v3673_v63  ;;  %v1702_v26 = vmul.f32 %v1409_v59, %v3676_v35  ;;  %v1703_v10 = vmul.f32 %v1409_v59, %v3679_v55  ;;  %v1110_v55 = vpop.xlane.xlu2 %1109  ;;  %vm1368_vm15 = vmor %vm1366_vm14, %vm1367_vm13 }
 0x189   : > { %2275 = vst [vmem:[%s4850_s23 + $0x8] sm:$0xff] %v2083_v19  ;;  %v1704_v17 = vmul.f32 %v1409_v59, %v3682_v57  ;;  %v1705_v40 = vmul.f32 %v1409_v59, %v3685_v21  ;;  %v1384_v34 = vsub.f32 1.5, %v1383_v5  ;;  %v4893_v47 = vadd.f32 1e-05, %v1294_v28 }
 0x18a   : > { %2276 = vst [vmem:[%s4850_s23 + $0x10] sm:$0xff] %v2084_v8  ;;  %v1906_v56 = vmul.f32 %v4785_v58, %v1700_v39  ;;  %v1907_v52 = vmul.f32 %v4787_v60, %v1701_v50  ;;  %v1908_v63 = vmul.f32 %v4790_v36, %v1702_v26  ;;  %v1909_v35 = vmul.f32 %v4792_v27, %v1703_v10 }
 0x18b   : > { %2277 = vst [vmem:[%s4850_s23 + $0x18] sm:$0xff] %v2085_v1  ;;  %v1910_v57 = vmul.f32 %v4794_v7, %v1704_v17  ;;  %v1911_v21 = vmul.f32 %v4796_v16, %v1705_v40  ;;  %v1385_v62 = vmul.f32 %v4838_v3, %v1384_v34  ;;  %2679 = vrsqrt.f32 %v4893_v47  ;;  %v1145_v40 = vpop.xlane.xlu1 %1144 }
 0x18c   : > { %2278 = vst [vmem:[%s4850_s23 + $0x20] sm:$0xff] %v2086_v2  ;;  %v2112_v46 = vadd.f32 %v4798_v48, %v1906_v56  ;;  %v2113_v11 = vadd.f32 %v4802_v29, %v1907_v52  ;;  %v2114_v43 = vadd.f32 %v4806_v6, %v1908_v63  ;;  %v2115_v41 = vadd.f32 %v4808_v32, %v1909_v35 }
 0x18d   : > { %2279 = vst [vmem:[%s4850_s23 + $0x28] sm:$0xff] %v2087_v14  ;;  %v2116_v15 = vadd.f32 %v4813_v18, %v1910_v57  ;;  %v1389_v38 = vsel %vm1388_vm12, %v4838_v3, %v1385_v62  ;;  %v2117_v0 = vadd.f32 %v4815_v24, %v1911_v21  ;;  %v1362_v2 = vmul.f32 %v2678_v12, %v1361_v42  ;;  %v1096_v14 = vpop.xlane.xlu0 %1095 }
 0x18e   : > { %2304 = vst [vmem:[%s4850_s23 + $0xf0] sm:$0xff] %v2112_v46  ;;  %v1688_v19 = vmul.f32 %v1389_v38, %v3701_v4  ;;  %v1689_v8 = vmul.f32 %v1389_v38, %v3704_v13  ;;  %v1690_v33 = vmul.f32 %v1389_v38, %v3707_v20  ;;  %v1691_v44 = vmul.f32 %v1389_v38, %v3710_v45 }
 0x18f   : > { %2305 = vst [vmem:[%s4850_s23 + $0xf8] sm:$0xff] %v2113_v11  ;;  %v1692_v1 = vmul.f32 %v1389_v38, %v3716_v31  ;;  %v1693_v3 = vmul.f32 %v1389_v38, %v3731_v49  ;;  %v1363_v5 = vmul.f32 0.5, %v1362_v2  ;;  %v1292_v56 = vmul.f32 %v1110_v55, %v3582_v61 }
 0x190   : > { %2306 = vst [vmem:[%s4850_s23 + $0x100] sm:$0xff] %v2114_v43  ;;  %v1894_v4 = vmul.f32 %v4785_v58, %v1688_v19  ;;  %v1895_v13 = vmul.f32 %v4787_v60, %v1689_v8  ;;  %v1896_v20 = vmul.f32 %v4790_v36, %v1690_v33  ;;  %v1897_v45 = vmul.f32 %v4792_v27, %v1691_v44  ;;  %v1131_v63 = vpop.xlane.xlu2 %1130 }
 0x191   : > { %v4932_v59 = vpop.eup %2679  ;;  %2307 = vst [vmem:[%s4850_s23 + $0x108] sm:$0xff] %v2115_v41  ;;  %v1898_v31 = vmul.f32 %v4794_v7, %v1692_v1  ;;  %v1899_v49 = vmul.f32 %v4796_v16, %v1693_v3  ;;  %v1364_v10 = vsub.f32 1.5, %v1363_v5  ;;  %v1290_v52 = vmul.f32 %v1096_v14, %v3582_v61 }
 0x192   : > { %2308 = vst [vmem:[%s4850_s23 + $0x110] sm:$0xff] %v2116_v15  ;;  %v2100_v28 = vadd.f32 %v4798_v48, %v1894_v4  ;;  %v2101_v39 = vadd.f32 %v4802_v29, %v1895_v13  ;;  %v2102_v50 = vadd.f32 %v4806_v6, %v1896_v20  ;;  %v2103_v26 = vadd.f32 %v4808_v32, %v1897_v45  ;;  %v6514_v45 = vld [vmem:[#allocation15_spill] sm:$0xff] }
 0x193   : > { %2309 = vst [vmem:[%s4850_s23 + $0x118] sm:$0xff] %v2117_v0  ;;  %v1431_v17 = vmul.f32 %v4932_v59, %v4893_v47  ;;  %v2104_v34 = vadd.f32 %v4813_v18, %v1898_v31  ;;  %v2105_v35 = vadd.f32 %v4815_v24, %v1899_v49  ;;  %v1365_v57 = vmul.f32 %v2678_v12, %v1364_v10  ;;  %v6515_v49 = vld [vmem:[#allocation18_spill] sm:$0xff]  ;;  %v6517_v10 = vld [vmem:[#allocation13_spill] sm:$0xff] }
 0x194   : > { %2292 = vst [vmem:[%s4850_s23 + $0x90] sm:$0xff] %v2100_v28  ;;  %vm1436_vm0 = vweird.f32 %v4893_v47  ;;  %vm1437_vm1 = vweird.f32 %v4932_v59  ;;  %v4956_v55 = vadd.f32 1e-05, %v1292_v56  ;;  %v1297_v62 = vmul.f32 %v1145_v40, %v3582_v61 }
 0x195   : > { %2293 = vst [vmem:[%s4850_s23 + $0x98] sm:$0xff] %v2101_v39  ;;  %v1432_v21 = vmul.f32 %v4932_v59, %v1431_v17  ;;  %v1369_v46 = vsel %vm1368_vm15, %v2678_v12, %v1365_v57  ;;  %v4960_v43 = vadd.f32 1e-05, %v1290_v52  ;;  %v1295_v51 = vmul.f32 %v1131_v63, %v3582_v61  ;;  %v1117_v33 = vpop.xlane.xlu0 %1116  ;;  %vm1438_vm2 = vmor %vm1436_vm0, %vm1437_vm1 }
 0x196   : > { %2294 = vst [vmem:[%s4850_s23 + $0xa0] sm:$0xff] %v2102_v50  ;;  %v1676_v41 = vmul.f32 %v1369_v46, %v3736_v54  ;;  %v1677_v15 = vmul.f32 %v1369_v46, %v3739_v22  ;;  %v1678_v38 = vmul.f32 %v1369_v46, %v3742_v30  ;;  %v1679_v42 = vmul.f32 %v1369_v46, %v3745_v37 }
 0x197   : > { %2295 = vst [vmem:[%s4850_s23 + $0xa8] sm:$0xff] %v2103_v26  ;;  %v1433_v11 = vmul.f32 0.5, %v1432_v21  ;;  %v1680_v19 = vmul.f32 %v1369_v46, %v3748_v9  ;;  %v1681_v8 = vmul.f32 %v1369_v46, %v3762_v53  ;;  %2681 = vrsqrt.f32 %v4956_v55  ;;  %v6516_v26 = vld [vmem:[#allocation12_spill] sm:$0xff]  ;;  %v1166_v46 = vpop.xlane.xlu1 %1165 }
 0x198   : > { %2296 = vst [vmem:[%s4850_s23 + $0xb0] sm:$0xff] %v2104_v34  ;;  %v1882_v44 = vmul.f32 %v4785_v58, %v1676_v41  ;;  %v1883_v0 = vmul.f32 %v4787_v60, %v1677_v15  ;;  %v1884_v54 = vmul.f32 %v4790_v36, %v1678_v38  ;;  %v1885_v22 = vmul.f32 %v4792_v27, %v1679_v42 }
 0x199   : > { %2297 = vst [vmem:[%s4850_s23 + $0xb8] sm:$0xff] %v2105_v35  ;;  %v1434_v12 = vsub.f32 1.5, %v1433_v11  ;;  %v1886_v30 = vmul.f32 %v4794_v7, %v1680_v19  ;;  %v1887_v37 = vmul.f32 %v4796_v16, %v1681_v8  ;;  %v4979_v53 = vadd.f32 1e-05, %v1297_v62  ;;  %v1152_v11 = vpop.xlane.xlu2 %1151 }
 0x19a   : > { %v2088_v1 = vadd.f32 %v4798_v48, %v1882_v44  ;;  %v2089_v3 = vadd.f32 %v4802_v29, %v1883_v0  ;;  %v2090_v2 = vadd.f32 %v4806_v6, %v1884_v54  ;;  %v4988_v14 = vadd.f32 1e-05, %v1295_v51 }
 0x19b   : > { %v1435_v9 = vmul.f32 %v4932_v59, %v1434_v12  ;;  %v2091_v4 = vadd.f32 %v4808_v32, %v1885_v22  ;;  %v2092_v13 = vadd.f32 %v4813_v18, %v1886_v30  ;;  %2683 = vrsqrt.f32 %v4960_v43 }
 0x19c   : > { %2280 = vst [vmem:[%s4850_s23 + $0x30] sm:$0xff] %v2088_v1  ;;  %v2093_v50 = vadd.f32 %v4815_v24, %v1887_v37  ;;  %2685 = vrsqrt.f32 %v4979_v53  ;;  %v1293_v35 = vmul.f32 %v1117_v33, %v3582_v61  ;;  %v1300_v0 = vmul.f32 %v1166_v46, %v3582_v61 }
 0x19d   : > { %v1439_v20 = vsel %vm1438_vm2, %v4932_v59, %v1435_v9  ;;  %v4999_v39 = vpop.eup %2681  ;;  %2281 = vst [vmem:[%s4850_s23 + $0x38] sm:$0xff] %v2089_v3  ;;  %v1138_v38 = vpop.xlane.xlu0 %1137  ;;  %2687 = vrsqrt.f32 %v4988_v14  ;;  %v1298_v54 = vmul.f32 %v1152_v11, %v3582_v61  ;;  %vm1416_vm3 = vweird.f32 %v4956_v55 }
 0x19e   : > { %v1718_v31 = vmul.f32 %v1439_v20, %v6514_v45  ;;  %v1719_v5 = vmul.f32 %v1439_v20, %v6515_v49  ;;  %v1720_v47 = vmul.f32 %v1439_v20, %v3777_v23  ;;  %v1721_v28 = vmul.f32 %v1439_v20, %v3780_v25  ;;  %2282 = vst [vmem:[%s4850_s23 + $0x40] sm:$0xff] %v2090_v2 }
 0x19f   : > { %v1722_v59 = vmul.f32 %v1439_v20, %v6516_v26  ;;  %v1723_v17 = vmul.f32 %v1439_v20, %v6517_v10  ;;  %2283 = vst [vmem:[%s4850_s23 + $0x48] sm:$0xff] %v2091_v4  ;;  %v1411_v63 = vmul.f32 %v4999_v39, %v4956_v55  ;;  %v5035_v44 = vadd.f32 1e-05, %v1293_v35  ;;  %v6519_v26 = vld [vmem:[#allocation16_spill] sm:$0xff] }
 0x1a0   : > { %v1924_v40 = vmul.f32 %v4785_v58, %v1718_v31  ;;  %v1925_v23 = vmul.f32 %v4787_v60, %v1719_v5  ;;  %v1926_v25 = vmul.f32 %v4790_v36, %v1720_v47  ;;  %v1927_v34 = vmul.f32 %v4792_v27, %v1721_v28  ;;  %2284 = vst [vmem:[%s4850_s23 + $0x50] sm:$0xff] %v2092_v13  ;;  %v6518_v28 = vld [vmem:[#allocation14_spill] sm:$0xff] }
 0x1a1   : > { %v1928_v56 = vmul.f32 %v4794_v7, %v1722_v59  ;;  %v1929_v52 = vmul.f32 %v4796_v16, %v1723_v17  ;;  %v5021_v51 = vpop.eup %2683  ;;  %2285 = vst [vmem:[%s4850_s23 + $0x58] sm:$0xff] %v2093_v50  ;;  %v1412_v15 = vmul.f32 %v4999_v39, %v1411_v63  ;;  %v1296_v37 = vmul.f32 %v1138_v38, %v3582_v61  ;;  %v6520_v59 = vld [vmem:[#allocation19_spill] sm:$0xff]  ;;  %v6521_v17 = vld [vmem:[#allocation28_spill] sm:$0xff] }
 0x1a2   : > { %v2130_v57 = vadd.f32 %v4798_v48, %v1924_v40  ;;  %v2131_v21 = vadd.f32 %v4802_v29, %v1925_v23  ;;  %v2132_v62 = vadd.f32 %v4806_v6, %v1926_v25  ;;  %v2133_v41 = vadd.f32 %v4808_v32, %v1927_v34  ;;  %v5032_v12 = vpop.eup %2685  ;;  %v6522_v25 = vld [vmem:[#allocation21_spill] sm:$0xff] }
 0x1a3   : > { %v2134_v42 = vadd.f32 %v4813_v18, %v1928_v56  ;;  %v2135_v19 = vadd.f32 %v4815_v24, %v1929_v52  ;;  %v1391_v8 = vmul.f32 %v5021_v51, %v4960_v43  ;;  %v1413_v33 = vmul.f32 0.5, %v1412_v15  ;;  %v5061_v45 = vpop.eup %2687 }
 0x1a4   : > { %2322 = vst [vmem:[%s4850_s23 + $0x180] sm:$0xff] %v2130_v57  ;;  %v1461_v30 = vmul.f32 %v5032_v12, %v4979_v53  ;;  %vm1417_vm4 = vweird.f32 %v4999_v39  ;;  %2689 = vrsqrt.f32 %v5035_v44  ;;  %v5048_v1 = vadd.f32 1e-05, %v1300_v0 }
 0x1a5   : > { %2323 = vst [vmem:[%s4850_s23 + $0x188] sm:$0xff] %v2131_v21  ;;  %v1392_v22 = vmul.f32 %v5021_v51, %v1391_v8  ;;  %v1414_v9 = vsub.f32 1.5, %v1413_v33  ;;  %v5052_v4 = vadd.f32 1e-05, %v1298_v54  ;;  %v5054_v13 = vadd.f32 1e-05, %v1296_v37  ;;  %vm1418_vm7 = vmor %vm1416_vm3, %vm1417_vm4 }
 0x1a6   : > { %2324 = vst [vmem:[%s4850_s23 + $0x190] sm:$0xff] %v2132_v62  ;;  %v1462_v2 = vmul.f32 %v5032_v12, %v1461_v30  ;;  %vm1396_vm5 = vweird.f32 %v4960_v43  ;;  %vm1466_vm6 = vweird.f32 %v4979_v53  ;;  %2691 = vrsqrt.f32 %v5048_v1  ;;  %v6525_v37 = vld [vmem:[#allocation59_spill] sm:$0xff] }
 0x1a7   : > { %2325 = vst [vmem:[%s4850_s23 + $0x198] sm:$0xff] %v2133_v41  ;;  %v1393_v3 = vmul.f32 0.5, %v1392_v22  ;;  %v1415_v20 = vmul.f32 %v4999_v39, %v1414_v9  ;;  %vm1397_vm8 = vweird.f32 %v5021_v51  ;;  %2693 = vrsqrt.f32 %v5052_v4  ;;  %v6524_v22 = vld [vmem:[#allocation58_spill] sm:$0xff] }
 0x1a8   : > { %2326 = vst [vmem:[%s4850_s23 + $0x1a0] sm:$0xff] %v2134_v42  ;;  %v1463_v49 = vmul.f32 0.5, %v1462_v2  ;;  %vm1467_vm9 = vweird.f32 %v5032_v12  ;;  %v1441_v47 = vmul.f32 %v5061_v45, %v4988_v14  ;;  %2695 = vrsqrt.f32 %v5054_v13  ;;  %vm1398_vm10 = vmor %vm1396_vm5, %vm1397_vm8 }
 0x1a9   : > { %2327 = vst [vmem:[%s4850_s23 + $0x1a8] sm:$0xff] %v2135_v19  ;;  %v1394_v31 = vsub.f32 1.5, %v1393_v3  ;;  %v1419_v5 = vsel %vm1418_vm7, %v4999_v39, %v1415_v20  ;;  %v6523_v39 = vld [vmem:[#allocation22_spill] sm:$0xff]  ;;  %v6526_v3 = vld [vmem:[#allocation60_spill] sm:$0xff]  ;;  %v6527_v20 = vld [vmem:[#allocation61_spill] sm:$0xff]  ;;  %vm1446_vm12 = vweird.f32 %v4988_v14  ;;  %vm1447_vm13 = vweird.f32 %v5061_v45 }
 0x1aa   : > { %v1706_v50 = vmul.f32 %v1419_v5, %v6518_v28  ;;  %v1707_v55 = vmul.f32 %v1419_v5, %v6519_v26  ;;  %v1708_v10 = vmul.f32 %v1419_v5, %v6520_v59  ;;  %v1709_v40 = vmul.f32 %v1419_v5, %v6521_v17  ;;  %v5076_v23 = vpop.eup %2689  ;;  %v6529_v28 = vld [vmem:[#allocation63_spill] sm:$0xff]  ;;  %vm1468_vm11 = vmor %vm1466_vm6, %vm1467_vm9  ;;  %v6536_v14 = vld [vmem:[#allocation24_spill] sm:$0xff] }
 0x1ab   : > { %v1710_v34 = vmul.f32 %v1419_v5, %v6522_v25  ;;  %v1711_v56 = vmul.f32 %v1419_v5, %v6523_v39  ;;  %v1395_v52 = vmul.f32 %v5021_v51, %v1394_v31  ;;  %v1464_v63 = vsub.f32 1.5, %v1463_v49  ;;  %v6528_v49 = vld [vmem:[#allocation62_spill] sm:$0xff]  ;;  %v6530_v39 = vld [vmem:[#allocation23_spill] sm:$0xff]  ;;  %vm1448_vm0 = vmor %vm1446_vm12, %vm1447_vm13 }
 0x1ac   : > { %v1912_v35 = vmul.f32 %v4785_v58, %v1706_v50  ;;  %v1913_v57 = vmul.f32 %v4787_v60, %v1707_v55  ;;  %v1914_v21 = vmul.f32 %v4790_v36, %v1708_v10  ;;  %v1915_v62 = vmul.f32 %v4792_v27, %v1709_v40  ;;  %v5089_v46 = vpop.eup %2691 }
 0x1ad   : > { %v1916_v11 = vmul.f32 %v4794_v7, %v1710_v34  ;;  %v1917_v41 = vmul.f32 %v4796_v16, %v1711_v56  ;;  %v1399_v15 = vsel %vm1398_vm10, %v5021_v51, %v1395_v52  ;;  %v1465_v38 = vmul.f32 %v5032_v12, %v1464_v63  ;;  %v5095_v42 = vpop.eup %2693  ;;  %v6531_v56 = vld [vmem:[#allocation25_spill] sm:$0xff] }
 0x1ae   : > { %v2118_v19 = vadd.f32 %v4798_v48, %v1912_v35  ;;  %v2119_v8 = vadd.f32 %v4802_v29, %v1913_v57  ;;  %v2120_v43 = vadd.f32 %v4806_v6, %v1914_v21  ;;  %v2121_v33 = vadd.f32 %v4808_v32, %v1915_v62  ;;  %v5101_v0 = vpop.eup %2695  ;;  %v6532_v62 = vld [vmem:[#allocation29_spill] sm:$0xff] }
 0x1af   : > { %v2122_v54 = vadd.f32 %v4813_v18, %v1916_v11  ;;  %v2123_v51 = vadd.f32 %v4815_v24, %v1917_v41  ;;  %v1694_v30 = vmul.f32 %v1399_v15, %v6524_v22  ;;  %v1695_v9 = vmul.f32 %v1399_v15, %v6525_v37  ;;  %v6533_v41 = vld [vmem:[#allocation36_spill] sm:$0xff] }
 0x1b0   : > { %2310 = vst [vmem:[%s4850_s23 + $0x120] sm:$0xff] %v2118_v19  ;;  %v1696_v2 = vmul.f32 %v1399_v15, %v6526_v3  ;;  %v1697_v31 = vmul.f32 %v1399_v15, %v6527_v20  ;;  %v1698_v5 = vmul.f32 %v1399_v15, %v6528_v49  ;;  %v1699_v50 = vmul.f32 %v1399_v15, %v6529_v28 }
 0x1b1   : > { %2311 = vst [vmem:[%s4850_s23 + $0x128] sm:$0xff] %v2119_v8  ;;  %v1900_v26 = vmul.f32 %v4785_v58, %v1694_v30  ;;  %v1901_v55 = vmul.f32 %v4787_v60, %v1695_v9  ;;  %v1469_v59 = vsel %vm1468_vm11, %v5032_v12, %v1465_v38  ;;  %v1442_v10 = vmul.f32 %v5061_v45, %v1441_v47  ;;  %v6534_v38 = vld [vmem:[#allocation26_spill] sm:$0xff]  ;;  %v6535_v8 = vld [vmem:[#allocation27_spill] sm:$0xff] }
 0x1b2   : > { %2312 = vst [vmem:[%s4850_s23 + $0x130] sm:$0xff] %v2120_v43  ;;  %v1902_v17 = vmul.f32 %v4790_v36, %v1696_v2  ;;  %v1903_v40 = vmul.f32 %v4792_v27, %v1697_v31  ;;  %v1904_v25 = vmul.f32 %v4794_v7, %v1698_v5  ;;  %v1905_v53 = vmul.f32 %v4796_v16, %v1699_v50 }
 0x1b3   : > { %2313 = vst [vmem:[%s4850_s23 + $0x138] sm:$0xff] %v2121_v33  ;;  %v2106_v34 = vadd.f32 %v4798_v48, %v1900_v26  ;;  %v2107_v12 = vadd.f32 %v4802_v29, %v1901_v55  ;;  %v1736_v47 = vmul.f32 %v1469_v59, %v6530_v39  ;;  %v1737_v52 = vmul.f32 %v1469_v59, %v6531_v56  ;;  %v6537_v39 = vld [vmem:[#allocation31_spill] sm:$0xff]  ;;  %v6538_v56 = vld [vmem:[#allocation33_spill] sm:$0xff] }
 0x1b4   : > { %2314 = vst [vmem:[%s4850_s23 + $0x140] sm:$0xff] %v2122_v54  ;;  %v2108_v63 = vadd.f32 %v4806_v6, %v1902_v17  ;;  %v2109_v35 = vadd.f32 %v4808_v32, %v1903_v40  ;;  %v2110_v57 = vadd.f32 %v4813_v18, %v1904_v25  ;;  %v2111_v21 = vadd.f32 %v4815_v24, %v1905_v53 }
 0x1b5   : > { %2315 = vst [vmem:[%s4850_s23 + $0x148] sm:$0xff] %v2123_v51  ;;  %v1738_v11 = vmul.f32 %v1469_v59, %v6532_v62  ;;  %v1739_v15 = vmul.f32 %v1469_v59, %v6533_v41  ;;  %v1740_v19 = vmul.f32 %v1469_v59, %v6534_v38  ;;  %v1741_v43 = vmul.f32 %v1469_v59, %v6535_v8 }
 0x1b6   : > { %2298 = vst [vmem:[%s4850_s23 + $0xc0] sm:$0xff] %v2106_v34  ;;  %v1942_v33 = vmul.f32 %v4785_v58, %v1736_v47  ;;  %v1943_v54 = vmul.f32 %v4787_v60, %v1737_v52  ;;  %v1443_v22 = vmul.f32 0.5, %v1442_v10  ;;  %v1421_v30 = vmul.f32 %v5076_v23, %v5035_v44 }
 0x1b7   : > { %2299 = vst [vmem:[%s4850_s23 + $0xc8] sm:$0xff] %v2107_v12  ;;  %v1944_v51 = vmul.f32 %v4790_v36, %v1738_v11  ;;  %v1945_v37 = vmul.f32 %v4792_v27, %v1739_v15  ;;  %v1946_v9 = vmul.f32 %v4794_v7, %v1740_v19  ;;  %v1947_v3 = vmul.f32 %v4796_v16, %v1741_v43 }
 0x1b8   : > { %2300 = vst [vmem:[%s4850_s23 + $0xd0] sm:$0xff] %v2108_v63  ;;  %v2148_v2 = vadd.f32 %v4798_v48, %v1942_v33  ;;  %v1444_v20 = vsub.f32 1.5, %v1443_v22  ;;  %v1422_v31 = vmul.f32 %v5076_v23, %v1421_v30  ;;  %v2149_v49 = vadd.f32 %v4802_v29, %v1943_v54  ;;  %v6539_v63 = vld [vmem:[#allocation34_spill] sm:$0xff] }
 0x1b9   : > { %2301 = vst [vmem:[%s4850_s23 + $0xd8] sm:$0xff] %v2109_v35  ;;  %v2150_v5 = vadd.f32 %v4806_v6, %v1944_v51  ;;  %v2151_v28 = vadd.f32 %v4808_v32, %v1945_v37  ;;  %vm1426_vm14 = vweird.f32 %v5035_v44  ;;  %v2152_v50 = vadd.f32 %v4813_v18, %v1946_v9 }
 0x1ba   : > { %2302 = vst [vmem:[%s4850_s23 + $0xe0] sm:$0xff] %v2110_v57  ;;  %v1445_v26 = vmul.f32 %v5061_v45, %v1444_v20  ;;  %v1423_v55 = vmul.f32 0.5, %v1422_v31  ;;  %v1491_v59 = vmul.f32 %v5089_v46, %v5048_v1  ;;  %vm1496_vm15 = vweird.f32 %v5048_v1  ;;  %v6540_v57 = vld [vmem:[#allocation35_spill] sm:$0xff]  ;;  %v6543_v20 = vld [vmem:[#allocation32_spill] sm:$0xff] }
 0x1bb   : > { %2303 = vst [vmem:[%s4850_s23 + $0xe8] sm:$0xff] %v2111_v21  ;;  %v2153_v10 = vadd.f32 %v4815_v24, %v1947_v3  ;;  %vm1427_vm1 = vweird.f32 %v5076_v23  ;;  %vm1497_vm2 = vweird.f32 %v5089_v46  ;;  %v1471_v17 = vmul.f32 %v5095_v42, %v5052_v4  ;;  %v6541_v21 = vld [vmem:[#allocation38_spill] sm:$0xff] }
 0x1bc   : > { %2340 = vst [vmem:[%s4850_s23 + $0x210] sm:$0xff] %v2148_v2  ;;  %v1449_v40 = vsel %vm1448_vm0, %v5061_v45, %v1445_v26  ;;  %v1424_v25 = vsub.f32 1.5, %v1423_v55  ;;  %v1492_v53 = vmul.f32 %v5089_v46, %v1491_v59  ;;  %v5182_v34 = vmul.f32 %v5101_v0, %v5054_v13  ;;  %vm1428_vm3 = vmor %vm1426_vm14, %vm1427_vm1  ;;  %v6542_v2 = vld [vmem:[#allocation30_spill] sm:$0xff]  ;;  %v6546_v26 = vld [vmem:[#allocation17_spill] sm:$0xff] }
 0x1bd   : > { %2341 = vst [vmem:[%s4850_s23 + $0x218] sm:$0xff] %v2149_v49  ;;  %v1724_v12 = vmul.f32 %v1449_v40, %v6536_v14  ;;  %v1725_v47 = vmul.f32 %v1449_v40, %v6537_v39  ;;  %v1726_v52 = vmul.f32 %v1449_v40, %v6538_v56  ;;  %v1727_v35 = vmul.f32 %v1449_v40, %v6539_v63  ;;  %v6544_v49 = vld [vmem:[#allocation37_spill] sm:$0xff]  ;;  %v6547_v59 = vld [vmem:[#allocation20_spill] sm:$0xff]  ;;  %vm1498_vm6 = vmor %vm1496_vm15, %vm1497_vm2 }
 0x1be   : > { %2342 = vst [vmem:[%s4850_s23 + $0x220] sm:$0xff] %v2150_v5  ;;  %v1728_v45 = vmul.f32 %v1449_v40, %v6540_v57  ;;  %v1729_v62 = vmul.f32 %v1449_v40, %v6541_v21  ;;  %v1425_v11 = vmul.f32 %v5076_v23, %v1424_v25  ;;  %v1493_v41 = vmul.f32 0.5, %v1492_v53 }
 0x1bf   : > { %2343 = vst [vmem:[%s4850_s23 + $0x228] sm:$0xff] %v2151_v28  ;;  %v1930_v15 = vmul.f32 %v4785_v58, %v1724_v12  ;;  %v1931_v38 = vmul.f32 %v4787_v60, %v1725_v47  ;;  %v1932_v19 = vmul.f32 %v4790_v36, %v1726_v52  ;;  %v1933_v8 = vmul.f32 %v4792_v27, %v1727_v35  ;;  %v6545_v28 = vld [vmem:[#allocation42_spill] sm:$0xff] }
 0x1c0   : > { %2344 = vst [vmem:[%s4850_s23 + $0x230] sm:$0xff] %v2152_v50  ;;  %v1934_v43 = vmul.f32 %v4794_v7, %v1728_v45  ;;  %v1935_v33 = vmul.f32 %v4796_v16, %v1729_v62  ;;  %v1429_v54 = vsel %vm1428_vm3, %v5076_v23, %v1425_v11  ;;  %v1494_v22 = vsub.f32 1.5, %v1493_v41  ;;  %v6548_v62 = vld [vmem:[#allocation43_spill] sm:$0xff]  ;;  %v6549_v41 = vld [vmem:[#allocation46_spill] sm:$0xff] }
 0x1c1   : > { %2345 = vst [vmem:[%s4850_s23 + $0x238] sm:$0xff] %v2153_v10  ;;  %v2136_v30 = vadd.f32 %v4798_v48, %v1930_v15  ;;  %v2137_v51 = vadd.f32 %v4802_v29, %v1931_v38  ;;  %v2138_v37 = vadd.f32 %v4806_v6, %v1932_v19  ;;  %v2139_v44 = vadd.f32 %v4808_v32, %v1933_v8  ;;  %v6551_v19 = vld [vmem:[#allocation40_spill] sm:$0xff] }
 0x1c2   : > { %vm1477_vm4 = vweird.f32 %v5095_v42  ;;  %v2140_v9 = vadd.f32 %v4813_v18, %v1934_v43  ;;  %v2141_v3 = vadd.f32 %v4815_v24, %v1935_v33  ;;  %v1712_v23 = vmul.f32 %v1429_v54, %v6542_v2  ;;  %v6552_v43 = vld [vmem:[#allocation41_spill] sm:$0xff] }
 0x1c3   : > { %v1713_v31 = vmul.f32 %v1429_v54, %v6543_v20  ;;  %2328 = vst [vmem:[%s4850_s23 + $0x1b0] sm:$0xff] %v2136_v30  ;;  %v1714_v5 = vmul.f32 %v1429_v54, %v6544_v49  ;;  %v1715_v50 = vmul.f32 %v1429_v54, %v6545_v28  ;;  %v1716_v55 = vmul.f32 %v1429_v54, %v6546_v26 }
 0x1c4   : > { %v1717_v10 = vmul.f32 %v1429_v54, %v6547_v59  ;;  %vm1476_vm5 = vweird.f32 %v5052_v4  ;;  %2329 = vst [vmem:[%s4850_s23 + $0x1b8] sm:$0xff] %v2137_v51  ;;  %v1918_v40 = vmul.f32 %v4785_v58, %v1712_v23  ;;  %v1495_v53 = vmul.f32 %v5089_v46, %v1494_v22  ;;  %v6553_v54 = vld [vmem:[#allocation44_spill] sm:$0xff] }
 0x1c5   : > { %v1919_v25 = vmul.f32 %v4787_v60, %v1713_v31  ;;  %v1472_v14 = vmul.f32 %v5095_v42, %v1471_v17  ;;  %2330 = vst [vmem:[%s4850_s23 + $0x1c0] sm:$0xff] %v2138_v37  ;;  %v1920_v12 = vmul.f32 %v4790_v36, %v1714_v5  ;;  %v1921_v39 = vmul.f32 %v4792_v27, %v1715_v50  ;;  %v1187_v37 = vpop.xlane.xlu1 %1186  ;;  %vm1478_vm8 = vmor %vm1476_vm5, %vm1477_vm4  ;;  %v6557_v4 = vld [vmem:[#allocation48_spill] sm:$0xff] }
 0x1c6   : > { %v1922_v47 = vmul.f32 %v4794_v7, %v1716_v55  ;;  %v1923_v56 = vmul.f32 %v4796_v16, %v1717_v10  ;;  %2331 = vst [vmem:[%s4850_s23 + $0x1c8] sm:$0xff] %v2139_v44  ;;  %v2124_v52 = vadd.f32 %v4798_v48, %v1918_v40  ;;  %v1499_v63 = vsel %vm1498_vm6, %v5089_v46, %v1495_v53  ;;  %v6550_v46 = vld [vmem:[#allocation39_spill] sm:$0xff]  ;;  %v5256_v44 = vpop.xlane.xlu2 %1172 }
 0x1c7   : > { %v2125_v17 = vadd.f32 %v4802_v29, %v1919_v25  ;;  %v1473_v35 = vmul.f32 0.5, %v1472_v14  ;;  %2332 = vst [vmem:[%s4850_s23 + $0x1d0] sm:$0xff] %v2140_v9  ;;  %v2126_v57 = vadd.f32 %v4806_v6, %v1920_v12  ;;  %v2127_v45 = vadd.f32 %v4808_v32, %v1921_v39  ;;  %v1159_v25 = vpop.xlane.xlu0 %1158  ;;  %v6554_v53 = vld [vmem:[#allocation67_spill] sm:$0xff]  ;;  %v6555_v12 = vld [vmem:[#allocation68_spill] sm:$0xff] }
 0x1c8   : > { %v2128_v21 = vadd.f32 %v4813_v18, %v1922_v47  ;;  %v2129_v1 = vadd.f32 %v4815_v24, %v1923_v56  ;;  %vm1456_vm7 = vweird.f32 %v5054_v13  ;;  %2333 = vst [vmem:[%s4850_s23 + $0x1d8] sm:$0xff] %v2141_v3  ;;  %v1754_v11 = vmul.f32 %v1499_v63, %v6548_v62  ;;  %v6556_v47 = vld [vmem:[#allocation69_spill] sm:$0xff] }
 0x1c9   : > { %v1755_v15 = vmul.f32 %v1499_v63, %v6549_v41  ;;  %v1756_v38 = vmul.f32 %v1499_v63, %v6550_v46  ;;  %v1757_v8 = vmul.f32 %v1499_v63, %v6551_v19  ;;  %2316 = vst [vmem:[%s4850_s23 + $0x150] sm:$0xff] %v2124_v52  ;;  %v1758_v33 = vmul.f32 %v1499_v63, %v6552_v43 }
 0x1ca   : > { %v1759_v22 = vmul.f32 %v1499_v63, %v6553_v54  ;;  %v1474_v30 = vsub.f32 1.5, %v1473_v35  ;;  %v1452_v51 = vmul.f32 %v5101_v0, %v5182_v34  ;;  %2317 = vst [vmem:[%s4850_s23 + $0x158] sm:$0xff] %v2125_v17  ;;  %v1960_v9 = vmul.f32 %v4785_v58, %v1754_v11  ;;  %v6558_v17 = vld [vmem:[#allocation50_spill] sm:$0xff]  ;;  %v6559_v35 = vld [vmem:[#allocation52_spill] sm:$0xff]  ;;  %v6561_v54 = vld [vmem:[#allocation49_spill] sm:$0xff] }
 0x1cb   : > { %v1961_v3 = vmul.f32 %v4787_v60, %v1755_v15  ;;  %v1962_v2 = vmul.f32 %v4790_v36, %v1756_v38  ;;  %v1963_v23 = vmul.f32 %v4792_v27, %v1757_v8  ;;  %2318 = vst [vmem:[%s4850_s23 + $0x160] sm:$0xff] %v2126_v57  ;;  %v1964_v20 = vmul.f32 %v4794_v7, %v1758_v33  ;;  %v6560_v33 = vld [vmem:[#allocation47_spill] sm:$0xff] }
 0x1cc   : > { %v1965_v31 = vmul.f32 %v4796_v16, %v1759_v22  ;;  %v1475_v34 = vmul.f32 %v5095_v42, %v1474_v30  ;;  %v1453_v49 = vmul.f32 0.5, %v1452_v51  ;;  %2319 = vst [vmem:[%s4850_s23 + $0x168] sm:$0xff] %v2127_v45  ;;  %v2166_v5 = vadd.f32 %v4798_v48, %v1960_v9 }
 0x1cd   : > { %v2167_v28 = vadd.f32 %v4802_v29, %v1961_v3  ;;  %v2168_v50 = vadd.f32 %v4806_v6, %v1962_v2  ;;  %v2169_v26 = vadd.f32 %v4808_v32, %v1963_v23  ;;  %2320 = vst [vmem:[%s4850_s23 + $0x170] sm:$0xff] %v2128_v21  ;;  %v2170_v55 = vadd.f32 %v4813_v18, %v1964_v20  ;;  %v1208_v30 = vpop.xlane.xlu1 %1207  ;;  %v6563_v3 = vld [vmem:[#allocation65_spill] sm:$0xff]  ;;  %v6564_v23 = vld [vmem:[#allocation66_spill] sm:$0xff] }
 0x1ce   : > { %v2171_v59 = vadd.f32 %v4815_v24, %v1965_v31  ;;  %v1479_v10 = vsel %vm1478_vm8, %v5095_v42, %v1475_v34  ;;  %v1454_v40 = vsub.f32 1.5, %v1453_v49  ;;  %2321 = vst [vmem:[%s4850_s23 + $0x178] sm:$0xff] %v2129_v1  ;;  %vm1457_vm9 = vweird.f32 %v5101_v0  ;;  %v1194_v51 = vpop.xlane.xlu2 %1193  ;;  %v6565_v31 = vld [vmem:[#allocation45_spill] sm:$0xff] }
 0x1cf   : > { %v1742_v14 = vmul.f32 %v1479_v10, %v6554_v53  ;;  %v1743_v39 = vmul.f32 %v1479_v10, %v6555_v12  ;;  %v1744_v56 = vmul.f32 %v1479_v10, %v6556_v47  ;;  %v1745_v52 = vmul.f32 %v1479_v10, %v6557_v4  ;;  %2358 = vst [vmem:[%s4850_s23 + $0x2a0] sm:$0xff] %v2166_v5  ;;  %vm1458_vm10 = vmor %vm1456_vm7, %vm1457_vm9  ;;  %v1180_v53 = vpop.xlane.xlu0 %1179 }
 0x1d0   : > { %v1746_v63 = vmul.f32 %v1479_v10, %v6558_v17  ;;  %v1747_v57 = vmul.f32 %v1479_v10, %v6559_v35  ;;  %v1455_v42 = vmul.f32 %v5101_v0, %v1454_v40  ;;  %2359 = vst [vmem:[%s4850_s23 + $0x2a8] sm:$0xff] %v2167_v28  ;;  %v1303_v15 = vmul.f32 %v1187_v37, %v3582_v61  ;;  %v6562_v37 = vld [vmem:[#allocation64_spill] sm:$0xff] }
 0x1d1   : > { %v1948_v45 = vmul.f32 %v4785_v58, %v1742_v14  ;;  %v1949_v21 = vmul.f32 %v4787_v60, %v1743_v39  ;;  %v1950_v1 = vmul.f32 %v4790_v36, %v1744_v56  ;;  %v1951_v62 = vmul.f32 %v4792_v27, %v1745_v52  ;;  %2360 = vst [vmem:[%s4850_s23 + $0x2b0] sm:$0xff] %v2168_v50 }
 0x1d2   : > { %v1952_v11 = vmul.f32 %v4794_v7, %v1746_v63  ;;  %v1459_v41 = vsel %vm1458_vm10, %v5101_v0, %v1455_v42  ;;  %2361 = vst [vmem:[%s4850_s23 + $0x2b8] sm:$0xff] %v2169_v26  ;;  %v1953_v46 = vmul.f32 %v4796_v16, %v1747_v57  ;;  %v5319_v28 = vadd.f32 1e-05, %v1303_v15 }
 0x1d3   : > { %v2154_v38 = vadd.f32 %v4798_v48, %v1948_v45  ;;  %v2155_v19 = vadd.f32 %v4802_v29, %v1949_v21  ;;  %v2156_v8 = vadd.f32 %v4806_v6, %v1950_v1  ;;  %2362 = vst [vmem:[%s4850_s23 + $0x2c0] sm:$0xff] %v2170_v55  ;;  %v2157_v13 = vadd.f32 %v4808_v32, %v1951_v62 }
 0x1d4   : > { %v2158_v43 = vadd.f32 %v4813_v18, %v1952_v11  ;;  %v1730_v0 = vmul.f32 %v1459_v41, %v6560_v33  ;;  %v1731_v22 = vmul.f32 %v1459_v41, %v6561_v54  ;;  %2363 = vst [vmem:[%s4850_s23 + $0x2c8] sm:$0xff] %v2171_v59  ;;  %v1732_v9 = vmul.f32 %v1459_v41, %v6562_v37 }
 0x1d5   : > { %v1733_v2 = vmul.f32 %v1459_v41, %v6563_v3  ;;  %v1734_v20 = vmul.f32 %v1459_v41, %v6564_v23  ;;  %v1735_v34 = vmul.f32 %v1459_v41, %v6565_v31  ;;  %2346 = vst [vmem:[%s4850_s23 + $0x240] sm:$0xff] %v2154_v38  ;;  %v1301_v50 = vmul.f32 %v5256_v44, %v3582_v61  ;;  %v1229_v1 = vpop.xlane.xlu1 %1228 }
 0x1d6   : > { %v1936_v49 = vmul.f32 %v4785_v58, %v1730_v0  ;;  %v1937_v5 = vmul.f32 %v4787_v60, %v1731_v22  ;;  %v2159_v26 = vadd.f32 %v4815_v24, %v1953_v46  ;;  %2347 = vst [vmem:[%s4850_s23 + $0x248] sm:$0xff] %v2155_v19  ;;  %v1938_v55 = vmul.f32 %v4790_v36, %v1732_v9  ;;  %v1215_v62 = vpop.xlane.xlu2 %1214 }
 0x1d7   : > { %v1939_v59 = vmul.f32 %v4792_v27, %v1733_v2  ;;  %2348 = vst [vmem:[%s4850_s23 + $0x250] sm:$0xff] %v2156_v8  ;;  %v1940_v10 = vmul.f32 %v4794_v7, %v1734_v20  ;;  %2697 = vrsqrt.f32 %v5319_v28  ;;  %v1941_v44 = vmul.f32 %v4796_v16, %v1735_v34  ;;  %v1201_v8 = vpop.xlane.xlu0 %1200 }
 0x1d8   : > { %v2142_v40 = vadd.f32 %v4798_v48, %v1936_v49  ;;  %2349 = vst [vmem:[%s4850_s23 + $0x258] sm:$0xff] %v2157_v13  ;;  %v2143_v14 = vadd.f32 %v4802_v29, %v1937_v5  ;;  %v2144_v12 = vadd.f32 %v4806_v6, %v1938_v55  ;;  %v5336_v39 = vadd.f32 1e-05, %v1301_v50 }
 0x1d9   : > { %2350 = vst [vmem:[%s4850_s23 + $0x260] sm:$0xff] %v2158_v43  ;;  %v1299_v47 = vmul.f32 %v1159_v25, %v3582_v61  ;;  %v1306_v56 = vmul.f32 %v1208_v30, %v3582_v61  ;;  %v1304_v4 = vmul.f32 %v1194_v51, %v3582_v61  ;;  %v2145_v52 = vadd.f32 %v4808_v32, %v1939_v59 }
 0x1da   : > { %2351 = vst [vmem:[%s4850_s23 + $0x268] sm:$0xff] %v2159_v26  ;;  %v1302_v17 = vmul.f32 %v1180_v53, %v3582_v61  ;;  %v2146_v63 = vadd.f32 %v4813_v18, %v1940_v10  ;;  %2699 = vrsqrt.f32 %v5336_v39  ;;  %v2147_v57 = vadd.f32 %v4815_v24, %v1941_v44 }
 0x1db   : > { %2334 = vst [vmem:[%s4850_s23 + $0x1e0] sm:$0xff] %v2142_v40  ;;  %v5347_v35 = vadd.f32 1e-05, %v1299_v47  ;;  %v5349_v25 = vadd.f32 1e-05, %v1306_v56  ;;  %v1309_v41 = vmul.f32 %v1229_v1, %v3582_v61  ;;  %v1307_v15 = vmul.f32 %v1215_v62, %v3582_v61  ;;  %v6566_v40 = vld [vmem:[#allocation70_spill] sm:$0xff] }
 0x1dc   : > { %2335 = vst [vmem:[%s4850_s23 + $0x1e8] sm:$0xff] %v2143_v14  ;;  %v5353_v42 = vadd.f32 1e-05, %v1304_v4  ;;  %v5355_v45 = vadd.f32 1e-05, %v1302_v17  ;;  %vm1526_vm11 = vweird.f32 %v5319_v28  ;;  %vm1506_vm12 = vweird.f32 %v5336_v39  ;;  %v6568_v14 = vld [vmem:[#allocation72_spill] sm:$0xff] }
 0x1dd   : > { %v2698_v21 = vpop.eup %2697  ;;  %2336 = vst [vmem:[%s4850_s23 + $0x1f0] sm:$0xff] %v2144_v12  ;;  %2701 = vrsqrt.f32 %v5347_v35  ;;  %v5368_v19 = vadd.f32 1e-05, %v1309_v41  ;;  %v5375_v0 = vadd.f32 1e-05, %v1307_v15  ;;  %v1305_v54 = vmul.f32 %v1201_v8, %v3582_v61  ;;  %v6569_v47 = vld [vmem:[#allocation51_spill] sm:$0xff] }
 0x1de   : > { %2337 = vst [vmem:[%s4850_s23 + $0x1f8] sm:$0xff] %v2145_v52  ;;  %v1521_v11 = vmul.f32 %v2698_v21, %v5319_v28  ;;  %2703 = vrsqrt.f32 %v5349_v25  ;;  %vm1527_vm13 = vweird.f32 %v2698_v21  ;;  %vm1486_vm0 = vweird.f32 %v5347_v35  ;;  %v6567_v28 = vld [vmem:[#allocation71_spill] sm:$0xff]  ;;  %v6570_v4 = vld [vmem:[#allocation53_spill] sm:$0xff]  ;;  %v6571_v17 = vld [vmem:[#allocation54_spill] sm:$0xff] }
 0x1df   : > { %2338 = vst [vmem:[%s4850_s23 + $0x200] sm:$0xff] %v2146_v63  ;;  %2705 = vrsqrt.f32 %v5353_v42  ;;  %vm1528_vm1 = vmor %vm1526_vm11, %vm1527_vm13  ;;  %v5402_v50 = vadd.f32 1e-05, %v1305_v54  ;;  %vm1556_vm3 = vweird.f32 %v5349_v25  ;;  %vm1536_vm7 = vweird.f32 %v5353_v42 }
 0x1e0   : > { %2339 = vst [vmem:[%s4850_s23 + $0x208] sm:$0xff] %v2147_v57  ;;  %v1522_v46 = vmul.f32 %v2698_v21, %v1521_v11  ;;  %2707 = vrsqrt.f32 %v5355_v45  ;;  %v2700_v38 = vpop.eup %2699  ;;  %vm1516_vm11 = vweird.f32 %v5355_v45  ;;  %vm1586_vm13 = vweird.f32 %v5368_v19 }
 0x1e1   : > { %v1501_v43 = vmul.f32 %v2700_v38, %v5336_v39  ;;  %vm1507_vm14 = vweird.f32 %v2700_v38  ;;  %2709 = vrsqrt.f32 %v5368_v19 }
 0x1e2   : > { %v1523_v13 = vmul.f32 0.5, %v1522_v46  ;;  %2711 = vrsqrt.f32 %v5375_v0  ;;  %vm1508_vm2 = vmor %vm1506_vm12, %vm1507_vm14 }
 0x1e3   : > { %v5371_v33 = vpop.eup %2701  ;;  %v1502_v51 = vmul.f32 %v2700_v38, %v1501_v43  ;;  %2713 = vrsqrt.f32 %v5402_v50 }
 0x1e4   : > { %v5378_v22 = vpop.eup %2703  ;;  %v1524_v30 = vsub.f32 1.5, %v1523_v13  ;;  %v1481_v37 = vmul.f32 %v5371_v33, %v5347_v35  ;;  %vm1487_vm15 = vweird.f32 %v5371_v33 }
 0x1e5   : > { %v5382_v9 = vpop.eup %2705  ;;  %v1551_v3 = vmul.f32 %v5378_v22, %v5349_v25  ;;  %v1503_v20 = vmul.f32 0.5, %v1502_v51  ;;  %vm1557_vm4 = vweird.f32 %v5378_v22  ;;  %vm1488_vm5 = vmor %vm1486_vm0, %vm1487_vm15 }
 0x1e6   : > { %v5388_v2 = vpop.eup %2707  ;;  %v1525_v23 = vmul.f32 %v2698_v21, %v1524_v30  ;;  %v1482_v31 = vmul.f32 %v5371_v33, %v1481_v37  ;;  %v1531_v34 = vmul.f32 %v5382_v9, %v5353_v42  ;;  %vm1537_vm6 = vweird.f32 %v5382_v9  ;;  %vm1558_vm8 = vmor %vm1556_vm3, %vm1557_vm4 }
 0x1e7   : > { %v1552_v49 = vmul.f32 %v5378_v22, %v1551_v3  ;;  %v5399_v5 = vmul.f32 %v5388_v2, %v5355_v45  ;;  %v1504_v55 = vsub.f32 1.5, %v1503_v20  ;;  %vm1517_vm9 = vweird.f32 %v5388_v2  ;;  %vm1538_vm10 = vmor %vm1536_vm7, %vm1537_vm6  ;;  %v6597_v45 = vld [vmem:[#allocation89_spill] sm:$0xff] }
 0x1e8   : > { %v1529_v26 = vsel %vm1528_vm1, %v2698_v21, %v1525_v23  ;;  %v1483_v59 = vmul.f32 0.5, %v1482_v31  ;;  %v5405_v10 = vmul.f32 %v5382_v9, %v1531_v34  ;;  %v5413_v21 = vpop.eup %2709  ;;  %v6572_v23 = vld [vmem:[#allocation79_spill] sm:$0xff]  ;;  %v6573_v31 = vld [vmem:[#allocation80_spill] sm:$0xff]  ;;  %vm1518_vm12 = vmor %vm1516_vm11, %vm1517_vm9  ;;  %vm1566_vm1 = vweird.f32 %v5375_v0 }
 0x1e9   : > { %v1772_v53 = vmul.f32 %v1529_v26, %v6566_v40  ;;  %v1773_v44 = vmul.f32 %v1529_v26, %v6567_v28  ;;  %v1774_v12 = vmul.f32 %v1529_v26, %v6568_v14  ;;  %v1775_v56 = vmul.f32 %v1529_v26, %v6569_v47  ;;  %v5425_v54 = vpop.eup %2711 }
 0x1ea   : > { %v1776_v52 = vmul.f32 %v1529_v26, %v6570_v4  ;;  %v1777_v63 = vmul.f32 %v1529_v26, %v6571_v17  ;;  %v1505_v57 = vmul.f32 %v2700_v38, %v1504_v55  ;;  %v1484_v1 = vsub.f32 1.5, %v1483_v59  ;;  %v6574_v26 = vld [vmem:[#allocation81_spill] sm:$0xff]  ;;  %v6575_v59 = vld [vmem:[#allocation82_spill] sm:$0xff] }
 0x1eb   : > { %v1978_v62 = vmul.f32 %v4785_v58, %v1772_v53  ;;  %v1979_v11 = vmul.f32 %v4787_v60, %v1773_v44  ;;  %v1980_v41 = vmul.f32 %v4790_v36, %v1774_v12  ;;  %v1981_v15 = vmul.f32 %v4792_v27, %v1775_v56  ;;  %v6576_v53 = vld [vmem:[#allocation55_spill] sm:$0xff]  ;;  %v6577_v44 = vld [vmem:[#allocation56_spill] sm:$0xff] }
 0x1ec   : > { %v1982_v46 = vmul.f32 %v4794_v7, %v1776_v52  ;;  %v1983_v8 = vmul.f32 %v4796_v16, %v1777_v63  ;;  %v1509_v13 = vsel %vm1508_vm2, %v2700_v38, %v1505_v57  ;;  %v1485_v43 = vmul.f32 %v5371_v33, %v1484_v1 }
 0x1ed   : > { %v2184_v30 = vadd.f32 %v4798_v48, %v1978_v62  ;;  %v2185_v51 = vadd.f32 %v4802_v29, %v1979_v11  ;;  %v2186_v37 = vadd.f32 %v4806_v6, %v1980_v41  ;;  %v2187_v39 = vadd.f32 %v4808_v32, %v1981_v15  ;;  %v6579_v62 = vld [vmem:[#allocation74_spill] sm:$0xff] }
 0x1ee   : > { %v2188_v3 = vadd.f32 %v4813_v18, %v1982_v46  ;;  %v2189_v38 = vadd.f32 %v4815_v24, %v1983_v8  ;;  %v1760_v20 = vmul.f32 %v1509_v13, %v6572_v23  ;;  %v1761_v34 = vmul.f32 %v1509_v13, %v6573_v31  ;;  %v6583_v23 = vld [vmem:[#allocation78_spill] sm:$0xff] }
 0x1ef   : > { %2376 = vst [vmem:[%s4850_s23 + $0x330] sm:$0xff] %v2184_v30  ;;  %v1762_v55 = vmul.f32 %v1509_v13, %v6574_v26  ;;  %v1763_v40 = vmul.f32 %v1509_v13, %v6575_v59  ;;  %v1764_v28 = vmul.f32 %v1509_v13, %v6576_v53  ;;  %v1765_v14 = vmul.f32 %v1509_v13, %v6577_v44  ;;  %v6580_v13 = vld [vmem:[#allocation75_spill] sm:$0xff]  ;;  %v6581_v30 = vld [vmem:[#allocation76_spill] sm:$0xff] }
 0x1f0   : > { %2377 = vst [vmem:[%s4850_s23 + $0x338] sm:$0xff] %v2185_v51  ;;  %v1966_v12 = vmul.f32 %v4785_v58, %v1760_v20  ;;  %v1967_v47 = vmul.f32 %v4787_v60, %v1761_v34  ;;  %v1489_v56 = vsel %vm1488_vm5, %v5371_v33, %v1485_v43  ;;  %v1553_v4 = vmul.f32 0.5, %v1552_v49  ;;  %v6578_v33 = vld [vmem:[#allocation73_spill] sm:$0xff] }
 0x1f1   : > { %2378 = vst [vmem:[%s4850_s23 + $0x340] sm:$0xff] %v2186_v37  ;;  %v1968_v52 = vmul.f32 %v4790_v36, %v1762_v55  ;;  %v1969_v17 = vmul.f32 %v4792_v27, %v1763_v40  ;;  %v1970_v35 = vmul.f32 %v4794_v7, %v1764_v28  ;;  %v1971_v63 = vmul.f32 %v4796_v16, %v1765_v14  ;;  %v6582_v37 = vld [vmem:[#allocation77_spill] sm:$0xff] }
 0x1f2   : > { %2379 = vst [vmem:[%s4850_s23 + $0x348] sm:$0xff] %v2187_v39  ;;  %v2172_v57 = vadd.f32 %v4798_v48, %v1966_v12  ;;  %v2173_v1 = vadd.f32 %v4802_v29, %v1967_v47  ;;  %v1748_v49 = vmul.f32 %v1489_v56, %v6578_v33  ;;  %v1749_v11 = vmul.f32 %v1489_v56, %v6579_v62  ;;  %v6586_v33 = vld [vmem:[#allocation85_spill] sm:$0xff] }
 0x1f3   : > { %2380 = vst [vmem:[%s4850_s23 + $0x350] sm:$0xff] %v2188_v3  ;;  %v2174_v41 = vadd.f32 %v4806_v6, %v1968_v52  ;;  %v2175_v15 = vadd.f32 %v4808_v32, %v1969_v17  ;;  %v2176_v46 = vadd.f32 %v4813_v18, %v1970_v35  ;;  %v2177_v8 = vadd.f32 %v4815_v24, %v1971_v63  ;;  %v6584_v63 = vld [vmem:[#allocation83_spill] sm:$0xff] }
 0x1f4   : > { %2381 = vst [vmem:[%s4850_s23 + $0x358] sm:$0xff] %v2189_v38  ;;  %v1750_v43 = vmul.f32 %v1489_v56, %v6580_v13  ;;  %v1751_v51 = vmul.f32 %v1489_v56, %v6581_v30  ;;  %v1752_v39 = vmul.f32 %v1489_v56, %v6582_v37  ;;  %v1753_v20 = vmul.f32 %v1489_v56, %v6583_v23  ;;  %v6591_v23 = vld [vmem:[#allocation95_spill] sm:$0xff] }
 0x1f5   : > { %2364 = vst [vmem:[%s4850_s23 + $0x2d0] sm:$0xff] %v2172_v57  ;;  %v1954_v3 = vmul.f32 %v4785_v58, %v1748_v49  ;;  %v1955_v31 = vmul.f32 %v4787_v60, %v1749_v11  ;;  %v1554_v34 = vsub.f32 1.5, %v1553_v4  ;;  %v1533_v26 = vmul.f32 0.5, %v5405_v10 }
 0x1f6   : > { %2365 = vst [vmem:[%s4850_s23 + $0x2d8] sm:$0xff] %v2173_v1  ;;  %v1956_v38 = vmul.f32 %v4790_v36, %v1750_v43  ;;  %v1957_v55 = vmul.f32 %v4792_v27, %v1751_v51  ;;  %v1958_v59 = vmul.f32 %v4794_v7, %v1752_v39  ;;  %v1959_v40 = vmul.f32 %v4796_v16, %v1753_v20  ;;  %v6585_v1 = vld [vmem:[#allocation84_spill] sm:$0xff] }
 0x1f7   : > { %2366 = vst [vmem:[%s4850_s23 + $0x2e0] sm:$0xff] %v2174_v41  ;;  %v2160_v53 = vadd.f32 %v4798_v48, %v1954_v3  ;;  %v2161_v28 = vadd.f32 %v4802_v29, %v1955_v31  ;;  %v1555_v44 = vmul.f32 %v5378_v22, %v1554_v34  ;;  %v1534_v14 = vsub.f32 1.5, %v1533_v26  ;;  %v6589_v41 = vld [vmem:[#allocation57_spill] sm:$0xff] }
 0x1f8   : > { %2367 = vst [vmem:[%s4850_s23 + $0x2e8] sm:$0xff] %v2175_v15  ;;  %v2162_v10 = vadd.f32 %v4806_v6, %v1956_v38  ;;  %v2163_v12 = vadd.f32 %v4808_v32, %v1957_v55  ;;  %v2164_v47 = vadd.f32 %v4813_v18, %v1958_v59  ;;  %v2165_v56 = vadd.f32 %v4815_v24, %v1959_v40  ;;  %v6592_v59 = vld [vmem:[#allocation96_spill] sm:$0xff] }
 0x1f9   : > { %2368 = vst [vmem:[%s4850_s23 + $0x2f0] sm:$0xff] %v2176_v46  ;;  %v1559_v4 = vsel %vm1558_vm8, %v5378_v22, %v1555_v44  ;;  %v1535_v52 = vmul.f32 %v5382_v9, %v1534_v14  ;;  %v1512_v17 = vmul.f32 %v5388_v2, %v5399_v5  ;;  %v1581_v35 = vmul.f32 %v5413_v21, %v5368_v19  ;;  %v6587_v22 = vld [vmem:[#allocation86_spill] sm:$0xff]  ;;  %v6588_v5 = vld [vmem:[#allocation87_spill] sm:$0xff] }
 0x1fa   : > { %2369 = vst [vmem:[%s4850_s23 + $0x2f8] sm:$0xff] %v2177_v8  ;;  %v1790_v57 = vmul.f32 %v1559_v4, %v6584_v63  ;;  %v1791_v25 = vmul.f32 %v1559_v4, %v6585_v1  ;;  %v1792_v49 = vmul.f32 %v1559_v4, %v6586_v33  ;;  %v1793_v62 = vmul.f32 %v1559_v4, %v6587_v22  ;;  %v6594_v44 = vld [vmem:[#allocation98_spill] sm:$0xff] }
 0x1fb   : > { %2352 = vst [vmem:[%s4850_s23 + $0x270] sm:$0xff] %v2160_v53  ;;  %v1794_v11 = vmul.f32 %v1559_v4, %v6588_v5  ;;  %v1795_v15 = vmul.f32 %v1559_v4, %v6589_v41  ;;  %v1539_v46 = vsel %vm1538_vm10, %v5382_v9, %v1535_v52  ;;  %v1513_v8 = vmul.f32 0.5, %v1512_v17  ;;  %v6590_v9 = vld [vmem:[#allocation94_spill] sm:$0xff]  ;;  %v6593_v53 = vld [vmem:[#allocation97_spill] sm:$0xff] }
 0x1fc   : > { %2353 = vst [vmem:[%s4850_s23 + $0x278] sm:$0xff] %v2161_v28  ;;  %v1996_v13 = vmul.f32 %v4785_v58, %v1790_v57  ;;  %v1997_v43 = vmul.f32 %v4787_v60, %v1791_v25  ;;  %v1998_v42 = vmul.f32 %v4790_v36, %v1792_v49  ;;  %v1999_v30 = vmul.f32 %v4792_v27, %v1793_v62 }
 0x1fd   : > { %2354 = vst [vmem:[%s4850_s23 + $0x280] sm:$0xff] %v2162_v10  ;;  %v2000_v51 = vmul.f32 %v4794_v7, %v1794_v11  ;;  %v2001_v37 = vmul.f32 %v4796_v16, %v1795_v15  ;;  %v1778_v39 = vmul.f32 %v1539_v46, %v6590_v9  ;;  %v1779_v20 = vmul.f32 %v1539_v46, %v6591_v23  ;;  %v6595_v10 = vld [vmem:[#allocation99_spill] sm:$0xff]  ;;  %v6600_v9 = vld [vmem:[#allocation92_spill] sm:$0xff] }
 0x1fe   : > { %2355 = vst [vmem:[%s4850_s23 + $0x288] sm:$0xff] %v2163_v12  ;;  %v2202_v3 = vadd.f32 %v4798_v48, %v1996_v13  ;;  %v2203_v31 = vadd.f32 %v4802_v29, %v1997_v43  ;;  %v2204_v34 = vadd.f32 %v4806_v6, %v1998_v42  ;;  %v2205_v26 = vadd.f32 %v4808_v32, %v1999_v30  ;;  %v6598_v42 = vld [vmem:[#allocation90_spill] sm:$0xff] }
 0x1ff   : > { %2356 = vst [vmem:[%s4850_s23 + $0x290] sm:$0xff] %v2164_v47  ;;  %v2206_v38 = vadd.f32 %v4813_v18, %v2000_v51  ;;  %v2207_v55 = vadd.f32 %v4815_v24, %v2001_v37  ;;  %v1780_v40 = vmul.f32 %v1539_v46, %v6592_v59  ;;  %v1781_v28 = vmul.f32 %v1539_v46, %v6593_v53  ;;  %v6599_v51 = vld [vmem:[#allocation91_spill] sm:$0xff] }
 0x200   : > { %2357 = vst [vmem:[%s4850_s23 + $0x298] sm:$0xff] %v2165_v56  ;;  %v1782_v14 = vmul.f32 %v1539_v46, %v6594_v44  ;;  %v1783_v12 = vmul.f32 %v1539_v46, %v6595_v10  ;;  %v1984_v4 = vmul.f32 %v4785_v58, %v1778_v39  ;;  %v1985_v52 = vmul.f32 %v4787_v60, %v1779_v20  ;;  %v6601_v39 = vld [vmem:[#allocation93_spill] sm:$0xff] }
 0x201   : > { %2394 = vst [vmem:[%s4850_s23 + $0x3c0] sm:$0xff] %v2202_v3  ;;  %v1986_v47 = vmul.f32 %v4790_v36, %v1780_v40  ;;  %v1987_v17 = vmul.f32 %v4792_v27, %v1781_v28  ;;  %v1514_v63 = vsub.f32 1.5, %v1513_v8  ;;  %v1582_v57 = vmul.f32 %v5413_v21, %v1581_v35  ;;  %v6596_v8 = vld [vmem:[#allocation88_spill] sm:$0xff] }
 0x202   : > { %2395 = vst [vmem:[%s4850_s23 + $0x3c8] sm:$0xff] %v2203_v31  ;;  %v1988_v56 = vmul.f32 %v4794_v7, %v1782_v14  ;;  %v1989_v1 = vmul.f32 %v4796_v16, %v1783_v12  ;;  %v2190_v25 = vadd.f32 %v4798_v48, %v1984_v4  ;;  %v2191_v33 = vadd.f32 %v4802_v29, %v1985_v52  ;;  %v6602_v4 = vld [vmem:[#allocation100_spill] sm:$0xff] }
 0x203   : > { %2396 = vst [vmem:[%s4850_s23 + $0x3d0] sm:$0xff] %v2204_v34  ;;  %v2192_v49 = vadd.f32 %v4806_v6, %v1986_v47  ;;  %v2193_v22 = vadd.f32 %v4808_v32, %v1987_v17  ;;  %v1515_v62 = vmul.f32 %v5388_v2, %v1514_v63  ;;  %v1583_v5 = vmul.f32 0.5, %v1582_v57  ;;  %v6604_v17 = vld [vmem:[#allocation102_spill] sm:$0xff]  ;;  %v6605_v57 = vld [vmem:[#allocation103_spill] sm:$0xff] }
 0x204   : > { %2397 = vst [vmem:[%s4850_s23 + $0x3d8] sm:$0xff] %v2205_v26  ;;  %v2194_v35 = vadd.f32 %v4813_v18, %v1988_v56  ;;  %v2195_v11 = vadd.f32 %v4815_v24, %v1989_v1  ;;  %vm1587_vm14 = vweird.f32 %v5413_v21  ;;  %v1561_v46 = vmul.f32 %v5425_v54, %v5375_v0  ;;  %v6606_v1 = vld [vmem:[#allocation104_spill] sm:$0xff] }
 0x205   : > { %2398 = vst [vmem:[%s4850_s23 + $0x3e0] sm:$0xff] %v2206_v38  ;;  %v1519_v41 = vsel %vm1518_vm12, %v5388_v2, %v1515_v62  ;;  %v1584_v15 = vsub.f32 1.5, %v1583_v5  ;;  %vm1567_vm15 = vweird.f32 %v5425_v54  ;;  %vm1588_vm0 = vmor %vm1586_vm13, %vm1587_vm14  ;;  %v1236_v62 = vpop.xlane.xlu2 %1235  ;;  %vm1546_vm4 = vweird.f32 %v5402_v50 }
 0x206   : > { %2399 = vst [vmem:[%s4850_s23 + $0x3e8] sm:$0xff] %v2207_v55  ;;  %v1766_v13 = vmul.f32 %v1519_v41, %v6596_v8  ;;  %v1767_v43 = vmul.f32 %v1519_v41, %v6597_v45  ;;  %v1768_v30 = vmul.f32 %v1519_v41, %v6598_v42  ;;  %v1769_v37 = vmul.f32 %v1519_v41, %v6599_v51  ;;  %vm1568_vm2 = vmor %vm1566_vm1, %vm1567_vm15 }
 0x207   : > { %2382 = vst [vmem:[%s4850_s23 + $0x360] sm:$0xff] %v2190_v25  ;;  %v1770_v2 = vmul.f32 %v1519_v41, %v6600_v9  ;;  %v1771_v23 = vmul.f32 %v1519_v41, %v6601_v39  ;;  %v1585_v20 = vmul.f32 %v5413_v21, %v1584_v15  ;;  %v1562_v3 = vmul.f32 %v5425_v54, %v1561_v46 }
 0x208   : > { %2383 = vst [vmem:[%s4850_s23 + $0x368] sm:$0xff] %v2191_v33  ;;  %v1972_v31 = vmul.f32 %v4785_v58, %v1766_v13  ;;  %v1973_v34 = vmul.f32 %v4787_v60, %v1767_v43  ;;  %v1974_v26 = vmul.f32 %v4790_v36, %v1768_v30  ;;  %v1975_v38 = vmul.f32 %v4792_v27, %v1769_v37  ;;  %v6607_v33 = vld [vmem:[#allocation105_spill] sm:$0xff] }
 0x209   : > { %2384 = vst [vmem:[%s4850_s23 + $0x370] sm:$0xff] %v2192_v49  ;;  %v1976_v55 = vmul.f32 %v4794_v7, %v1770_v2  ;;  %v1977_v59 = vmul.f32 %v4796_v16, %v1771_v23  ;;  %v1589_v40 = vsel %vm1588_vm0, %v5413_v21, %v1585_v20  ;;  %v1563_v53 = vmul.f32 0.5, %v1562_v3  ;;  %v6603_v21 = vld [vmem:[#allocation101_spill] sm:$0xff]  ;;  %v6608_v20 = vld [vmem:[#allocation112_spill] sm:$0xff] }
 0x20a   : > { %2385 = vst [vmem:[%s4850_s23 + $0x378] sm:$0xff] %v2193_v22  ;;  %v2178_v28 = vadd.f32 %v4798_v48, %v1972_v31  ;;  %v2179_v44 = vadd.f32 %v4802_v29, %v1973_v34  ;;  %v2180_v14 = vadd.f32 %v4806_v6, %v1974_v26  ;;  %v2181_v19 = vadd.f32 %v4808_v32, %v1975_v38  ;;  %v1250_v22 = vpop.xlane.xlu1 %1249  ;;  %v6609_v31 = vld [vmem:[#allocation113_spill] sm:$0xff]  ;;  %v6610_v26 = vld [vmem:[#allocation114_spill] sm:$0xff] }
 0x20b   : > { %2386 = vst [vmem:[%s4850_s23 + $0x380] sm:$0xff] %v2194_v35  ;;  %v2182_v10 = vadd.f32 %v4813_v18, %v1976_v55  ;;  %v2183_v12 = vadd.f32 %v4815_v24, %v1977_v59  ;;  %v1808_v52 = vmul.f32 %v1589_v40, %v6602_v4  ;;  %v1809_v47 = vmul.f32 %v1589_v40, %v6603_v21  ;;  %v6611_v55 = vld [vmem:[#allocation115_spill] sm:$0xff] }
 0x20c   : > { %2387 = vst [vmem:[%s4850_s23 + $0x388] sm:$0xff] %v2195_v11  ;;  %v1810_v63 = vmul.f32 %v1589_v40, %v6604_v17  ;;  %v1811_v56 = vmul.f32 %v1589_v40, %v6605_v57  ;;  %v1812_v25 = vmul.f32 %v1589_v40, %v6606_v1  ;;  %v1813_v49 = vmul.f32 %v1589_v40, %v6607_v33  ;;  %v1222_v11 = vpop.xlane.xlu0 %1221  ;;  %v2714_v40 = vpop.eup %2713 }
 0x20d   : > { %2370 = vst [vmem:[%s4850_s23 + $0x300] sm:$0xff] %v2178_v28  ;;  %v2014_v5 = vmul.f32 %v4785_v58, %v1808_v52  ;;  %v2015_v35 = vmul.f32 %v4787_v60, %v1809_v47  ;;  %v1564_v41 = vsub.f32 1.5, %v1563_v53  ;;  %v1312_v39 = vmul.f32 %v1250_v22, %v3582_v61  ;;  %v6613_v28 = vld [vmem:[#allocation117_spill] sm:$0xff]  ;;  %v1257_v1 = vpop.xlane.xlu2 %1256 }
 0x20e   : > { %2371 = vst [vmem:[%s4850_s23 + $0x308] sm:$0xff] %v2179_v44  ;;  %v2016_v15 = vmul.f32 %v4790_v36, %v1810_v63  ;;  %v2017_v46 = vmul.f32 %v4792_v27, %v1811_v56  ;;  %v2018_v8 = vmul.f32 %v4794_v7, %v1812_v25  ;;  %v2019_v13 = vmul.f32 %v4796_v16, %v1813_v49 }
 0x20f   : > { %2372 = vst [vmem:[%s4850_s23 + $0x310] sm:$0xff] %v2180_v14  ;;  %v2220_v45 = vadd.f32 %v4798_v48, %v2014_v5  ;;  %v2221_v43 = vadd.f32 %v4802_v29, %v2015_v35  ;;  %v1565_v42 = vmul.f32 %v5425_v54, %v1564_v41  ;;  %v1310_v0 = vmul.f32 %v1236_v62, %v3582_v61 }
 0x210   : > { %2373 = vst [vmem:[%s4850_s23 + $0x318] sm:$0xff] %v2181_v19  ;;  %v2222_v30 = vadd.f32 %v4806_v6, %v2016_v15  ;;  %v2223_v51 = vadd.f32 %v4808_v32, %v2017_v46  ;;  %v2224_v37 = vadd.f32 %v4813_v18, %v2018_v8  ;;  %v2225_v9 = vadd.f32 %v4815_v24, %v2019_v13 }
 0x211   : > { %2374 = vst [vmem:[%s4850_s23 + $0x320] sm:$0xff] %v2182_v10  ;;  %v1569_v2 = vsel %vm1568_vm2, %v5425_v54, %v1565_v42  ;;  %v1308_v23 = vmul.f32 %v1222_v11, %v3582_v61  ;;  %v6612_v54 = vld [vmem:[#allocation116_spill] sm:$0xff]  ;;  %v5640_v14 = vadd.f32 1e-05, %v1312_v39  ;;  %v5642_v19 = vadd.f32 1e-05, %v1310_v0 }
 0x212   : > { %2375 = vst [vmem:[%s4850_s23 + $0x328] sm:$0xff] %v2183_v12  ;;  %v1796_v3 = vmul.f32 %v1569_v2, %v6608_v20  ;;  %v1797_v34 = vmul.f32 %v1569_v2, %v6609_v31  ;;  %v1798_v38 = vmul.f32 %v1569_v2, %v6610_v26  ;;  %v1799_v59 = vmul.f32 %v1569_v2, %v6611_v55  ;;  %v1271_v56 = vpop.xlane.xlu1 %1270  ;;  %v6614_v39 = vld [vmem:[#allocation106_spill] sm:$0xff]  ;;  %v6616_v20 = vld [vmem:[#allocation108_spill] sm:$0xff]  ;;  %v6617_v31 = vld [vmem:[#allocation109_spill] sm:$0xff] }
 0x213   : > { %2412 = vst [vmem:[%s4850_s23 + $0x450] sm:$0xff] %v2220_v45  ;;  %v1800_v53 = vmul.f32 %v1569_v2, %v6612_v54  ;;  %v1801_v44 = vmul.f32 %v1569_v2, %v6613_v28  ;;  %v1541_v47 = vmul.f32 %v2714_v40, %v5402_v50  ;;  %2715 = vrsqrt.f32 %v5640_v14  ;;  %v6615_v50 = vld [vmem:[#allocation107_spill] sm:$0xff]  ;;  %v6618_v26 = vld [vmem:[#allocation110_spill] sm:$0xff] }
 0x214   : > { %2413 = vst [vmem:[%s4850_s23 + $0x458] sm:$0xff] %v2221_v43  ;;  %v2002_v10 = vmul.f32 %v4785_v58, %v1796_v3  ;;  %v2003_v12 = vmul.f32 %v4787_v60, %v1797_v34  ;;  %v2004_v4 = vmul.f32 %v4790_v36, %v1798_v38  ;;  %v2005_v52 = vmul.f32 %v4792_v27, %v1799_v59  ;;  %v1243_v49 = vpop.xlane.xlu0 %1242  ;;  %v6619_v55 = vld [vmem:[#allocation111_spill] sm:$0xff] }
 0x215   : > { %2414 = vst [vmem:[%s4850_s23 + $0x460] sm:$0xff] %v2222_v30  ;;  %v2006_v21 = vmul.f32 %v4794_v7, %v1800_v53  ;;  %v2007_v17 = vmul.f32 %v4796_v16, %v1801_v44  ;;  %v1542_v33 = vmul.f32 %v2714_v40, %v1541_v47  ;;  %2717 = vrsqrt.f32 %v5642_v19 }
 0x216   : > { %2415 = vst [vmem:[%s4850_s23 + $0x468] sm:$0xff] %v2223_v51  ;;  %v2208_v63 = vadd.f32 %v4798_v48, %v2002_v10  ;;  %v2209_v57 = vadd.f32 %v4802_v29, %v2003_v12  ;;  %v2210_v25 = vadd.f32 %v4806_v6, %v2004_v4  ;;  %v2211_v22 = vadd.f32 %v4808_v32, %v2005_v52 }
 0x217   : > { %2416 = vst [vmem:[%s4850_s23 + $0x470] sm:$0xff] %v2224_v37  ;;  %v5662_v62 = vadd.f32 1e-05, %v1308_v23  ;;  %v2212_v5 = vadd.f32 %v4813_v18, %v2006_v21  ;;  %v1543_v35 = vmul.f32 0.5, %v1542_v33  ;;  %v1315_v41 = vmul.f32 %v1271_v56, %v3582_v61 }
 0x218   : > { %2417 = vst [vmem:[%s4850_s23 + $0x478] sm:$0xff] %v2225_v9  ;;  %v1313_v11 = vmul.f32 %v1257_v1, %v3582_v61  ;;  %v2213_v15 = vadd.f32 %v4815_v24, %v2007_v17  ;;  %v1311_v46 = vmul.f32 %v1243_v49, %v3582_v61  ;;  %vm1547_vm3 = vweird.f32 %v2714_v40 }
 0x219   : > { %2400 = vst [vmem:[%s4850_s23 + $0x3f0] sm:$0xff] %v2208_v63  ;;  %v1544_v8 = vsub.f32 1.5, %v1543_v35  ;;  %v5672_v13 = vadd.f32 1e-05, %v1315_v41  ;;  %2719 = vrsqrt.f32 %v5662_v62  ;;  %v2716_v43 = vpop.eup %2715  ;;  %vm1548_vm5 = vmor %vm1546_vm4, %vm1547_vm3  ;;  %vm1616_vm6 = vweird.f32 %v5640_v14 }
 0x21a   : > { %2401 = vst [vmem:[%s4850_s23 + $0x3f8] sm:$0xff] %v2209_v57  ;;  %v5674_v45 = vadd.f32 1e-05, %v1313_v11  ;;  %v1611_v51 = vmul.f32 %v2716_v43, %v5640_v14  ;;  %v5684_v37 = vadd.f32 1e-05, %v1311_v46  ;;  %vm1617_vm7 = vweird.f32 %v2716_v43  ;;  %v6620_v14 = vld [vmem:[#allocation118_spill] sm:$0xff] }
 0x21b   : > { %2402 = vst [vmem:[%s4850_s23 + $0x400] sm:$0xff] %v2210_v25  ;;  %v1545_v42 = vmul.f32 %v2714_v40, %v1544_v8  ;;  %2721 = vrsqrt.f32 %v5672_v13  ;;  %v2718_v30 = vpop.eup %2717  ;;  %vm1618_vm9 = vmor %vm1616_vm6, %vm1617_vm7  ;;  %vm1596_vm10 = vweird.f32 %v5642_v19  ;;  %vm1646_vm13 = vweird.f32 %v5672_v13 }
 0x21c   : > { %2403 = vst [vmem:[%s4850_s23 + $0x408] sm:$0xff] %v2211_v22  ;;  %v1591_v2 = vmul.f32 %v2718_v30, %v5642_v19  ;;  %2723 = vrsqrt.f32 %v5674_v45  ;;  %v1612_v54 = vmul.f32 %v2716_v43, %v1611_v51  ;;  %vm1597_vm8 = vweird.f32 %v2718_v30  ;;  %v6622_v19 = vld [vmem:[#allocation120_spill] sm:$0xff] }
 0x21d   : > { %2404 = vst [vmem:[%s4850_s23 + $0x410] sm:$0xff] %v2212_v5  ;;  %v1549_v9 = vsel %vm1548_vm5, %v2714_v40, %v1545_v42  ;;  %2725 = vrsqrt.f32 %v5684_v37  ;;  %vm1598_vm11 = vmor %vm1596_vm10, %vm1597_vm8  ;;  %vm1576_vm15 = vweird.f32 %v5662_v62  ;;  %vm1626_vm3 = vweird.f32 %v5674_v45 }
 0x21e   : > { %2405 = vst [vmem:[%s4850_s23 + $0x418] sm:$0xff] %v2213_v15  ;;  %v1784_v0 = vmul.f32 %v1549_v9, %v6614_v39  ;;  %v1785_v23 = vmul.f32 %v1549_v9, %v6615_v50  ;;  %v1786_v3 = vmul.f32 %v1549_v9, %v6616_v20  ;;  %v1787_v34 = vmul.f32 %v1549_v9, %v6617_v31  ;;  %v6621_v39 = vld [vmem:[#allocation119_spill] sm:$0xff] }
 0x21f   : > { %v1788_v38 = vmul.f32 %v1549_v9, %v6618_v26  ;;  %v1789_v59 = vmul.f32 %v1549_v9, %v6619_v55  ;;  %v1592_v53 = vmul.f32 %v2718_v30, %v1591_v2  ;;  %v5694_v40 = vpop.eup %2719  ;;  %v1613_v47 = vmul.f32 0.5, %v1612_v54  ;;  %v6625_v31 = vld [vmem:[#allocation123_spill] sm:$0xff]  ;;  %v6626_v26 = vld [vmem:[#allocation130_spill] sm:$0xff] }
 0x220   : > { %v1990_v28 = vmul.f32 %v4785_v58, %v1784_v0  ;;  %v1991_v44 = vmul.f32 %v4787_v60, %v1785_v23  ;;  %v1992_v10 = vmul.f32 %v4790_v36, %v1786_v3  ;;  %v1993_v12 = vmul.f32 %v4792_v27, %v1787_v34  ;;  %v6623_v23 = vld [vmem:[#allocation121_spill] sm:$0xff]  ;;  %v6627_v55 = vld [vmem:[#allocation131_spill] sm:$0xff] }
 0x221   : > { %v5700_v4 = vpop.eup %2721  ;;  %v1994_v52 = vmul.f32 %v4794_v7, %v1788_v38  ;;  %v1995_v21 = vmul.f32 %v4796_v16, %v1789_v59  ;;  %v1593_v17 = vmul.f32 0.5, %v1592_v53  ;;  %v1614_v33 = vsub.f32 1.5, %v1613_v47  ;;  %v6629_v47 = vld [vmem:[#allocation133_spill] sm:$0xff] }
 0x222   : > { %v2196_v63 = vadd.f32 %v4798_v48, %v1990_v28  ;;  %v2197_v57 = vadd.f32 %v4802_v29, %v1991_v44  ;;  %v2198_v56 = vadd.f32 %v4806_v6, %v1992_v10  ;;  %v5707_v1 = vpop.eup %2723  ;;  %v2199_v25 = vadd.f32 %v4808_v32, %v1993_v12 }
 0x223   : > { %v1594_v49 = vsub.f32 1.5, %v1593_v17  ;;  %v2200_v22 = vadd.f32 %v4813_v18, %v1994_v52  ;;  %v1571_v5 = vmul.f32 %v5694_v40, %v5662_v62  ;;  %v1641_v35 = vmul.f32 %v5700_v4, %v5672_v13  ;;  %v5736_v3 = vpop.eup %2725  ;;  %v6628_v52 = vld [vmem:[#allocation132_spill] sm:$0xff] }
 0x224   : > { %2388 = vst [vmem:[%s4850_s23 + $0x390] sm:$0xff] %v2196_v63  ;;  %v2201_v41 = vadd.f32 %v4815_v24, %v1995_v21  ;;  %v1615_v11 = vmul.f32 %v2716_v43, %v1614_v33  ;;  %v1621_v46 = vmul.f32 %v5707_v1, %v5674_v45  ;;  %vm1577_vm12 = vweird.f32 %v5694_v40  ;;  %v6632_v13 = vld [vmem:[#allocation124_spill] sm:$0xff]  ;;  %v6645_v45 = vld [vmem:[#allocation149_spill] sm:$0xff] }
 0x225   : > { %2389 = vst [vmem:[%s4850_s23 + $0x398] sm:$0xff] %v2197_v57  ;;  %v1595_v15 = vmul.f32 %v2718_v30, %v1594_v49  ;;  %v1572_v51 = vmul.f32 %v5694_v40, %v1571_v5  ;;  %v1642_v9 = vmul.f32 %v5700_v4, %v1641_v35  ;;  %v6630_v49 = vld [vmem:[#allocation134_spill] sm:$0xff]  ;;  %v6631_v5 = vld [vmem:[#allocation135_spill] sm:$0xff]  ;;  %vm1647_vm14 = vweird.f32 %v5700_v4  ;;  %vm1578_vm0 = vmor %vm1576_vm15, %vm1577_vm12 }
 0x226   : > { %2390 = vst [vmem:[%s4850_s23 + $0x3a0] sm:$0xff] %v2198_v56  ;;  %v1619_v8 = vsel %vm1618_vm9, %v2716_v43, %v1615_v11  ;;  %v6624_v43 = vld [vmem:[#allocation122_spill] sm:$0xff]  ;;  %v1278_v11 = vpop.xlane.xlu2 %1277  ;;  %vm1627_vm1 = vweird.f32 %v5707_v1  ;;  %vm1648_vm2 = vmor %vm1646_vm13, %vm1647_vm14  ;;  %vm1607_vm4 = vweird.f32 %v5736_v3  ;;  %vm1606_vm5 = vweird.f32 %v5684_v37 }
 0x227   : > { %2391 = vst [vmem:[%s4850_s23 + $0x3a8] sm:$0xff] %v2199_v25  ;;  %v1599_v42 = vsel %vm1598_vm11, %v2718_v30, %v1595_v15  ;;  %v1826_v2 = vmul.f32 %v1619_v8, %v6620_v14  ;;  %v1827_v0 = vmul.f32 %v1619_v8, %v6621_v39  ;;  %v1828_v50 = vmul.f32 %v1619_v8, %v6622_v19  ;;  %vm1628_vm6 = vmor %vm1626_vm3, %vm1627_vm1 }
 0x228   : > { %2392 = vst [vmem:[%s4850_s23 + $0x3b0] sm:$0xff] %v2200_v22  ;;  %v1829_v20 = vmul.f32 %v1619_v8, %v6623_v23  ;;  %v1830_v30 = vmul.f32 %v1619_v8, %v6624_v43  ;;  %v1831_v34 = vmul.f32 %v1619_v8, %v6625_v31  ;;  %v1814_v38 = vmul.f32 %v1599_v42, %v6626_v26  ;;  %vm1608_vm7 = vmor %vm1606_vm5, %vm1607_vm4 }
 0x229   : > { %2393 = vst [vmem:[%s4850_s23 + $0x3b8] sm:$0xff] %v2201_v41  ;;  %v1815_v59 = vmul.f32 %v1599_v42, %v6627_v55  ;;  %v2032_v54 = vmul.f32 %v4785_v58, %v1826_v2  ;;  %v2033_v53 = vmul.f32 %v4787_v60, %v1827_v0  ;;  %v2034_v28 = vmul.f32 %v4790_v36, %v1828_v50 }
 0x22a   : > { %v2035_v44 = vmul.f32 %v4792_v27, %v1829_v20  ;;  %v2036_v10 = vmul.f32 %v4794_v7, %v1830_v30  ;;  %v2037_v12 = vmul.f32 %v4796_v16, %v1831_v34  ;;  %v1816_v21 = vmul.f32 %v1599_v42, %v6628_v52 }
 0x22b   : > { %v1817_v17 = vmul.f32 %v1599_v42, %v6629_v47  ;;  %v2238_v63 = vadd.f32 %v4798_v48, %v2032_v54  ;;  %v2239_v57 = vadd.f32 %v4802_v29, %v2033_v53  ;;  %v2240_v56 = vadd.f32 %v4806_v6, %v2034_v28  ;;  %v6633_v47 = vld [vmem:[#allocation125_spill] sm:$0xff] }
 0x22c   : > { %v1601_v25 = vmul.f32 %v5736_v3, %v5684_v37  ;;  %v2241_v33 = vadd.f32 %v4808_v32, %v2035_v44  ;;  %v1818_v22 = vmul.f32 %v1599_v42, %v6630_v49  ;;  %v1819_v35 = vmul.f32 %v1599_v42, %v6631_v5 }
 0x22d   : > { %v1622_v41 = vmul.f32 %v5707_v1, %v1621_v46  ;;  %v2242_v15 = vadd.f32 %v4813_v18, %v2036_v10  ;;  %2430 = vst [vmem:[%s4850_s23 + $0x4e0] sm:$0xff] %v2238_v63  ;;  %v2020_v8 = vmul.f32 %v4785_v58, %v1814_v38  ;;  %v2021_v14 = vmul.f32 %v4787_v60, %v1815_v59  ;;  %v6634_v63 = vld [vmem:[#allocation126_spill] sm:$0xff] }
 0x22e   : > { %v2022_v2 = vmul.f32 %v4790_v36, %v1816_v21  ;;  %v2243_v39 = vadd.f32 %v4815_v24, %v2037_v12  ;;  %2431 = vst [vmem:[%s4850_s23 + $0x4e8] sm:$0xff] %v2239_v57  ;;  %v2023_v0 = vmul.f32 %v4792_v27, %v1817_v17  ;;  %v1573_v42 = vmul.f32 0.5, %v1572_v51  ;;  %v1264_v51 = vpop.xlane.xlu0 %1263 }
 0x22f   : > { %v1643_v19 = vmul.f32 0.5, %v1642_v9  ;;  %2432 = vst [vmem:[%s4850_s23 + $0x4f0] sm:$0xff] %v2240_v56  ;;  %v2024_v46 = vmul.f32 %v4794_v7, %v1818_v22  ;;  %v2025_v50 = vmul.f32 %v4796_v16, %v1819_v35  ;;  %v2226_v23 = vadd.f32 %v4798_v48, %v2020_v8  ;;  %v6635_v56 = vld [vmem:[#allocation127_spill] sm:$0xff]  ;;  %v6638_v22 = vld [vmem:[#allocation136_spill] sm:$0xff]  ;;  %v6639_v35 = vld [vmem:[#allocation137_spill] sm:$0xff] }
 0x230   : > { %v1316_v20 = vmul.f32 %v1278_v11, %v3582_v61  ;;  %2433 = vst [vmem:[%s4850_s23 + $0x4f8] sm:$0xff] %v2241_v33  ;;  %v2227_v43 = vadd.f32 %v4802_v29, %v2021_v14  ;;  %v1574_v30 = vsub.f32 1.5, %v1573_v42  ;;  %v2228_v9 = vadd.f32 %v4806_v6, %v2022_v2  ;;  %v6637_v33 = vld [vmem:[#allocation129_spill] sm:$0xff] }
 0x231   : > { %v1644_v31 = vsub.f32 1.5, %v1643_v19  ;;  %2434 = vst [vmem:[%s4850_s23 + $0x500] sm:$0xff] %v2242_v15  ;;  %v1623_v34 = vmul.f32 0.5, %v1622_v41  ;;  %v1602_v26 = vmul.f32 %v5736_v3, %v1601_v25  ;;  %v2229_v38 = vadd.f32 %v4808_v32, %v2023_v0  ;;  %v6640_v0 = vld [vmem:[#allocation138_spill] sm:$0xff]  ;;  %v6641_v19 = vld [vmem:[#allocation139_spill] sm:$0xff] }
 0x232   : > { %2435 = vst [vmem:[%s4850_s23 + $0x508] sm:$0xff] %v2243_v39  ;;  %v1575_v55 = vmul.f32 %v5694_v40, %v1574_v30  ;;  %v2230_v54 = vadd.f32 %v4813_v18, %v2024_v46  ;;  %v2231_v62 = vadd.f32 %v4815_v24, %v2025_v50  ;;  %v5795_v53 = vadd.f32 1e-05, %v1316_v20 }
 0x233   : > { %v1645_v59 = vmul.f32 %v5700_v4, %v1644_v31  ;;  %2418 = vst [vmem:[%s4850_s23 + $0x480] sm:$0xff] %v2226_v23  ;;  %v5798_v28 = vmul.f32 %v1264_v51, %v3582_v61  ;;  %v1624_v12 = vsub.f32 1.5, %v1623_v34  ;;  %v1603_v52 = vmul.f32 0.5, %v1602_v26  ;;  %v6642_v31 = vld [vmem:[#allocation140_spill] sm:$0xff] }
 0x234   : > { %2419 = vst [vmem:[%s4850_s23 + $0x488] sm:$0xff] %v2227_v43  ;;  %v1579_v44 = vsel %vm1578_vm0, %v5694_v40, %v1575_v55  ;;  %v6636_v40 = vld [vmem:[#allocation128_spill] sm:$0xff]  ;;  %2727 = vrsqrt.f32 %v5795_v53  ;;  %vm1656_vm9 = vweird.f32 %v5795_v53 }
 0x235   : > { %v1649_v10 = vsel %vm1648_vm2, %v5700_v4, %v1645_v59  ;;  %2420 = vst [vmem:[%s4850_s23 + $0x490] sm:$0xff] %v2228_v9  ;;  %v1802_v21 = vmul.f32 %v1579_v44, %v6632_v13  ;;  %v1803_v17 = vmul.f32 %v1579_v44, %v6633_v47  ;;  %v1804_v57 = vmul.f32 %v1579_v44, %v6634_v63  ;;  %v6643_v9 = vld [vmem:[#allocation141_spill] sm:$0xff] }
 0x236   : > { %v1805_v25 = vmul.f32 %v1579_v44, %v6635_v56  ;;  %2421 = vst [vmem:[%s4850_s23 + $0x498] sm:$0xff] %v2229_v38  ;;  %v1806_v4 = vmul.f32 %v1579_v44, %v6636_v40  ;;  %v1807_v49 = vmul.f32 %v1579_v44, %v6637_v33  ;;  %v1844_v5 = vmul.f32 %v1649_v10, %v6638_v22  ;;  %v1285_v26 = vpop.xlane.xlu0 %1284  ;;  %v6644_v40 = vld [vmem:[#allocation148_spill] sm:$0xff]  ;;  %v6647_v22 = vld [vmem:[#allocation151_spill] sm:$0xff] }
 0x237   : > { %v1845_v41 = vmul.f32 %v1649_v10, %v6639_v35  ;;  %2422 = vst [vmem:[%s4850_s23 + $0x4a0] sm:$0xff] %v2230_v54  ;;  %v2008_v11 = vmul.f32 %v4785_v58, %v1802_v21  ;;  %v2009_v15 = vmul.f32 %v4787_v60, %v1803_v17  ;;  %v2010_v8 = vmul.f32 %v4790_v36, %v1804_v57  ;;  %v6648_v35 = vld [vmem:[#allocation152_spill] sm:$0xff] }
 0x238   : > { %v2011_v14 = vmul.f32 %v4792_v27, %v1805_v25  ;;  %2423 = vst [vmem:[%s4850_s23 + $0x4a8] sm:$0xff] %v2231_v62  ;;  %v2012_v2 = vmul.f32 %v4794_v7, %v1806_v4  ;;  %v2013_v39 = vmul.f32 %v4796_v16, %v1807_v49  ;;  %v1846_v42 = vmul.f32 %v1649_v10, %v6640_v0  ;;  %v6646_v49 = vld [vmem:[#allocation150_spill] sm:$0xff] }
 0x239   : > { %v1847_v46 = vmul.f32 %v1649_v10, %v6641_v19  ;;  %v2214_v50 = vadd.f32 %v4798_v48, %v2008_v11  ;;  %v2215_v23 = vadd.f32 %v4802_v29, %v2009_v15  ;;  %v2216_v20 = vadd.f32 %v4806_v6, %v2010_v8  ;;  %v6649_v11 = vld [vmem:[#allocation153_spill] sm:$0xff] }
 0x23a   : > { %v2217_v43 = vadd.f32 %v4808_v32, %v2011_v14  ;;  %v2218_v30 = vadd.f32 %v4813_v18, %v2012_v2  ;;  %v1848_v51 = vmul.f32 %v1649_v10, %v6642_v31  ;;  %v1849_v34 = vmul.f32 %v1649_v10, %v6643_v9  ;;  %v5857_v25 = vpop.eup %2727 }
 0x23b   : > { %2406 = vst [vmem:[%s4850_s23 + $0x420] sm:$0xff] %v2214_v50  ;;  %v2050_v38 = vmul.f32 %v4785_v58, %v1844_v5  ;;  %v2051_v55 = vmul.f32 %v4787_v60, %v1845_v41  ;;  %v2052_v59 = vmul.f32 %v4790_v36, %v1846_v42  ;;  %v2053_v54 = vmul.f32 %v4792_v27, %v1847_v46  ;;  %v6650_v42 = vld [vmem:[#allocation142_spill] sm:$0xff]  ;;  %v6651_v46 = vld [vmem:[#allocation143_spill] sm:$0xff] }
 0x23c   : > { %v2219_v62 = vadd.f32 %v4815_v24, %v2013_v39  ;;  %2407 = vst [vmem:[%s4850_s23 + $0x428] sm:$0xff] %v2215_v23  ;;  %v2054_v44 = vmul.f32 %v4794_v7, %v1848_v51  ;;  %v1625_v13 = vmul.f32 %v5707_v1, %v1624_v12  ;;  %v1604_v10 = vsub.f32 1.5, %v1603_v52  ;;  %v6652_v51 = vld [vmem:[#allocation144_spill] sm:$0xff] }
 0x23d   : > { %2408 = vst [vmem:[%s4850_s23 + $0x430] sm:$0xff] %v2216_v20  ;;  %v2055_v21 = vmul.f32 %v4796_v16, %v1849_v34  ;;  %v2256_v47 = vadd.f32 %v4798_v48, %v2050_v38  ;;  %v2257_v17 = vadd.f32 %v4802_v29, %v2051_v55  ;;  %v1317_v63 = vmul.f32 %v1285_v26, %v3582_v61  ;;  %v6653_v34 = vld [vmem:[#allocation145_spill] sm:$0xff]  ;;  %v6654_v55 = vld [vmem:[#allocation146_spill] sm:$0xff] }
 0x23e   : > { %2409 = vst [vmem:[%s4850_s23 + $0x438] sm:$0xff] %v2217_v43  ;;  %v2258_v57 = vadd.f32 %v4806_v6, %v2052_v59  ;;  %v2259_v12 = vadd.f32 %v4808_v32, %v2053_v54  ;;  %v1629_v52 = vsel %vm1628_vm6, %v5707_v1, %v1625_v13  ;;  %v1605_v56 = vmul.f32 %v5736_v3, %v1604_v10 }
 0x23f   : > { %2410 = vst [vmem:[%s4850_s23 + $0x440] sm:$0xff] %v2218_v30  ;;  %v1832_v4 = vmul.f32 %v1629_v52, %v6644_v40  ;;  %v1833_v33 = vmul.f32 %v1629_v52, %v6645_v45  ;;  %v1834_v61 = vmul.f32 %v1629_v52, %v6646_v49  ;;  %v1835_v5 = vmul.f32 %v1629_v52, %v6647_v22 }
 0x240   : > { %2411 = vst [vmem:[%s4850_s23 + $0x448] sm:$0xff] %v2219_v62  ;;  %v2260_v1 = vadd.f32 %v4813_v18, %v2054_v44  ;;  %v1836_v41 = vmul.f32 %v1629_v52, %v6648_v35  ;;  %v1837_v15 = vmul.f32 %v1629_v52, %v6649_v11  ;;  %v1609_v8 = vsel %vm1608_vm7, %v5736_v3, %v1605_v56  ;;  %v6655_v44 = vld [vmem:[#allocation147_spill] sm:$0xff]  ;;  %v6656_v11 = vld [vmem:[#allocation160_spill] sm:$0xff] }
 0x241   : > { %v2261_v14 = vadd.f32 %v4815_v24, %v2055_v21  ;;  %2448 = vst [vmem:[%s4850_s23 + $0x570] sm:$0xff] %v2256_v47  ;;  %v2038_v2 = vmul.f32 %v4785_v58, %v1832_v4  ;;  %v2039_v39 = vmul.f32 %v4787_v60, %v1833_v33  ;;  %v2040_v37 = vmul.f32 %v4790_v36, %v1834_v61 }
 0x242   : > { %2449 = vst [vmem:[%s4850_s23 + $0x578] sm:$0xff] %v2257_v17  ;;  %v2041_v0 = vmul.f32 %v4792_v27, %v1835_v5  ;;  %v1820_v19 = vmul.f32 %v1609_v8, %v6650_v42  ;;  %v1821_v50 = vmul.f32 %v1609_v8, %v6651_v46  ;;  %v1651_v3 = vmul.f32 %v5857_v25, %v5795_v53 }
 0x243   : > { %2450 = vst [vmem:[%s4850_s23 + $0x580] sm:$0xff] %v2258_v57  ;;  %v2042_v23 = vmul.f32 %v4794_v7, %v1836_v41  ;;  %v2244_v20 = vadd.f32 %v4798_v48, %v2038_v2  ;;  %v5888_v43 = vadd.f32 1e-05, %v5798_v28  ;;  %v2043_v30 = vmul.f32 %v4796_v16, %v1837_v15  ;;  %v6658_v2 = vld [vmem:[#allocation162_spill] sm:$0xff] }
 0x244   : > { %2451 = vst [vmem:[%s4850_s23 + $0x588] sm:$0xff] %v2259_v12  ;;  %v2245_v31 = vadd.f32 %v4802_v29, %v2039_v39  ;;  %v1822_v9 = vmul.f32 %v1609_v8, %v6652_v51  ;;  %v1823_v26 = vmul.f32 %v1609_v8, %v6653_v34  ;;  %v2246_v38 = vadd.f32 %v4806_v6, %v2040_v37  ;;  %v6659_v39 = vld [vmem:[#allocation163_spill] sm:$0xff] }
 0x245   : > { %2452 = vst [vmem:[%s4850_s23 + $0x590] sm:$0xff] %v2260_v1  ;;  %v1824_v59 = vmul.f32 %v1609_v8, %v6654_v55  ;;  %v2026_v28 = vmul.f32 %v4785_v58, %v1820_v19  ;;  %v5899_v54 = vadd.f32 1e-05, %v1317_v63  ;;  %v2247_v62 = vadd.f32 %v4808_v32, %v2041_v0  ;;  %v6660_v0 = vld [vmem:[#allocation164_spill] sm:$0xff]  ;;  %v6661_v19 = vld [vmem:[#allocation165_spill] sm:$0xff] }
 0x246   : > { %2453 = vst [vmem:[%s4850_s23 + $0x598] sm:$0xff] %v2261_v14  ;;  %v1825_v13 = vmul.f32 %v1609_v8, %v6655_v44  ;;  %v2027_v10 = vmul.f32 %v4787_v60, %v1821_v50  ;;  %v1652_v21 = vmul.f32 %v5857_v25, %v1651_v3  ;;  %v2248_v47 = vadd.f32 %v4813_v18, %v2042_v23  ;;  %v6657_v8 = vld [vmem:[#allocation161_spill] sm:$0xff] }
 0x247   : > { %2436 = vst [vmem:[%s4850_s23 + $0x510] sm:$0xff] %v2244_v20  ;;  %v2028_v17 = vmul.f32 %v4790_v36, %v1822_v9  ;;  %v2249_v57 = vadd.f32 %v4815_v24, %v2043_v30  ;;  %v2029_v63 = vmul.f32 %v4792_v27, %v1823_v26  ;;  %2729 = vrsqrt.f32 %v5888_v43 }
 0x248   : > { %2437 = vst [vmem:[%s4850_s23 + $0x518] sm:$0xff] %v2245_v31  ;;  %v1653_v12 = vmul.f32 0.5, %v1652_v21  ;;  %v2030_v52 = vmul.f32 %v4794_v7, %v1824_v59  ;;  %v2232_v56 = vadd.f32 %v4798_v48, %v2026_v28  ;;  %2731 = vrsqrt.f32 %v5899_v54 }
 0x249   : > { %2438 = vst [vmem:[%s4850_s23 + $0x520] sm:$0xff] %v2246_v38  ;;  %v2031_v40 = vmul.f32 %v4796_v16, %v1825_v13  ;;  %v2233_v4 = vadd.f32 %v4802_v29, %v2027_v10  ;;  %vm1657_vm8 = vweird.f32 %v5857_v25  ;;  %v2234_v33 = vadd.f32 %v4806_v6, %v2028_v17 }
 0x24a   : > { %2439 = vst [vmem:[%s4850_s23 + $0x528] sm:$0xff] %v2247_v62  ;;  %v1654_v45 = vsub.f32 1.5, %v1653_v12  ;;  %v2235_v49 = vadd.f32 %v4808_v32, %v2029_v63  ;;  %v2236_v22 = vadd.f32 %v4813_v18, %v2030_v52  ;;  %vm1658_vm10 = vmor %vm1656_vm9, %vm1657_vm8  ;;  %vm1636_vm12 = vweird.f32 %v5888_v43  ;;  %v6662_v63 = vld [vmem:[#allocation154_spill] sm:$0xff]  ;;  %v6663_v52 = vld [vmem:[#allocation155_spill] sm:$0xff] }
 0x24b   : > { %2440 = vst [vmem:[%s4850_s23 + $0x530] sm:$0xff] %v2248_v47  ;;  %v2237_v1 = vadd.f32 %v4815_v24, %v2031_v40  ;;  %vm1666_vm15 = vweird.f32 %v5899_v54  ;;  %v6664_v40 = vld [vmem:[#allocation156_spill] sm:$0xff] }
 0x24c   : > { %2441 = vst [vmem:[%s4850_s23 + $0x538] sm:$0xff] %v2249_v57  ;;  %v1655_v61 = vmul.f32 %v5857_v25, %v1654_v45  ;;  %v6665_v45 = vld [vmem:[#allocation157_spill] sm:$0xff] }
 0x24d   : > { %2424 = vst [vmem:[%s4850_s23 + $0x4b0] sm:$0xff] %v2232_v56  ;;  %v2730_v5 = vpop.eup %2729 }
 0x24e   : > { %2425 = vst [vmem:[%s4850_s23 + $0x4b8] sm:$0xff] %v2233_v4  ;;  %v1659_v35 = vsel %vm1658_vm10, %v5857_v25, %v1655_v61  ;;  %v2732_v41 = vpop.eup %2731  ;;  %v1631_v50 = vmul.f32 %v2730_v5, %v5888_v43  ;;  %vm1637_vm11 = vweird.f32 %v2730_v5  ;;  %v6666_v43 = vld [vmem:[#allocation158_spill] sm:$0xff]  ;;  %v6667_v61 = vld [vmem:[#allocation159_spill] sm:$0xff] }
 0x24f   : > { %2426 = vst [vmem:[%s4850_s23 + $0x4c0] sm:$0xff] %v2234_v33  ;;  %v1850_v15 = vmul.f32 %v1659_v35, %v6656_v11  ;;  %v1851_v14 = vmul.f32 %v1659_v35, %v6657_v8  ;;  %v1852_v53 = vmul.f32 %v1659_v35, %v6658_v2  ;;  %v1853_v37 = vmul.f32 %v1659_v35, %v6659_v39  ;;  %vm1638_vm14 = vmor %vm1636_vm12, %vm1637_vm11 }
 0x250   : > { %2427 = vst [vmem:[%s4850_s23 + $0x4c8] sm:$0xff] %v2235_v49  ;;  %v1854_v42 = vmul.f32 %v1659_v35, %v6660_v0  ;;  %v1855_v46 = vmul.f32 %v1659_v35, %v6661_v19  ;;  %v1632_v51 = vmul.f32 %v2730_v5, %v1631_v50  ;;  %v1661_v9 = vmul.f32 %v2732_v41, %v5899_v54 }
 0x251   : > { %2428 = vst [vmem:[%s4850_s23 + $0x4d0] sm:$0xff] %v2236_v22  ;;  %v2056_v25 = vmul.f32 %v4785_v58, %v1850_v15  ;;  %v2057_v3 = vmul.f32 %v4787_v60, %v1851_v14  ;;  %v2058_v23 = vmul.f32 %v4790_v36, %v1852_v53  ;;  %v2059_v20 = vmul.f32 %v4792_v27, %v1853_v37  ;;  %v6668_v14 = vld [vmem:[#allocation166_spill] sm:$0xff]  ;;  %v6669_v53 = vld [vmem:[#allocation167_spill] sm:$0xff] }
 0x252   : > { %2429 = vst [vmem:[%s4850_s23 + $0x4d8] sm:$0xff] %v2237_v1  ;;  %v2060_v30 = vmul.f32 %v4794_v7, %v1854_v42  ;;  %v2061_v31 = vmul.f32 %v4796_v16, %v1855_v46  ;;  %v1633_v59 = vmul.f32 0.5, %v1632_v51  ;;  %v1662_v28 = vmul.f32 %v2732_v41, %v1661_v9  ;;  %v6670_v46 = vld [vmem:[#allocation168_spill] sm:$0xff] }
 0x253   : > { %v2262_v34 = vadd.f32 %v4798_v48, %v2056_v25  ;;  %v2263_v26 = vadd.f32 %v4802_v29, %v2057_v3  ;;  %v2264_v38 = vadd.f32 %v4806_v6, %v2058_v23  ;;  %v2265_v55 = vadd.f32 %v4808_v32, %v2059_v20  ;;  %v6671_v25 = vld [vmem:[#allocation169_spill] sm:$0xff]  ;;  %v6672_v23 = vld [vmem:[#allocation170_spill] sm:$0xff] }
 0x254   : > { %v2266_v62 = vadd.f32 %v4813_v18, %v2060_v30  ;;  %v2267_v44 = vadd.f32 %v4815_v24, %v2061_v31  ;;  %v1634_v13 = vsub.f32 1.5, %v1633_v59  ;;  %v1663_v10 = vmul.f32 0.5, %v1662_v28  ;;  %v6673_v30 = vld [vmem:[#allocation171_spill] sm:$0xff] }
 0x255   : > { %2454 = vst [vmem:[%s4850_s23 + $0x5a0] sm:$0xff] %v2262_v34  ;;  %vm1667_vm13 = vweird.f32 %v2732_v41 }
 0x256   : > { %2455 = vst [vmem:[%s4850_s23 + $0x5a8] sm:$0xff] %v2263_v26  ;;  %v1635_v21 = vmul.f32 %v2730_v5, %v1634_v13  ;;  %v1664_v47 = vsub.f32 1.5, %v1663_v10  ;;  %vm1668_vm0 = vmor %vm1666_vm15, %vm1667_vm13 }
 0x257   : > { %2456 = vst [vmem:[%s4850_s23 + $0x5b0] sm:$0xff] %v2264_v38 }
 0x258   : > { %2457 = vst [vmem:[%s4850_s23 + $0x5b8] sm:$0xff] %v2265_v55  ;;  %v1639_v17 = vsel %vm1638_vm14, %v2730_v5, %v1635_v21  ;;  %v1665_v57 = vmul.f32 %v2732_v41, %v1664_v47 }
 0x259   : > { %2458 = vst [vmem:[%s4850_s23 + $0x5c0] sm:$0xff] %v2266_v62  ;;  %v1838_v12 = vmul.f32 %v1639_v17, %v6662_v63  ;;  %v1839_v56 = vmul.f32 %v1639_v17, %v6663_v52  ;;  %v1840_v4 = vmul.f32 %v1639_v17, %v6664_v40  ;;  %v1841_v33 = vmul.f32 %v1639_v17, %v6665_v45 }
 0x25a   : > { %2459 = vst [vmem:[%s4850_s23 + $0x5c8] sm:$0xff] %v2267_v44  ;;  %v1842_v49 = vmul.f32 %v1639_v17, %v6666_v43  ;;  %v1843_v22 = vmul.f32 %v1639_v17, %v6667_v61  ;;  %v1669_v1 = vsel %vm1668_vm0, %v2732_v41, %v1665_v57 }
 0x25b   : > { %v2044_v5 = vmul.f32 %v4785_v58, %v1838_v12  ;;  %v2045_v54 = vmul.f32 %v4787_v60, %v1839_v56  ;;  %v2046_v35 = vmul.f32 %v4790_v36, %v1840_v4  ;;  %v2047_v11 = vmul.f32 %v4792_v27, %v1841_v33 }
 0x25c   : > { %v2048_v15 = vmul.f32 %v4794_v7, %v1842_v49  ;;  %v2049_v8 = vmul.f32 %v4796_v16, %v1843_v22  ;;  %v1856_v2 = vmul.f32 %v1669_v1, %v6668_v14  ;;  %v1857_v39 = vmul.f32 %v1669_v1, %v6669_v53 }
 0x25d   : > { %v2250_v41 = vadd.f32 %v4798_v48, %v2044_v5  ;;  %v2251_v37 = vadd.f32 %v4802_v29, %v2045_v54  ;;  %v2252_v0 = vadd.f32 %v4806_v6, %v2046_v35  ;;  %v2253_v42 = vadd.f32 %v4808_v32, %v2047_v11 }
 0x25e   : > { %v2254_v19 = vadd.f32 %v4813_v18, %v2048_v15  ;;  %v1858_v50 = vmul.f32 %v1669_v1, %v6670_v46  ;;  %v1859_v3 = vmul.f32 %v1669_v1, %v6671_v25  ;;  %v1860_v20 = vmul.f32 %v1669_v1, %v6672_v23 }
 0x25f   : > { %2442 = vst [vmem:[%s4850_s23 + $0x540] sm:$0xff] %v2250_v41  ;;  %v1861_v31 = vmul.f32 %v1669_v1, %v6673_v30  ;;  %v2062_v51 = vmul.f32 %v4785_v58, %v1856_v2  ;;  %v2063_v9 = vmul.f32 %v4787_v60, %v1857_v39  ;;  %v2255_v34 = vadd.f32 %v4815_v24, %v2049_v8 }
 0x260   : > { %2443 = vst [vmem:[%s4850_s23 + $0x548] sm:$0xff] %v2251_v37  ;;  %v2064_v26 = vmul.f32 %v4790_v36, %v1858_v50  ;;  %v2065_v38 = vmul.f32 %v4792_v27, %v1859_v3  ;;  %v2066_v55 = vmul.f32 %v4794_v7, %v1860_v20 }
 0x261   : > { %2444 = vst [vmem:[%s4850_s23 + $0x550] sm:$0xff] %v2252_v0  ;;  %v2268_v59 = vadd.f32 %v4798_v48, %v2062_v51  ;;  %v2067_v58 = vmul.f32 %v4796_v16, %v1861_v31  ;;  %v2269_v60 = vadd.f32 %v4802_v29, %v2063_v9 }
 0x262   : > { %2445 = vst [vmem:[%s4850_s23 + $0x558] sm:$0xff] %v2253_v42  ;;  %v2270_v36 = vadd.f32 %v4806_v6, %v2064_v26  ;;  %v2271_v27 = vadd.f32 %v4808_v32, %v2065_v38  ;;  %v2272_v7 = vadd.f32 %v4813_v18, %v2066_v55 }
 0x263   : > { %2446 = vst [vmem:[%s4850_s23 + $0x560] sm:$0xff] %v2254_v19  ;;  %v2273_v48 = vadd.f32 %v4815_v24, %v2067_v58 }
 0x264   : > { %2447 = vst [vmem:[%s4850_s23 + $0x568] sm:$0xff] %v2255_v34 }
 0x265   : > { %2460 = vst [vmem:[%s4850_s23 + $0x5d0] sm:$0xff] %v2268_v59 }
 0x266   : > { %2461 = vst [vmem:[%s4850_s23 + $0x5d8] sm:$0xff] %v2269_v60 }
 0x267   : > { %2462 = vst [vmem:[%s4850_s23 + $0x5e0] sm:$0xff] %v2270_v36 }
 0x268   : > { %2463 = vst [vmem:[%s4850_s23 + $0x5e8] sm:$0xff] %v2271_v27 }
 0x269   : > { %2464 = vst [vmem:[%s4850_s23 + $0x5f0] sm:$0xff] %v2272_v7 }
 0x26a   : > { %2465 = vst [vmem:[%s4850_s23 + $0x5f8] sm:$0xff] %v2273_v48 }
 0x26b   : > { %2962 = shalt.err (!%p2959_p8)
}
 0x26c   : > { %s3012_s27 = smov 768   ;;  %s3013_s28 = smov 48  }
 0x26d   : > { %2605 = dma.vmem_to_hbm [thread:$0]  (%p3086_p11), %s2481_s29, 24576, %s2483_s22, %s2467_s6, %s3012_s27, %s3012_s27, %s3013_s28  }
 0x26e PF: > { %s2497_s30 = sand.u32 1, %s2993_s12   ;;  %p6674_p9 = scmp.ge.s32.totalorder %s3005_s15, 2 }
 0x26f   : > { %s2498_s4 = scalar_lea.sflag [#allocation4], %s2497_s30 }
 0x270   : > { %p2619_p10 = pnand %p6674_p9, %p3090_p12 }
 0x272   : > { %p2620_p1 = pneg %p2619_p10 }
 0x274   : > { %2988 = dma.done.wait (%p2620_p1), %s2498_s4, 24576  }
 0x275   : > { %2990 = vsyncadd (%p2620_p1), %s2498_s4, 4294942720  ;;  %p17_p2 = scmp.ge.s32.totalorder %s3059_s18, 4   ;;  %s6675_s12 = smov %s2997_s13 }
 0x276   : > { %s6676_s13 = smov %s3001_s14  ;;  %s6677_s14 = smov %s3071_s21 }
 0x277   : > { %s6678_s15 = smov %s3059_s18  ;;  %19 = sbr.rel (!%p17_p2) target bundleno = 6 (0x6), region = 85 }
 0x27c   :  { %2504 = vsyncpa [#allocation3], 1 }
 0x27d   :  { %2506 = vsyncpa [#allocation3 + $0x1], 1 }
 0x27e   :  { %2507 = vsyncpa [#allocation6], 1 }
 0x27f   :  { %2508 = vsyncpa [#allocation4], 1 }
 0x280   :  { %2510 = vsyncpa [#allocation4 + $0x1], 1 }

</bundles_post_ra>
